<compile_context>
chip_gen: v7x
topology: tpu7x:2x2x1
jax: 0.10.0
libtpu: 0.0.40
codegen_flags: <defaults>
</compile_context>

<pallas_src>
import functools
import math

import jax
import jax.numpy as jnp
from jax.experimental import pallas as pl
from jax.experimental.pallas import tpu as pltpu


# ----------------------------------------------------------------------------
# Fused decoder kernel: whole multi-layer forward for one block of the batch
# ----------------------------------------------------------------------------
def _fused_decoder_kernel(
    x_ref, mem_ref,
    sa_wqkv_ref, sa_bqkv_ref, sa_wo_ref, sa_bo_ref,
    ca_wq_ref, ca_bq_ref, ca_wkv_ref, ca_bkv_ref, ca_wo_ref, ca_bo_ref,
    ln1_g_ref, ln1_b_ref, ln2_g_ref, ln2_b_ref, ln3_g_ref, ln3_b_ref,
    w1_ref, b1_ref, w2_ref, b2_ref,
    pack_w_ref, pack_b_ref,
    out_ref,
    heads_ref,                      # VMEM scratch (rows, D) f32
    *, num_layers, num_heads, num_vars, eps,
):
    f32, bf16 = jnp.float32, jnp.bfloat16
    x = x_ref[...].astype(f32)      # (rows, D) folded activations
    mem = mem_ref[...].astype(f32)  # (rows, D) folded memory (hidden)
    rows, D = x.shape
    N = num_vars
    Bg = rows // N                  # batch elements in this block (static)
    dh = D // num_heads
    scale = 1.0 / math.sqrt(dh)

    def layer_norm(y, g, b):
        # single-pass statistics: var = E[y^2] - mu^2 (one fewer XLU reduce pass)
        mu = jnp.mean(y, axis=-1, keepdims=True)
        var = jnp.mean(y * y, axis=-1, keepdims=True) - mu * mu
        return (y - mu) * jax.lax.rsqrt(var + eps) * g + b

    def attention(q, k, v):
        # q/k/v: (rows, D) folded over batch.  Per-(batch, head) scores + PV,
        # each head's output written at its lane offset into heads_ref; the
        # output projection is applied afterwards as ONE folded matmul.
        for b in range(Bg):
            r0, r1 = b * N, (b + 1) * N
            for h in range(num_heads):
                lo = h * dh
                qh = q[r0:r1, lo:lo + dh].astype(bf16)
                kh = k[r0:r1, lo:lo + dh].astype(bf16)
                vh = v[r0:r1, lo:lo + dh].astype(bf16)
                # q @ k^T without materializing a transposed copy of k.
                s = jax.lax.dot_general(
                    qh, kh, (((1,), (1,)), ((), ())),
                    preferred_element_type=f32) * scale
                s = s - jnp.max(s, axis=-1, keepdims=True)
                p = jnp.exp(s)
                p = p * pl.reciprocal(jnp.sum(p, axis=-1, keepdims=True),
                                      approx=True)
                oh = jnp.dot(p.astype(bf16), vh, preferred_element_type=f32)
                heads_ref[r0:r1, lo:lo + dh] = oh

    for l in range(num_layers):
        # ---- self-attention (fused QKV projection), residual + norm1 ----
        qkv = jnp.dot(x.astype(bf16), sa_wqkv_ref[l],
                      preferred_element_type=f32) + sa_bqkv_ref[l]  # (rows, 3D)
        attention(qkv[:, :D], qkv[:, D:2 * D], qkv[:, 2 * D:])
        sa = jnp.dot(heads_ref[...].astype(bf16), sa_wo_ref[l],
                     preferred_element_type=f32) + sa_bo_ref[l]
        x = layer_norm(x + sa, ln1_g_ref[l], ln1_b_ref[l])

        # ---- cross-attention with memory (fused KV), residual + norm2 ----
        q = jnp.dot(x.astype(bf16), ca_wq_ref[l],
                    preferred_element_type=f32) + ca_bq_ref[l]      # (rows, D)
        kv = jnp.dot(mem.astype(bf16), ca_wkv_ref[l],
                     preferred_element_type=f32) + ca_bkv_ref[l]    # (rows, 2D)
        attention(q, kv[:, :D], kv[:, D:])
        ca = jnp.dot(heads_ref[...].astype(bf16), ca_wo_ref[l],
                     preferred_element_type=f32) + ca_bo_ref[l]
        x = layer_norm(x + ca, ln2_g_ref[l], ln2_b_ref[l])

        # ---- FFN (linear -> relu -> linear), residual + norm3 ----
        hid = jnp.dot(x.astype(bf16), w1_ref[l],
                      preferred_element_type=f32) + b1_ref[l]
        hid = jnp.maximum(hid, 0.0)
        ff = jnp.dot(hid.astype(bf16), w2_ref[l],
                     preferred_element_type=f32) + b2_ref[l]
        x = layer_norm(x + ff, ln3_g_ref[l], ln3_b_ref[l])

    # ---- lane-dense packed output: [ x | preds | 0 ], one 128-wide store ----
    # pack matmul kept in f32 so the identity-copy of x is exact.
    slab = jnp.dot(x, pack_w_ref[...],
                   preferred_element_type=f32) + pack_b_ref[...]
    out_ref[...] = slab.astype(out_ref.dtype)


# ----------------------------------------------------------------------------
# Wrapper: one pallas_call for the whole forward
# ----------------------------------------------------------------------------
_PARAM_ORDER = (
    "sa_wqkv", "sa_bqkv", "sa_wo", "sa_bo",
    "ca_wq", "ca_bq", "ca_wkv", "ca_bkv", "ca_wo", "ca_bo",
    "ln1_g", "ln1_b", "ln2_g", "ln2_b", "ln3_g", "ln3_b",
    "w1", "b1", "w2", "b2",
    "pack_w", "pack_b",
)
# weights whose matmul operands are fed to the MXU in bf16
_BF16_WEIGHTS = ("sa_wqkv", "sa_wo", "ca_wq", "ca_wkv", "ca_wo", "w1", "w2")


def _full_block_spec(shape):
    nd = len(shape)
    return pl.BlockSpec(shape, lambda g, _nd=nd: (0,) * _nd)


@functools.partial(jax.jit, static_argnames=("num_heads", "batch_blocks"))
def dnri_dynamicvars_decoder_forward(inputs, hidden, params, *, num_heads,
                                     batch_blocks=1):
    """inputs/hidden: (B, num_vars, hidden_size).  Returns (preds, outputs)."""
    memory = hidden if hidden is not None else jnp.zeros_like(inputs)
    B, N, D = inputs.shape
    L = params["sa_wqkv"].shape[0]
    F = params["w1"].shape[2]
    input_size = params["out_w"].shape[1]

    G = batch_blocks
    assert B % G == 0, "batch_blocks must divide the batch size"
    rows = B * N
    rpb = rows // G                                  # rows per grid step

    # Packed, lane-dense output weights: lanes [0:D] copy x, [D:D+input_size]
    # compute out_fc; remaining lanes are zero padding up to a 128 multiple.
    pack = ((D + input_size + 127) // 128) * 128
    pack_w = jnp.zeros((D, pack), jnp.float32)
    pack_w = pack_w.at[:, :D].set(jnp.eye(D, dtype=jnp.float32))
    pack_w = pack_w.at[:, D:D + input_size].set(params["out_w"])
    pack_b = jnp.zeros((1, pack), jnp.float32)
    pack_b = pack_b.at[:, D:D + input_size].set(params["out_b"])

    kparams = dict(params)
    for name in _BF16_WEIGHTS:                       # bf16 matmul operands
        kparams[name] = params[name].astype(jnp.bfloat16)
    kparams["pack_w"], kparams["pack_b"] = pack_w, pack_b
    weight_args = tuple(kparams[name] for name in _PARAM_ORDER)

    kernel = functools.partial(
        _fused_decoder_kernel, num_layers=L, num_heads=num_heads,
        num_vars=N, eps=1e-5)

    in_specs = [
        pl.BlockSpec((rpb, D), lambda g: (g, 0)),    # folded inputs
        pl.BlockSpec((rpb, D), lambda g: (g, 0)),    # folded memory
    ] + [_full_block_spec(a.shape) for a in weight_args]
    out_specs = pl.BlockSpec((rpb, pack), lambda g: (g, 0))

    # Rough cost hint so XLA schedules the tiny custom call sensibly.
    flops_layer = (
        2 * rows * D * 3 * D            # self QKV proj
        + 4 * B * N * N * D             # self attn scores + PV (all heads)
        + 2 * rows * D * D              # self out proj
        + 2 * rows * D * D              # cross Q proj
        + 2 * rows * D * 2 * D          # cross KV proj
        + 4 * B * N * N * D             # cross attn scores + PV
        + 2 * rows * D * D              # cross out proj
        + 4 * rows * D * F              # FFN
    )
    flops = int(L * flops_layer + 2 * rows * D * pack)
    transcendentals = int(L * (2 * B * num_heads * N * N + 3 * rows))
    bytes_accessed = int(
        sum(a.size * a.dtype.itemsize for a in weight_args)
        + 2 * rows * D * 4 + rows * pack * 4)
    cost = pl.CostEstimate(flops=flops, transcendentals=transcendentals,
                           bytes_accessed=bytes_accessed)

    slab = pl.pallas_call(
        kernel,
        out_shape=jax.ShapeDtypeStruct((rows, pack), inputs.dtype),
        grid=(G,),
        in_specs=in_specs,
        out_specs=out_specs,
        scratch_shapes=[pltpu.VMEM((rpb, D), jnp.float32)],
        compiler_params=pltpu.CompilerParams(
            dimension_semantics=("parallel",)),
        cost_estimate=cost,
    )(inputs.reshape(rows, D), memory.reshape(rows, D), *weight_args)

    slab = slab.reshape(B, N, pack)
    outputs = slab[..., :D]
    preds = slab[..., D:D + input_size]
    return preds, outputs


def _default_batch_blocks(batch_size):
    """grid=(2,) parallel batch split on v7x (2 TensorCores/chip); fold the
    whole batch into rows (grid=(1,)) on single-TC v5e/v6e."""
    try:
        kind = jax.devices()[0].device_kind.lower()
    except Exception:
        return 1
    if ("v7" in kind or "tpu7" in kind or "7x" in kind) and batch_size % 2 == 0:
        return 2
    return 1


# ----------------------------------------------------------------------------
# Deterministic parameter construction (shapes from the PyTorch __init__),
# stored pre-transposed as (Din, Dout) and stacked over layers.
# ----------------------------------------------------------------------------
def init_params(key, input_size, hidden, ffn_dim, num_layers):
    def rnd(k, shape, scale):
        return jax.random.normal(k, shape, jnp.float32) * scale

    D, F, L = hidden, ffn_dim, num_layers
    s = 1.0 / math.sqrt(D)
    sf = 1.0 / math.sqrt(F)
    ks = jax.random.split(key, 16)
    return dict(
        sa_wqkv=rnd(ks[0], (L, D, 3 * D), s), sa_bqkv=rnd(ks[1], (L, 1, 3 * D), 0.02),
        sa_wo=rnd(ks[2], (L, D, D), s),       sa_bo=rnd(ks[3], (L, 1, D), 0.02),
        ca_wq=rnd(ks[4], (L, D, D), s),       ca_bq=rnd(ks[5], (L, 1, D), 0.02),
        ca_wkv=rnd(ks[6], (L, D, 2 * D), s),  ca_bkv=rnd(ks[7], (L, 1, 2 * D), 0.02),
        ca_wo=rnd(ks[8], (L, D, D), s),       ca_bo=rnd(ks[9], (L, 1, D), 0.02),
        ln1_g=jnp.ones((L, 1, D), jnp.float32), ln1_b=jnp.zeros((L, 1, D), jnp.float32),
        ln2_g=jnp.ones((L, 1, D), jnp.float32), ln2_b=jnp.zeros((L, 1, D), jnp.float32),
        ln3_g=jnp.ones((L, 1, D), jnp.float32), ln3_b=jnp.zeros((L, 1, D), jnp.float32),
        w1=rnd(ks[10], (L, D, F), s),  b1=rnd(ks[11], (L, 1, F), 0.02),
        w2=rnd(ks[12], (L, F, D), sf), b2=rnd(ks[13], (L, 1, D), 0.02),
        out_w=rnd(ks[14], (D, input_size), s),
        out_b=rnd(ks[15], (1, input_size), 0.02),
    )


# ----------------------------------------------------------------------------
# Pure-JAX f32 reference (same parameter layout) for correctness check
# ----------------------------------------------------------------------------
def _ref_mha(q_in, kv_in, wq, bq, wkv, bkv, wo, bo, H):
    B, Nq, D = q_in.shape
    Nk = kv_in.shape[1]
    dh = D // H
    q = q_in @ wq + bq
    kv = kv_in @ wkv + bkv
    k, v = kv[..., :D], kv[..., D:]
    q = q.reshape(B, Nq, H, dh).transpose(0, 2, 1, 3)
    k = k.reshape(B, Nk, H, dh).transpose(0, 2, 1, 3)
    v = v.reshape(B, Nk, H, dh).transpose(0, 2, 1, 3)
    s = jnp.einsum("bhqd,bhkd->bhqk", q, k) / math.sqrt(dh)
    a = jax.nn.softmax(s, axis=-1)
    o = jnp.einsum("bhqk,bhkd->bhqd", a, v).transpose(0, 2, 1, 3).reshape(B, Nq, D)
    return o @ wo + bo


def ref_forward(inputs, hidden, P, H, eps=1e-5):
    memory = hidden if hidden is not None else jnp.zeros_like(inputs)
    B, N, D = inputs.shape
    L = P["sa_wqkv"].shape[0]

    def ln(y, g, b):
        m = y.mean(-1, keepdims=True)
        v = ((y - m) ** 2).mean(-1, keepdims=True)
        return (y - m) / jnp.sqrt(v + eps) * g + b

    x = inputs
    for l in range(L):
        wqkv, bqkv = P["sa_wqkv"][l], P["sa_bqkv"][l]
        sa = _ref_mha(x, x, wqkv[:, :D], bqkv[:, :D], wqkv[:, D:], bqkv[:, D:],
                      P["sa_wo"][l], P["sa_bo"][l], H)
        x = ln(x + sa, P["ln1_g"][l], P["ln1_b"][l])
        ca = _ref_mha(x, memory, P["ca_wq"][l], P["ca_bq"][l], P["ca_wkv"][l],
                      P["ca_bkv"][l], P["ca_wo"][l], P["ca_bo"][l], H)
        x = ln(x + ca, P["ln2_g"][l], P["ln2_b"][l])
        h = jnp.maximum(x @ P["w1"][l] + P["b1"][l], 0.0) @ P["w2"][l] + P["b2"][l]
        x = ln(x + h, P["ln3_g"][l], P["ln3_b"][l])
    preds = x @ P["out_w"] + P["out_b"]
    return preds, x


# ----------------------------------------------------------------------------
if __name__ == "__main__":
    B, NUM_VARS = 2, 8
    INPUT_SIZE, HIDDEN = 6, 32
    NUM_HEADS, NUM_LAYERS, FFN = 4, 2, 64

    key = jax.random.PRNGKey(0)
    k_in, k_hid, k_par = jax.random.split(key, 3)
    inputs = jax.random.normal(k_in, (B, NUM_VARS, HIDDEN), jnp.float32)
    hidden = jax.random.normal(k_hid, (B, NUM_VARS, HIDDEN), jnp.float32)
    params = init_params(k_par, INPUT_SIZE, HIDDEN, FFN, NUM_LAYERS)

    # edges / node_masks / graph_info are unused by the PyTorch forward.
    preds, outputs = dnri_dynamicvars_decoder_forward(
        inputs, hidden, params, num_heads=NUM_HEADS,
        batch_blocks=_default_batch_blocks(B))
    jax.block_until_ready((preds, outputs))

    ref_preds, ref_out = ref_forward(inputs, hidden, params, NUM_HEADS)
    assert preds.shape == (B, NUM_VARS, INPUT_SIZE)
    assert outputs.shape == (B, NUM_VARS, HIDDEN)
    # Matmul operands are bf16 (f32 accumulation) in the kernel, so compare
    # against the pure-f32 reference with a bf16-appropriate tolerance.
    assert jnp.allclose(preds, ref_preds, atol=6e-2, rtol=6e-2)
    assert jnp.allclose(outputs, ref_out, atol=6e-2, rtol=6e-2)

    print("KERNEL_OK")
</pallas_src>

<mosaic_0001>
module attributes {stable_mosaic.version = 11 : i64} {
  func.func @_fused_decoder_kernel(%arg0: i32, %arg1: memref<16x32xf32, #tpu.memory_space<vmem>>, %arg2: memref<16x32xf32, #tpu.memory_space<vmem>>, %arg3: memref<2x32x96xbf16, #tpu.memory_space<vmem>>, %arg4: memref<2x1x96xf32, #tpu.memory_space<vmem>>, %arg5: memref<2x32x32xbf16, #tpu.memory_space<vmem>>, %arg6: memref<2x1x32xf32, #tpu.memory_space<vmem>>, %arg7: memref<2x32x32xbf16, #tpu.memory_space<vmem>>, %arg8: memref<2x1x32xf32, #tpu.memory_space<vmem>>, %arg9: memref<2x32x64xbf16, #tpu.memory_space<vmem>>, %arg10: memref<2x1x64xf32, #tpu.memory_space<vmem>>, %arg11: memref<2x32x32xbf16, #tpu.memory_space<vmem>>, %arg12: memref<2x1x32xf32, #tpu.memory_space<vmem>>, %arg13: memref<2x1x32xf32, #tpu.memory_space<vmem>>, %arg14: memref<2x1x32xf32, #tpu.memory_space<vmem>>, %arg15: memref<2x1x32xf32, #tpu.memory_space<vmem>>, %arg16: memref<2x1x32xf32, #tpu.memory_space<vmem>>, %arg17: memref<2x1x32xf32, #tpu.memory_space<vmem>>, %arg18: memref<2x1x32xf32, #tpu.memory_space<vmem>>, %arg19: memref<2x32x64xbf16, #tpu.memory_space<vmem>>, %arg20: memref<2x1x64xf32, #tpu.memory_space<vmem>>, %arg21: memref<2x64x32xbf16, #tpu.memory_space<vmem>>, %arg22: memref<2x1x32xf32, #tpu.memory_space<vmem>>, %arg23: memref<32x128xf32, #tpu.memory_space<vmem>>, %arg24: memref<1x128xf32, #tpu.memory_space<vmem>>, %arg25: memref<16x128xf32, #tpu.memory_space<vmem>>, %arg26: memref<16x32xf32, #tpu.memory_space<vmem>>) attributes {dimension_semantics = [#tpu.dimension_semantics<parallel>], iteration_bounds = array<i64: 1>, scalar_prefetch = 0 : i64, scratch_operands = 1 : i64, tpu.core_type = #tpu.core_type<tc>, window_params = [{transform_indices = @transform_0, window_bounds = array<i64: 16, 32>}, {transform_indices = @transform_1, window_bounds = array<i64: 16, 32>}, {pipeline_mode = #tpu.pipeline_mode<synchronous>, transform_indices = @transform_2, window_bounds = array<i64: 2, 32, 96>}, {pipeline_mode = #tpu.pipeline_mode<synchronous>, transform_indices = @transform_3, window_bounds = array<i64: 2, 1, 96>}, {pipeline_mode = #tpu.pipeline_mode<synchronous>, transform_indices = @transform_4, window_bounds = array<i64: 2, 32, 32>}, {pipeline_mode = #tpu.pipeline_mode<synchronous>, transform_indices = @transform_5, window_bounds = array<i64: 2, 1, 32>}, {pipeline_mode = #tpu.pipeline_mode<synchronous>, transform_indices = @transform_6, window_bounds = array<i64: 2, 32, 32>}, {pipeline_mode = #tpu.pipeline_mode<synchronous>, transform_indices = @transform_7, window_bounds = array<i64: 2, 1, 32>}, {pipeline_mode = #tpu.pipeline_mode<synchronous>, transform_indices = @transform_8, window_bounds = array<i64: 2, 32, 64>}, {pipeline_mode = #tpu.pipeline_mode<synchronous>, transform_indices = @transform_9, window_bounds = array<i64: 2, 1, 64>}, {pipeline_mode = #tpu.pipeline_mode<synchronous>, transform_indices = @transform_10, window_bounds = array<i64: 2, 32, 32>}, {pipeline_mode = #tpu.pipeline_mode<synchronous>, transform_indices = @transform_11, window_bounds = array<i64: 2, 1, 32>}, {pipeline_mode = #tpu.pipeline_mode<synchronous>, transform_indices = @transform_12, window_bounds = array<i64: 2, 1, 32>}, {pipeline_mode = #tpu.pipeline_mode<synchronous>, transform_indices = @transform_13, window_bounds = array<i64: 2, 1, 32>}, {pipeline_mode = #tpu.pipeline_mode<synchronous>, transform_indices = @transform_14, window_bounds = array<i64: 2, 1, 32>}, {pipeline_mode = #tpu.pipeline_mode<synchronous>, transform_indices = @transform_15, window_bounds = array<i64: 2, 1, 32>}, {pipeline_mode = #tpu.pipeline_mode<synchronous>, transform_indices = @transform_16, window_bounds = array<i64: 2, 1, 32>}, {pipeline_mode = #tpu.pipeline_mode<synchronous>, transform_indices = @transform_17, window_bounds = array<i64: 2, 1, 32>}, {pipeline_mode = #tpu.pipeline_mode<synchronous>, transform_indices = @transform_18, window_bounds = array<i64: 2, 32, 64>}, {pipeline_mode = #tpu.pipeline_mode<synchronous>, transform_indices = @transform_19, window_bounds = array<i64: 2, 1, 64>}, {pipeline_mode = #tpu.pipeline_mode<synchronous>, transform_indices = @transform_20, window_bounds = array<i64: 2, 64, 32>}, {pipeline_mode = #tpu.pipeline_mode<synchronous>, transform_indices = @transform_21, window_bounds = array<i64: 2, 1, 32>}, {pipeline_mode = #tpu.pipeline_mode<synchronous>, transform_indices = @transform_22, window_bounds = array<i64: 32, 128>}, {pipeline_mode = #tpu.pipeline_mode<synchronous>, transform_indices = @transform_23, window_bounds = array<i64: 1, 128>}, {transform_indices = @transform_24, window_bounds = array<i64: 16, 128>}]} {
    %c0 = arith.constant 0 : index
    %c0_0 = arith.constant 0 : index
    %0 = vector.load %arg1[%c0, %c0_0] : memref<16x32xf32, #tpu.memory_space<vmem>>, vector<16x32xf32>
    %c0_1 = arith.constant 0 : index
    %c0_2 = arith.constant 0 : index
    %1 = vector.load %arg2[%c0_1, %c0_2] : memref<16x32xf32, #tpu.memory_space<vmem>>, vector<16x32xf32>
    %2 = arith.truncf %0 : vector<16x32xf32> to vector<16x32xbf16>
    %c0_3 = arith.constant 0 : index
    %c0_4 = arith.constant 0 : index
    %c0_5 = arith.constant 0 : index
    %3 = vector.load %arg3[%c0_3, %c0_4, %c0_5] : memref<2x32x96xbf16, #tpu.memory_space<vmem>>, vector<1x32x96xbf16>
    %4 = vector.shape_cast %3 : vector<1x32x96xbf16> to vector<32x96xbf16>
    %cst = arith.constant dense<0.000000e+00> : vector<16x96xf32>
    %5 = tpu.matmul %2, %4, %cst {dimension_numbers = #tpu.dot_dimension_numbers<[1], [0], [0], [1], [0, 0, 1, 1], [], []>} : vector<16x32xbf16>, vector<32x96xbf16>, vector<16x96xf32> -> vector<16x96xf32>
    %c0_6 = arith.constant 0 : index
    %c0_7 = arith.constant 0 : index
    %c0_8 = arith.constant 0 : index
    %6 = vector.load %arg4[%c0_6, %c0_7, %c0_8] : memref<2x1x96xf32, #tpu.memory_space<vmem>>, vector<1x1x96xf32>
    %7 = vector.shape_cast %6 : vector<1x1x96xf32> to vector<1x96xf32>
    %8 = vector.broadcast %7 : vector<1x96xf32> to vector<16x96xf32>
    %9 = arith.addf %5, %8 : vector<16x96xf32>
    %10 = vector.extract_strided_slice %9 {offsets = [0, 0], sizes = [16, 32], strides = [1, 1]} : vector<16x96xf32> to vector<16x32xf32>
    %11 = vector.extract_strided_slice %9 {offsets = [0, 32], sizes = [16, 32], strides = [1, 1]} : vector<16x96xf32> to vector<16x32xf32>
    %12 = vector.extract_strided_slice %9 {offsets = [0, 64], sizes = [16, 32], strides = [1, 1]} : vector<16x96xf32> to vector<16x32xf32>
    %13 = vector.extract_strided_slice %10 {offsets = [0, 0], sizes = [8, 8], strides = [1, 1]} : vector<16x32xf32> to vector<8x8xf32>
    %14 = arith.truncf %13 : vector<8x8xf32> to vector<8x8xbf16>
    %15 = vector.extract_strided_slice %11 {offsets = [0, 0], sizes = [8, 8], strides = [1, 1]} : vector<16x32xf32> to vector<8x8xf32>
    %16 = arith.truncf %15 : vector<8x8xf32> to vector<8x8xbf16>
    %17 = vector.extract_strided_slice %12 {offsets = [0, 0], sizes = [8, 8], strides = [1, 1]} : vector<16x32xf32> to vector<8x8xf32>
    %18 = arith.truncf %17 : vector<8x8xf32> to vector<8x8xbf16>
    %cst_9 = arith.constant dense<0.000000e+00> : vector<8x8xf32>
    %19 = tpu.matmul %14, %16, %cst_9 {dimension_numbers = #tpu.dot_dimension_numbers<[1], [1], [0], [0], [0, 0, 1, 0], [], []>} : vector<8x8xbf16>, vector<8x8xbf16>, vector<8x8xf32> -> vector<8x8xf32>
    %cst_10 = arith.constant 0.353553385 : f32
    %20 = vector.broadcast %cst_10 : f32 to vector<8x8xf32>
    %21 = arith.mulf %19, %20 : vector<8x8xf32>
    %cst_11 = arith.constant dense<0xFF800000> : vector<8xf32>
    %22 = vector.multi_reduction <maximumf>, %21, %cst_11 [1] : vector<8x8xf32> to vector<8xf32>
    %23 = vector.shape_cast %22 : vector<8xf32> to vector<8x1xf32>
    %24 = vector.broadcast %23 : vector<8x1xf32> to vector<8x8xf32>
    %25 = arith.subf %21, %24 : vector<8x8xf32>
    %26 = math.exp %25 : vector<8x8xf32>
    %cst_12 = arith.constant dense<0.000000e+00> : vector<8xf32>
    %27 = vector.multi_reduction <add>, %26, %cst_12 [1] : vector<8x8xf32> to vector<8xf32>
    %28 = vector.shape_cast %27 : vector<8xf32> to vector<8x1xf32>
    %29 = tpu.reciprocal %28 {approx = true} : vector<8x1xf32> -> vector<8x1xf32>
    %30 = vector.broadcast %29 : vector<8x1xf32> to vector<8x8xf32>
    %31 = arith.mulf %26, %30 : vector<8x8xf32>
    %32 = arith.truncf %31 : vector<8x8xf32> to vector<8x8xbf16>
    %cst_13 = arith.constant dense<0.000000e+00> : vector<8x8xf32>
    %33 = tpu.matmul %32, %18, %cst_13 {dimension_numbers = #tpu.dot_dimension_numbers<[1], [0], [0], [1], [0, 0, 1, 1], [], []>} : vector<8x8xbf16>, vector<8x8xbf16>, vector<8x8xf32> -> vector<8x8xf32>
    %c0_14 = arith.constant 0 : index
    %c0_15 = arith.constant 0 : index
    %34 = vector.load %arg26[%c0_14, %c0_15] : memref<16x32xf32, #tpu.memory_space<vmem>>, vector<8x8xf32>
    tpu.vector_store %arg26[%c0_14, %c0_15], %33 {strides = array<i32>} : memref<16x32xf32, #tpu.memory_space<vmem>>, vector<8x8xf32>,
    %35 = vector.extract_strided_slice %10 {offsets = [0, 8], sizes = [8, 8], strides = [1, 1]} : vector<16x32xf32> to vector<8x8xf32>
    %36 = arith.truncf %35 : vector<8x8xf32> to vector<8x8xbf16>
    %37 = vector.extract_strided_slice %11 {offsets = [0, 8], sizes = [8, 8], strides = [1, 1]} : vector<16x32xf32> to vector<8x8xf32>
    %38 = arith.truncf %37 : vector<8x8xf32> to vector<8x8xbf16>
    %39 = vector.extract_strided_slice %12 {offsets = [0, 8], sizes = [8, 8], strides = [1, 1]} : vector<16x32xf32> to vector<8x8xf32>
    %40 = arith.truncf %39 : vector<8x8xf32> to vector<8x8xbf16>
    %cst_16 = arith.constant dense<0.000000e+00> : vector<8x8xf32>
    %41 = tpu.matmul %36, %38, %cst_16 {dimension_numbers = #tpu.dot_dimension_numbers<[1], [1], [0], [0], [0, 0, 1, 0], [], []>} : vector<8x8xbf16>, vector<8x8xbf16>, vector<8x8xf32> -> vector<8x8xf32>
    %cst_17 = arith.constant 0.353553385 : f32
    %42 = vector.broadcast %cst_17 : f32 to vector<8x8xf32>
    %43 = arith.mulf %41, %42 : vector<8x8xf32>
    %cst_18 = arith.constant dense<0xFF800000> : vector<8xf32>
    %44 = vector.multi_reduction <maximumf>, %43, %cst_18 [1] : vector<8x8xf32> to vector<8xf32>
    %45 = vector.shape_cast %44 : vector<8xf32> to vector<8x1xf32>
    %46 = vector.broadcast %45 : vector<8x1xf32> to vector<8x8xf32>
    %47 = arith.subf %43, %46 : vector<8x8xf32>
    %48 = math.exp %47 : vector<8x8xf32>
    %cst_19 = arith.constant dense<0.000000e+00> : vector<8xf32>
    %49 = vector.multi_reduction <add>, %48, %cst_19 [1] : vector<8x8xf32> to vector<8xf32>
    %50 = vector.shape_cast %49 : vector<8xf32> to vector<8x1xf32>
    %51 = tpu.reciprocal %50 {approx = true} : vector<8x1xf32> -> vector<8x1xf32>
    %52 = vector.broadcast %51 : vector<8x1xf32> to vector<8x8xf32>
    %53 = arith.mulf %48, %52 : vector<8x8xf32>
    %54 = arith.truncf %53 : vector<8x8xf32> to vector<8x8xbf16>
    %cst_20 = arith.constant dense<0.000000e+00> : vector<8x8xf32>
    %55 = tpu.matmul %54, %40, %cst_20 {dimension_numbers = #tpu.dot_dimension_numbers<[1], [0], [0], [1], [0, 0, 1, 1], [], []>} : vector<8x8xbf16>, vector<8x8xbf16>, vector<8x8xf32> -> vector<8x8xf32>
    %c0_21 = arith.constant 0 : index
    %c8 = arith.constant 8 : index
    %56 = vector.load %arg26[%c0_21, %c8] : memref<16x32xf32, #tpu.memory_space<vmem>>, vector<8x8xf32>
    tpu.vector_store %arg26[%c0_21, %c8], %55 {strides = array<i32>} : memref<16x32xf32, #tpu.memory_space<vmem>>, vector<8x8xf32>,
    %57 = vector.extract_strided_slice %10 {offsets = [0, 16], sizes = [8, 8], strides = [1, 1]} : vector<16x32xf32> to vector<8x8xf32>
    %58 = arith.truncf %57 : vector<8x8xf32> to vector<8x8xbf16>
    %59 = vector.extract_strided_slice %11 {offsets = [0, 16], sizes = [8, 8], strides = [1, 1]} : vector<16x32xf32> to vector<8x8xf32>
    %60 = arith.truncf %59 : vector<8x8xf32> to vector<8x8xbf16>
    %61 = vector.extract_strided_slice %12 {offsets = [0, 16], sizes = [8, 8], strides = [1, 1]} : vector<16x32xf32> to vector<8x8xf32>
    %62 = arith.truncf %61 : vector<8x8xf32> to vector<8x8xbf16>
    %cst_22 = arith.constant dense<0.000000e+00> : vector<8x8xf32>
    %63 = tpu.matmul %58, %60, %cst_22 {dimension_numbers = #tpu.dot_dimension_numbers<[1], [1], [0], [0], [0, 0, 1, 0], [], []>} : vector<8x8xbf16>, vector<8x8xbf16>, vector<8x8xf32> -> vector<8x8xf32>
    %cst_23 = arith.constant 0.353553385 : f32
    %64 = vector.broadcast %cst_23 : f32 to vector<8x8xf32>
    %65 = arith.mulf %63, %64 : vector<8x8xf32>
    %cst_24 = arith.constant dense<0xFF800000> : vector<8xf32>
    %66 = vector.multi_reduction <maximumf>, %65, %cst_24 [1] : vector<8x8xf32> to vector<8xf32>
    %67 = vector.shape_cast %66 : vector<8xf32> to vector<8x1xf32>
    %68 = vector.broadcast %67 : vector<8x1xf32> to vector<8x8xf32>
    %69 = arith.subf %65, %68 : vector<8x8xf32>
    %70 = math.exp %69 : vector<8x8xf32>
    %cst_25 = arith.constant dense<0.000000e+00> : vector<8xf32>
    %71 = vector.multi_reduction <add>, %70, %cst_25 [1] : vector<8x8xf32> to vector<8xf32>
    %72 = vector.shape_cast %71 : vector<8xf32> to vector<8x1xf32>
    %73 = tpu.reciprocal %72 {approx = true} : vector<8x1xf32> -> vector<8x1xf32>
    %74 = vector.broadcast %73 : vector<8x1xf32> to vector<8x8xf32>
    %75 = arith.mulf %70, %74 : vector<8x8xf32>
    %76 = arith.truncf %75 : vector<8x8xf32> to vector<8x8xbf16>
    %cst_26 = arith.constant dense<0.000000e+00> : vector<8x8xf32>
    %77 = tpu.matmul %76, %62, %cst_26 {dimension_numbers = #tpu.dot_dimension_numbers<[1], [0], [0], [1], [0, 0, 1, 1], [], []>} : vector<8x8xbf16>, vector<8x8xbf16>, vector<8x8xf32> -> vector<8x8xf32>
    %c0_27 = arith.constant 0 : index
    %c16 = arith.constant 16 : index
    %78 = vector.load %arg26[%c0_27, %c16] : memref<16x32xf32, #tpu.memory_space<vmem>>, vector<8x8xf32>
    tpu.vector_store %arg26[%c0_27, %c16], %77 {strides = array<i32>} : memref<16x32xf32, #tpu.memory_space<vmem>>, vector<8x8xf32>,
    %79 = vector.extract_strided_slice %10 {offsets = [0, 24], sizes = [8, 8], strides = [1, 1]} : vector<16x32xf32> to vector<8x8xf32>
    %80 = arith.truncf %79 : vector<8x8xf32> to vector<8x8xbf16>
    %81 = vector.extract_strided_slice %11 {offsets = [0, 24], sizes = [8, 8], strides = [1, 1]} : vector<16x32xf32> to vector<8x8xf32>
    %82 = arith.truncf %81 : vector<8x8xf32> to vector<8x8xbf16>
    %83 = vector.extract_strided_slice %12 {offsets = [0, 24], sizes = [8, 8], strides = [1, 1]} : vector<16x32xf32> to vector<8x8xf32>
    %84 = arith.truncf %83 : vector<8x8xf32> to vector<8x8xbf16>
    %cst_28 = arith.constant dense<0.000000e+00> : vector<8x8xf32>
    %85 = tpu.matmul %80, %82, %cst_28 {dimension_numbers = #tpu.dot_dimension_numbers<[1], [1], [0], [0], [0, 0, 1, 0], [], []>} : vector<8x8xbf16>, vector<8x8xbf16>, vector<8x8xf32> -> vector<8x8xf32>
    %cst_29 = arith.constant 0.353553385 : f32
    %86 = vector.broadcast %cst_29 : f32 to vector<8x8xf32>
    %87 = arith.mulf %85, %86 : vector<8x8xf32>
    %cst_30 = arith.constant dense<0xFF800000> : vector<8xf32>
    %88 = vector.multi_reduction <maximumf>, %87, %cst_30 [1] : vector<8x8xf32> to vector<8xf32>
    %89 = vector.shape_cast %88 : vector<8xf32> to vector<8x1xf32>
    %90 = vector.broadcast %89 : vector<8x1xf32> to vector<8x8xf32>
    %91 = arith.subf %87, %90 : vector<8x8xf32>
    %92 = math.exp %91 : vector<8x8xf32>
    %cst_31 = arith.constant dense<0.000000e+00> : vector<8xf32>
    %93 = vector.multi_reduction <add>, %92, %cst_31 [1] : vector<8x8xf32> to vector<8xf32>
    %94 = vector.shape_cast %93 : vector<8xf32> to vector<8x1xf32>
    %95 = tpu.reciprocal %94 {approx = true} : vector<8x1xf32> -> vector<8x1xf32>
    %96 = vector.broadcast %95 : vector<8x1xf32> to vector<8x8xf32>
    %97 = arith.mulf %92, %96 : vector<8x8xf32>
    %98 = arith.truncf %97 : vector<8x8xf32> to vector<8x8xbf16>
    %cst_32 = arith.constant dense<0.000000e+00> : vector<8x8xf32>
    %99 = tpu.matmul %98, %84, %cst_32 {dimension_numbers = #tpu.dot_dimension_numbers<[1], [0], [0], [1], [0, 0, 1, 1], [], []>} : vector<8x8xbf16>, vector<8x8xbf16>, vector<8x8xf32> -> vector<8x8xf32>
    %c0_33 = arith.constant 0 : index
    %c24 = arith.constant 24 : index
    %100 = vector.load %arg26[%c0_33, %c24] : memref<16x32xf32, #tpu.memory_space<vmem>>, vector<8x8xf32>
    tpu.vector_store %arg26[%c0_33, %c24], %99 {strides = array<i32>} : memref<16x32xf32, #tpu.memory_space<vmem>>, vector<8x8xf32>,
    %101 = vector.extract_strided_slice %10 {offsets = [8, 0], sizes = [8, 8], strides = [1, 1]} : vector<16x32xf32> to vector<8x8xf32>
    %102 = arith.truncf %101 : vector<8x8xf32> to vector<8x8xbf16>
    %103 = vector.extract_strided_slice %11 {offsets = [8, 0], sizes = [8, 8], strides = [1, 1]} : vector<16x32xf32> to vector<8x8xf32>
    %104 = arith.truncf %103 : vector<8x8xf32> to vector<8x8xbf16>
    %105 = vector.extract_strided_slice %12 {offsets = [8, 0], sizes = [8, 8], strides = [1, 1]} : vector<16x32xf32> to vector<8x8xf32>
    %106 = arith.truncf %105 : vector<8x8xf32> to vector<8x8xbf16>
    %cst_34 = arith.constant dense<0.000000e+00> : vector<8x8xf32>
    %107 = tpu.matmul %102, %104, %cst_34 {dimension_numbers = #tpu.dot_dimension_numbers<[1], [1], [0], [0], [0, 0, 1, 0], [], []>} : vector<8x8xbf16>, vector<8x8xbf16>, vector<8x8xf32> -> vector<8x8xf32>
    %cst_35 = arith.constant 0.353553385 : f32
    %108 = vector.broadcast %cst_35 : f32 to vector<8x8xf32>
    %109 = arith.mulf %107, %108 : vector<8x8xf32>
    %cst_36 = arith.constant dense<0xFF800000> : vector<8xf32>
    %110 = vector.multi_reduction <maximumf>, %109, %cst_36 [1] : vector<8x8xf32> to vector<8xf32>
    %111 = vector.shape_cast %110 : vector<8xf32> to vector<8x1xf32>
    %112 = vector.broadcast %111 : vector<8x1xf32> to vector<8x8xf32>
    %113 = arith.subf %109, %112 : vector<8x8xf32>
    %114 = math.exp %113 : vector<8x8xf32>
    %cst_37 = arith.constant dense<0.000000e+00> : vector<8xf32>
    %115 = vector.multi_reduction <add>, %114, %cst_37 [1] : vector<8x8xf32> to vector<8xf32>
    %116 = vector.shape_cast %115 : vector<8xf32> to vector<8x1xf32>
    %117 = tpu.reciprocal %116 {approx = true} : vector<8x1xf32> -> vector<8x1xf32>
    %118 = vector.broadcast %117 : vector<8x1xf32> to vector<8x8xf32>
    %119 = arith.mulf %114, %118 : vector<8x8xf32>
    %120 = arith.truncf %119 : vector<8x8xf32> to vector<8x8xbf16>
    %cst_38 = arith.constant dense<0.000000e+00> : vector<8x8xf32>
    %121 = tpu.matmul %120, %106, %cst_38 {dimension_numbers = #tpu.dot_dimension_numbers<[1], [0], [0], [1], [0, 0, 1, 1], [], []>} : vector<8x8xbf16>, vector<8x8xbf16>, vector<8x8xf32> -> vector<8x8xf32>
    %c8_39 = arith.constant 8 : index
    %c0_40 = arith.constant 0 : index
    %122 = vector.load %arg26[%c8_39, %c0_40] : memref<16x32xf32, #tpu.memory_space<vmem>>, vector<8x8xf32>
    tpu.vector_store %arg26[%c8_39, %c0_40], %121 {strides = array<i32>} : memref<16x32xf32, #tpu.memory_space<vmem>>, vector<8x8xf32>,
    %123 = vector.extract_strided_slice %10 {offsets = [8, 8], sizes = [8, 8], strides = [1, 1]} : vector<16x32xf32> to vector<8x8xf32>
    %124 = arith.truncf %123 : vector<8x8xf32> to vector<8x8xbf16>
    %125 = vector.extract_strided_slice %11 {offsets = [8, 8], sizes = [8, 8], strides = [1, 1]} : vector<16x32xf32> to vector<8x8xf32>
    %126 = arith.truncf %125 : vector<8x8xf32> to vector<8x8xbf16>
    %127 = vector.extract_strided_slice %12 {offsets = [8, 8], sizes = [8, 8], strides = [1, 1]} : vector<16x32xf32> to vector<8x8xf32>
    %128 = arith.truncf %127 : vector<8x8xf32> to vector<8x8xbf16>
    %cst_41 = arith.constant dense<0.000000e+00> : vector<8x8xf32>
    %129 = tpu.matmul %124, %126, %cst_41 {dimension_numbers = #tpu.dot_dimension_numbers<[1], [1], [0], [0], [0, 0, 1, 0], [], []>} : vector<8x8xbf16>, vector<8x8xbf16>, vector<8x8xf32> -> vector<8x8xf32>
    %cst_42 = arith.constant 0.353553385 : f32
    %130 = vector.broadcast %cst_42 : f32 to vector<8x8xf32>
    %131 = arith.mulf %129, %130 : vector<8x8xf32>
    %cst_43 = arith.constant dense<0xFF800000> : vector<8xf32>
    %132 = vector.multi_reduction <maximumf>, %131, %cst_43 [1] : vector<8x8xf32> to vector<8xf32>
    %133 = vector.shape_cast %132 : vector<8xf32> to vector<8x1xf32>
    %134 = vector.broadcast %133 : vector<8x1xf32> to vector<8x8xf32>
    %135 = arith.subf %131, %134 : vector<8x8xf32>
    %136 = math.exp %135 : vector<8x8xf32>
    %cst_44 = arith.constant dense<0.000000e+00> : vector<8xf32>
    %137 = vector.multi_reduction <add>, %136, %cst_44 [1] : vector<8x8xf32> to vector<8xf32>
    %138 = vector.shape_cast %137 : vector<8xf32> to vector<8x1xf32>
    %139 = tpu.reciprocal %138 {approx = true} : vector<8x1xf32> -> vector<8x1xf32>
    %140 = vector.broadcast %139 : vector<8x1xf32> to vector<8x8xf32>
    %141 = arith.mulf %136, %140 : vector<8x8xf32>
    %142 = arith.truncf %141 : vector<8x8xf32> to vector<8x8xbf16>
    %cst_45 = arith.constant dense<0.000000e+00> : vector<8x8xf32>
    %143 = tpu.matmul %142, %128, %cst_45 {dimension_numbers = #tpu.dot_dimension_numbers<[1], [0], [0], [1], [0, 0, 1, 1], [], []>} : vector<8x8xbf16>, vector<8x8xbf16>, vector<8x8xf32> -> vector<8x8xf32>
    %c8_46 = arith.constant 8 : index
    %c8_47 = arith.constant 8 : index
    %144 = vector.load %arg26[%c8_46, %c8_47] : memref<16x32xf32, #tpu.memory_space<vmem>>, vector<8x8xf32>
    tpu.vector_store %arg26[%c8_46, %c8_47], %143 {strides = array<i32>} : memref<16x32xf32, #tpu.memory_space<vmem>>, vector<8x8xf32>,
    %145 = vector.extract_strided_slice %10 {offsets = [8, 16], sizes = [8, 8], strides = [1, 1]} : vector<16x32xf32> to vector<8x8xf32>
    %146 = arith.truncf %145 : vector<8x8xf32> to vector<8x8xbf16>
    %147 = vector.extract_strided_slice %11 {offsets = [8, 16], sizes = [8, 8], strides = [1, 1]} : vector<16x32xf32> to vector<8x8xf32>
    %148 = arith.truncf %147 : vector<8x8xf32> to vector<8x8xbf16>
    %149 = vector.extract_strided_slice %12 {offsets = [8, 16], sizes = [8, 8], strides = [1, 1]} : vector<16x32xf32> to vector<8x8xf32>
    %150 = arith.truncf %149 : vector<8x8xf32> to vector<8x8xbf16>
    %cst_48 = arith.constant dense<0.000000e+00> : vector<8x8xf32>
    %151 = tpu.matmul %146, %148, %cst_48 {dimension_numbers = #tpu.dot_dimension_numbers<[1], [1], [0], [0], [0, 0, 1, 0], [], []>} : vector<8x8xbf16>, vector<8x8xbf16>, vector<8x8xf32> -> vector<8x8xf32>
    %cst_49 = arith.constant 0.353553385 : f32
    %152 = vector.broadcast %cst_49 : f32 to vector<8x8xf32>
    %153 = arith.mulf %151, %152 : vector<8x8xf32>
    %cst_50 = arith.constant dense<0xFF800000> : vector<8xf32>
    %154 = vector.multi_reduction <maximumf>, %153, %cst_50 [1] : vector<8x8xf32> to vector<8xf32>
    %155 = vector.shape_cast %154 : vector<8xf32> to vector<8x1xf32>
    %156 = vector.broadcast %155 : vector<8x1xf32> to vector<8x8xf32>
    %157 = arith.subf %153, %156 : vector<8x8xf32>
    %158 = math.exp %157 : vector<8x8xf32>
    %cst_51 = arith.constant dense<0.000000e+00> : vector<8xf32>
    %159 = vector.multi_reduction <add>, %158, %cst_51 [1] : vector<8x8xf32> to vector<8xf32>
    %160 = vector.shape_cast %159 : vector<8xf32> to vector<8x1xf32>
    %161 = tpu.reciprocal %160 {approx = true} : vector<8x1xf32> -> vector<8x1xf32>
    %162 = vector.broadcast %161 : vector<8x1xf32> to vector<8x8xf32>
    %163 = arith.mulf %158, %162 : vector<8x8xf32>
    %164 = arith.truncf %163 : vector<8x8xf32> to vector<8x8xbf16>
    %cst_52 = arith.constant dense<0.000000e+00> : vector<8x8xf32>
    %165 = tpu.matmul %164, %150, %cst_52 {dimension_numbers = #tpu.dot_dimension_numbers<[1], [0], [0], [1], [0, 0, 1, 1], [], []>} : vector<8x8xbf16>, vector<8x8xbf16>, vector<8x8xf32> -> vector<8x8xf32>
    %c8_53 = arith.constant 8 : index
    %c16_54 = arith.constant 16 : index
    %166 = vector.load %arg26[%c8_53, %c16_54] : memref<16x32xf32, #tpu.memory_space<vmem>>, vector<8x8xf32>
    tpu.vector_store %arg26[%c8_53, %c16_54], %165 {strides = array<i32>} : memref<16x32xf32, #tpu.memory_space<vmem>>, vector<8x8xf32>,
    %167 = vector.extract_strided_slice %10 {offsets = [8, 24], sizes = [8, 8], strides = [1, 1]} : vector<16x32xf32> to vector<8x8xf32>
    %168 = arith.truncf %167 : vector<8x8xf32> to vector<8x8xbf16>
    %169 = vector.extract_strided_slice %11 {offsets = [8, 24], sizes = [8, 8], strides = [1, 1]} : vector<16x32xf32> to vector<8x8xf32>
    %170 = arith.truncf %169 : vector<8x8xf32> to vector<8x8xbf16>
    %171 = vector.extract_strided_slice %12 {offsets = [8, 24], sizes = [8, 8], strides = [1, 1]} : vector<16x32xf32> to vector<8x8xf32>
    %172 = arith.truncf %171 : vector<8x8xf32> to vector<8x8xbf16>
    %cst_55 = arith.constant dense<0.000000e+00> : vector<8x8xf32>
    %173 = tpu.matmul %168, %170, %cst_55 {dimension_numbers = #tpu.dot_dimension_numbers<[1], [1], [0], [0], [0, 0, 1, 0], [], []>} : vector<8x8xbf16>, vector<8x8xbf16>, vector<8x8xf32> -> vector<8x8xf32>
    %cst_56 = arith.constant 0.353553385 : f32
    %174 = vector.broadcast %cst_56 : f32 to vector<8x8xf32>
    %175 = arith.mulf %173, %174 : vector<8x8xf32>
    %cst_57 = arith.constant dense<0xFF800000> : vector<8xf32>
    %176 = vector.multi_reduction <maximumf>, %175, %cst_57 [1] : vector<8x8xf32> to vector<8xf32>
    %177 = vector.shape_cast %176 : vector<8xf32> to vector<8x1xf32>
    %178 = vector.broadcast %177 : vector<8x1xf32> to vector<8x8xf32>
    %179 = arith.subf %175, %178 : vector<8x8xf32>
    %180 = math.exp %179 : vector<8x8xf32>
    %cst_58 = arith.constant dense<0.000000e+00> : vector<8xf32>
    %181 = vector.multi_reduction <add>, %180, %cst_58 [1] : vector<8x8xf32> to vector<8xf32>
    %182 = vector.shape_cast %181 : vector<8xf32> to vector<8x1xf32>
    %183 = tpu.reciprocal %182 {approx = true} : vector<8x1xf32> -> vector<8x1xf32>
    %184 = vector.broadcast %183 : vector<8x1xf32> to vector<8x8xf32>
    %185 = arith.mulf %180, %184 : vector<8x8xf32>
    %186 = arith.truncf %185 : vector<8x8xf32> to vector<8x8xbf16>
    %cst_59 = arith.constant dense<0.000000e+00> : vector<8x8xf32>
    %187 = tpu.matmul %186, %172, %cst_59 {dimension_numbers = #tpu.dot_dimension_numbers<[1], [0], [0], [1], [0, 0, 1, 1], [], []>} : vector<8x8xbf16>, vector<8x8xbf16>, vector<8x8xf32> -> vector<8x8xf32>
    %c8_60 = arith.constant 8 : index
    %c24_61 = arith.constant 24 : index
    %188 = vector.load %arg26[%c8_60, %c24_61] : memref<16x32xf32, #tpu.memory_space<vmem>>, vector<8x8xf32>
    tpu.vector_store %arg26[%c8_60, %c24_61], %187 {strides = array<i32>} : memref<16x32xf32, #tpu.memory_space<vmem>>, vector<8x8xf32>,
    %c0_62 = arith.constant 0 : index
    %c0_63 = arith.constant 0 : index
    %189 = vector.load %arg26[%c0_62, %c0_63] : memref<16x32xf32, #tpu.memory_space<vmem>>, vector<16x32xf32>
    %190 = arith.truncf %189 : vector<16x32xf32> to vector<16x32xbf16>
    %c0_64 = arith.constant 0 : index
    %c0_65 = arith.constant 0 : index
    %c0_66 = arith.constant 0 : index
    %191 = vector.load %arg5[%c0_64, %c0_65, %c0_66] : memref<2x32x32xbf16, #tpu.memory_space<vmem>>, vector<1x32x32xbf16>
    %192 = vector.shape_cast %191 : vector<1x32x32xbf16> to vector<32x32xbf16>
    %cst_67 = arith.constant dense<0.000000e+00> : vector<16x32xf32>
    %193 = tpu.matmul %190, %192, %cst_67 {dimension_numbers = #tpu.dot_dimension_numbers<[1], [0], [0], [1], [0, 0, 1, 1], [], []>} : vector<16x32xbf16>, vector<32x32xbf16>, vector<16x32xf32> -> vector<16x32xf32>
    %c0_68 = arith.constant 0 : index
    %c0_69 = arith.constant 0 : index
    %c0_70 = arith.constant 0 : index
    %194 = vector.load %arg6[%c0_68, %c0_69, %c0_70] : memref<2x1x32xf32, #tpu.memory_space<vmem>>, vector<1x1x32xf32>
    %195 = vector.shape_cast %194 : vector<1x1x32xf32> to vector<1x32xf32>
    %196 = vector.broadcast %195 : vector<1x32xf32> to vector<16x32xf32>
    %197 = arith.addf %193, %196 : vector<16x32xf32>
    %198 = arith.addf %0, %197 : vector<16x32xf32>
    %c0_71 = arith.constant 0 : index
    %c0_72 = arith.constant 0 : index
    %c0_73 = arith.constant 0 : index
    %199 = vector.load %arg13[%c0_71, %c0_72, %c0_73] : memref<2x1x32xf32, #tpu.memory_space<vmem>>, vector<1x1x32xf32>
    %200 = vector.shape_cast %199 : vector<1x1x32xf32> to vector<1x32xf32>
    %c0_74 = arith.constant 0 : index
    %c0_75 = arith.constant 0 : index
    %c0_76 = arith.constant 0 : index
    %201 = vector.load %arg14[%c0_74, %c0_75, %c0_76] : memref<2x1x32xf32, #tpu.memory_space<vmem>>, vector<1x1x32xf32>
    %202 = vector.shape_cast %201 : vector<1x1x32xf32> to vector<1x32xf32>
    %cst_77 = arith.constant dense<0.000000e+00> : vector<16xf32>
    %203 = vector.multi_reduction <add>, %198, %cst_77 [1] : vector<16x32xf32> to vector<16xf32>
    %204 = vector.shape_cast %203 : vector<16xf32> to vector<16x1xf32>
    %cst_78 = arith.constant 3.200000e+01 : f32
    %205 = vector.broadcast %cst_78 : f32 to vector<16x1xf32>
    %206 = arith.divf %204, %205 : vector<16x1xf32>
    %207 = arith.mulf %198, %198 : vector<16x32xf32>
    %cst_79 = arith.constant dense<0.000000e+00> : vector<16xf32>
    %208 = vector.multi_reduction <add>, %207, %cst_79 [1] : vector<16x32xf32> to vector<16xf32>
    %209 = vector.shape_cast %208 : vector<16xf32> to vector<16x1xf32>
    %cst_80 = arith.constant 3.200000e+01 : f32
    %210 = vector.broadcast %cst_80 : f32 to vector<16x1xf32>
    %211 = arith.divf %209, %210 : vector<16x1xf32>
    %212 = arith.mulf %206, %206 : vector<16x1xf32>
    %213 = arith.subf %211, %212 : vector<16x1xf32>
    %214 = vector.broadcast %206 : vector<16x1xf32> to vector<16x32xf32>
    %215 = arith.subf %198, %214 : vector<16x32xf32>
    %cst_81 = arith.constant 9.99999974E-6 : f32
    %216 = vector.broadcast %cst_81 : f32 to vector<16x1xf32>
    %217 = arith.addf %213, %216 : vector<16x1xf32>
    %218 = math.rsqrt %217 : vector<16x1xf32>
    %219 = vector.broadcast %218 : vector<16x1xf32> to vector<16x32xf32>
    %220 = arith.mulf %215, %219 : vector<16x32xf32>
    %221 = vector.broadcast %200 : vector<1x32xf32> to vector<16x32xf32>
    %222 = arith.mulf %220, %221 : vector<16x32xf32>
    %223 = vector.broadcast %202 : vector<1x32xf32> to vector<16x32xf32>
    %224 = arith.addf %222, %223 : vector<16x32xf32>
    %225 = arith.truncf %224 : vector<16x32xf32> to vector<16x32xbf16>
    %c0_82 = arith.constant 0 : index
    %c0_83 = arith.constant 0 : index
    %c0_84 = arith.constant 0 : index
    %226 = vector.load %arg7[%c0_82, %c0_83, %c0_84] : memref<2x32x32xbf16, #tpu.memory_space<vmem>>, vector<1x32x32xbf16>
    %227 = vector.shape_cast %226 : vector<1x32x32xbf16> to vector<32x32xbf16>
    %cst_85 = arith.constant dense<0.000000e+00> : vector<16x32xf32>
    %228 = tpu.matmul %225, %227, %cst_85 {dimension_numbers = #tpu.dot_dimension_numbers<[1], [0], [0], [1], [0, 0, 1, 1], [], []>} : vector<16x32xbf16>, vector<32x32xbf16>, vector<16x32xf32> -> vector<16x32xf32>
    %c0_86 = arith.constant 0 : index
    %c0_87 = arith.constant 0 : index
    %c0_88 = arith.constant 0 : index
    %229 = vector.load %arg8[%c0_86, %c0_87, %c0_88] : memref<2x1x32xf32, #tpu.memory_space<vmem>>, vector<1x1x32xf32>
    %230 = vector.shape_cast %229 : vector<1x1x32xf32> to vector<1x32xf32>
    %231 = vector.broadcast %230 : vector<1x32xf32> to vector<16x32xf32>
    %232 = arith.addf %228, %231 : vector<16x32xf32>
    %233 = arith.truncf %1 : vector<16x32xf32> to vector<16x32xbf16>
    %c0_89 = arith.constant 0 : index
    %c0_90 = arith.constant 0 : index
    %c0_91 = arith.constant 0 : index
    %234 = vector.load %arg9[%c0_89, %c0_90, %c0_91] : memref<2x32x64xbf16, #tpu.memory_space<vmem>>, vector<1x32x64xbf16>
    %235 = vector.shape_cast %234 : vector<1x32x64xbf16> to vector<32x64xbf16>
    %cst_92 = arith.constant dense<0.000000e+00> : vector<16x64xf32>
    %236 = tpu.matmul %233, %235, %cst_92 {dimension_numbers = #tpu.dot_dimension_numbers<[1], [0], [0], [1], [0, 0, 1, 1], [], []>} : vector<16x32xbf16>, vector<32x64xbf16>, vector<16x64xf32> -> vector<16x64xf32>
    %c0_93 = arith.constant 0 : index
    %c0_94 = arith.constant 0 : index
    %c0_95 = arith.constant 0 : index
    %237 = vector.load %arg10[%c0_93, %c0_94, %c0_95] : memref<2x1x64xf32, #tpu.memory_space<vmem>>, vector<1x1x64xf32>
    %238 = vector.shape_cast %237 : vector<1x1x64xf32> to vector<1x64xf32>
    %239 = vector.broadcast %238 : vector<1x64xf32> to vector<16x64xf32>
    %240 = arith.addf %236, %239 : vector<16x64xf32>
    %241 = vector.extract_strided_slice %240 {offsets = [0, 0], sizes = [16, 32], strides = [1, 1]} : vector<16x64xf32> to vector<16x32xf32>
    %242 = vector.extract_strided_slice %240 {offsets = [0, 32], sizes = [16, 32], strides = [1, 1]} : vector<16x64xf32> to vector<16x32xf32>
    %243 = vector.extract_strided_slice %232 {offsets = [0, 0], sizes = [8, 8], strides = [1, 1]} : vector<16x32xf32> to vector<8x8xf32>
    %244 = arith.truncf %243 : vector<8x8xf32> to vector<8x8xbf16>
    %245 = vector.extract_strided_slice %241 {offsets = [0, 0], sizes = [8, 8], strides = [1, 1]} : vector<16x32xf32> to vector<8x8xf32>
    %246 = arith.truncf %245 : vector<8x8xf32> to vector<8x8xbf16>
    %247 = vector.extract_strided_slice %242 {offsets = [0, 0], sizes = [8, 8], strides = [1, 1]} : vector<16x32xf32> to vector<8x8xf32>
    %248 = arith.truncf %247 : vector<8x8xf32> to vector<8x8xbf16>
    %cst_96 = arith.constant dense<0.000000e+00> : vector<8x8xf32>
    %249 = tpu.matmul %244, %246, %cst_96 {dimension_numbers = #tpu.dot_dimension_numbers<[1], [1], [0], [0], [0, 0, 1, 0], [], []>} : vector<8x8xbf16>, vector<8x8xbf16>, vector<8x8xf32> -> vector<8x8xf32>
    %cst_97 = arith.constant 0.353553385 : f32
    %250 = vector.broadcast %cst_97 : f32 to vector<8x8xf32>
    %251 = arith.mulf %249, %250 : vector<8x8xf32>
    %cst_98 = arith.constant dense<0xFF800000> : vector<8xf32>
    %252 = vector.multi_reduction <maximumf>, %251, %cst_98 [1] : vector<8x8xf32> to vector<8xf32>
    %253 = vector.shape_cast %252 : vector<8xf32> to vector<8x1xf32>
    %254 = vector.broadcast %253 : vector<8x1xf32> to vector<8x8xf32>
    %255 = arith.subf %251, %254 : vector<8x8xf32>
    %256 = math.exp %255 : vector<8x8xf32>
    %cst_99 = arith.constant dense<0.000000e+00> : vector<8xf32>
    %257 = vector.multi_reduction <add>, %256, %cst_99 [1] : vector<8x8xf32> to vector<8xf32>
    %258 = vector.shape_cast %257 : vector<8xf32> to vector<8x1xf32>
    %259 = tpu.reciprocal %258 {approx = true} : vector<8x1xf32> -> vector<8x1xf32>
    %260 = vector.broadcast %259 : vector<8x1xf32> to vector<8x8xf32>
    %261 = arith.mulf %256, %260 : vector<8x8xf32>
    %262 = arith.truncf %261 : vector<8x8xf32> to vector<8x8xbf16>
    %cst_100 = arith.constant dense<0.000000e+00> : vector<8x8xf32>
    %263 = tpu.matmul %262, %248, %cst_100 {dimension_numbers = #tpu.dot_dimension_numbers<[1], [0], [0], [1], [0, 0, 1, 1], [], []>} : vector<8x8xbf16>, vector<8x8xbf16>, vector<8x8xf32> -> vector<8x8xf32>
    %c0_101 = arith.constant 0 : index
    %c0_102 = arith.constant 0 : index
    %264 = vector.load %arg26[%c0_101, %c0_102] : memref<16x32xf32, #tpu.memory_space<vmem>>, vector<8x8xf32>
    tpu.vector_store %arg26[%c0_101, %c0_102], %263 {strides = array<i32>} : memref<16x32xf32, #tpu.memory_space<vmem>>, vector<8x8xf32>,
    %265 = vector.extract_strided_slice %232 {offsets = [0, 8], sizes = [8, 8], strides = [1, 1]} : vector<16x32xf32> to vector<8x8xf32>
    %266 = arith.truncf %265 : vector<8x8xf32> to vector<8x8xbf16>
    %267 = vector.extract_strided_slice %241 {offsets = [0, 8], sizes = [8, 8], strides = [1, 1]} : vector<16x32xf32> to vector<8x8xf32>
    %268 = arith.truncf %267 : vector<8x8xf32> to vector<8x8xbf16>
    %269 = vector.extract_strided_slice %242 {offsets = [0, 8], sizes = [8, 8], strides = [1, 1]} : vector<16x32xf32> to vector<8x8xf32>
    %270 = arith.truncf %269 : vector<8x8xf32> to vector<8x8xbf16>
    %cst_103 = arith.constant dense<0.000000e+00> : vector<8x8xf32>
    %271 = tpu.matmul %266, %268, %cst_103 {dimension_numbers = #tpu.dot_dimension_numbers<[1], [1], [0], [0], [0, 0, 1, 0], [], []>} : vector<8x8xbf16>, vector<8x8xbf16>, vector<8x8xf32> -> vector<8x8xf32>
    %cst_104 = arith.constant 0.353553385 : f32
    %272 = vector.broadcast %cst_104 : f32 to vector<8x8xf32>
    %273 = arith.mulf %271, %272 : vector<8x8xf32>
    %cst_105 = arith.constant dense<0xFF800000> : vector<8xf32>
    %274 = vector.multi_reduction <maximumf>, %273, %cst_105 [1] : vector<8x8xf32> to vector<8xf32>
    %275 = vector.shape_cast %274 : vector<8xf32> to vector<8x1xf32>
    %276 = vector.broadcast %275 : vector<8x1xf32> to vector<8x8xf32>
    %277 = arith.subf %273, %276 : vector<8x8xf32>
    %278 = math.exp %277 : vector<8x8xf32>
    %cst_106 = arith.constant dense<0.000000e+00> : vector<8xf32>
    %279 = vector.multi_reduction <add>, %278, %cst_106 [1] : vector<8x8xf32> to vector<8xf32>
    %280 = vector.shape_cast %279 : vector<8xf32> to vector<8x1xf32>
    %281 = tpu.reciprocal %280 {approx = true} : vector<8x1xf32> -> vector<8x1xf32>
    %282 = vector.broadcast %281 : vector<8x1xf32> to vector<8x8xf32>
    %283 = arith.mulf %278, %282 : vector<8x8xf32>
    %284 = arith.truncf %283 : vector<8x8xf32> to vector<8x8xbf16>
    %cst_107 = arith.constant dense<0.000000e+00> : vector<8x8xf32>
    %285 = tpu.matmul %284, %270, %cst_107 {dimension_numbers = #tpu.dot_dimension_numbers<[1], [0], [0], [1], [0, 0, 1, 1], [], []>} : vector<8x8xbf16>, vector<8x8xbf16>, vector<8x8xf32> -> vector<8x8xf32>
    %c0_108 = arith.constant 0 : index
    %c8_109 = arith.constant 8 : index
    %286 = vector.load %arg26[%c0_108, %c8_109] : memref<16x32xf32, #tpu.memory_space<vmem>>, vector<8x8xf32>
    tpu.vector_store %arg26[%c0_108, %c8_109], %285 {strides = array<i32>} : memref<16x32xf32, #tpu.memory_space<vmem>>, vector<8x8xf32>,
    %287 = vector.extract_strided_slice %232 {offsets = [0, 16], sizes = [8, 8], strides = [1, 1]} : vector<16x32xf32> to vector<8x8xf32>
    %288 = arith.truncf %287 : vector<8x8xf32> to vector<8x8xbf16>
    %289 = vector.extract_strided_slice %241 {offsets = [0, 16], sizes = [8, 8], strides = [1, 1]} : vector<16x32xf32> to vector<8x8xf32>
    %290 = arith.truncf %289 : vector<8x8xf32> to vector<8x8xbf16>
    %291 = vector.extract_strided_slice %242 {offsets = [0, 16], sizes = [8, 8], strides = [1, 1]} : vector<16x32xf32> to vector<8x8xf32>
    %292 = arith.truncf %291 : vector<8x8xf32> to vector<8x8xbf16>
    %cst_110 = arith.constant dense<0.000000e+00> : vector<8x8xf32>
    %293 = tpu.matmul %288, %290, %cst_110 {dimension_numbers = #tpu.dot_dimension_numbers<[1], [1], [0], [0], [0, 0, 1, 0], [], []>} : vector<8x8xbf16>, vector<8x8xbf16>, vector<8x8xf32> -> vector<8x8xf32>
    %cst_111 = arith.constant 0.353553385 : f32
    %294 = vector.broadcast %cst_111 : f32 to vector<8x8xf32>
    %295 = arith.mulf %293, %294 : vector<8x8xf32>
    %cst_112 = arith.constant dense<0xFF800000> : vector<8xf32>
    %296 = vector.multi_reduction <maximumf>, %295, %cst_112 [1] : vector<8x8xf32> to vector<8xf32>
    %297 = vector.shape_cast %296 : vector<8xf32> to vector<8x1xf32>
    %298 = vector.broadcast %297 : vector<8x1xf32> to vector<8x8xf32>
    %299 = arith.subf %295, %298 : vector<8x8xf32>
    %300 = math.exp %299 : vector<8x8xf32>
    %cst_113 = arith.constant dense<0.000000e+00> : vector<8xf32>
    %301 = vector.multi_reduction <add>, %300, %cst_113 [1] : vector<8x8xf32> to vector<8xf32>
    %302 = vector.shape_cast %301 : vector<8xf32> to vector<8x1xf32>
    %303 = tpu.reciprocal %302 {approx = true} : vector<8x1xf32> -> vector<8x1xf32>
    %304 = vector.broadcast %303 : vector<8x1xf32> to vector<8x8xf32>
    %305 = arith.mulf %300, %304 : vector<8x8xf32>
    %306 = arith.truncf %305 : vector<8x8xf32> to vector<8x8xbf16>
    %cst_114 = arith.constant dense<0.000000e+00> : vector<8x8xf32>
    %307 = tpu.matmul %306, %292, %cst_114 {dimension_numbers = #tpu.dot_dimension_numbers<[1], [0], [0], [1], [0, 0, 1, 1], [], []>} : vector<8x8xbf16>, vector<8x8xbf16>, vector<8x8xf32> -> vector<8x8xf32>
    %c0_115 = arith.constant 0 : index
    %c16_116 = arith.constant 16 : index
    %308 = vector.load %arg26[%c0_115, %c16_116] : memref<16x32xf32, #tpu.memory_space<vmem>>, vector<8x8xf32>
    tpu.vector_store %arg26[%c0_115, %c16_116], %307 {strides = array<i32>} : memref<16x32xf32, #tpu.memory_space<vmem>>, vector<8x8xf32>,
    %309 = vector.extract_strided_slice %232 {offsets = [0, 24], sizes = [8, 8], strides = [1, 1]} : vector<16x32xf32> to vector<8x8xf32>
    %310 = arith.truncf %309 : vector<8x8xf32> to vector<8x8xbf16>
    %311 = vector.extract_strided_slice %241 {offsets = [0, 24], sizes = [8, 8], strides = [1, 1]} : vector<16x32xf32> to vector<8x8xf32>
    %312 = arith.truncf %311 : vector<8x8xf32> to vector<8x8xbf16>
    %313 = vector.extract_strided_slice %242 {offsets = [0, 24], sizes = [8, 8], strides = [1, 1]} : vector<16x32xf32> to vector<8x8xf32>
    %314 = arith.truncf %313 : vector<8x8xf32> to vector<8x8xbf16>
    %cst_117 = arith.constant dense<0.000000e+00> : vector<8x8xf32>
    %315 = tpu.matmul %310, %312, %cst_117 {dimension_numbers = #tpu.dot_dimension_numbers<[1], [1], [0], [0], [0, 0, 1, 0], [], []>} : vector<8x8xbf16>, vector<8x8xbf16>, vector<8x8xf32> -> vector<8x8xf32>
    %cst_118 = arith.constant 0.353553385 : f32
    %316 = vector.broadcast %cst_118 : f32 to vector<8x8xf32>
    %317 = arith.mulf %315, %316 : vector<8x8xf32>
    %cst_119 = arith.constant dense<0xFF800000> : vector<8xf32>
    %318 = vector.multi_reduction <maximumf>, %317, %cst_119 [1] : vector<8x8xf32> to vector<8xf32>
    %319 = vector.shape_cast %318 : vector<8xf32> to vector<8x1xf32>
    %320 = vector.broadcast %319 : vector<8x1xf32> to vector<8x8xf32>
    %321 = arith.subf %317, %320 : vector<8x8xf32>
    %322 = math.exp %321 : vector<8x8xf32>
    %cst_120 = arith.constant dense<0.000000e+00> : vector<8xf32>
    %323 = vector.multi_reduction <add>, %322, %cst_120 [1] : vector<8x8xf32> to vector<8xf32>
    %324 = vector.shape_cast %323 : vector<8xf32> to vector<8x1xf32>
    %325 = tpu.reciprocal %324 {approx = true} : vector<8x1xf32> -> vector<8x1xf32>
    %326 = vector.broadcast %325 : vector<8x1xf32> to vector<8x8xf32>
    %327 = arith.mulf %322, %326 : vector<8x8xf32>
    %328 = arith.truncf %327 : vector<8x8xf32> to vector<8x8xbf16>
    %cst_121 = arith.constant dense<0.000000e+00> : vector<8x8xf32>
    %329 = tpu.matmul %328, %314, %cst_121 {dimension_numbers = #tpu.dot_dimension_numbers<[1], [0], [0], [1], [0, 0, 1, 1], [], []>} : vector<8x8xbf16>, vector<8x8xbf16>, vector<8x8xf32> -> vector<8x8xf32>
    %c0_122 = arith.constant 0 : index
    %c24_123 = arith.constant 24 : index
    %330 = vector.load %arg26[%c0_122, %c24_123] : memref<16x32xf32, #tpu.memory_space<vmem>>, vector<8x8xf32>
    tpu.vector_store %arg26[%c0_122, %c24_123], %329 {strides = array<i32>} : memref<16x32xf32, #tpu.memory_space<vmem>>, vector<8x8xf32>,
    %331 = vector.extract_strided_slice %232 {offsets = [8, 0], sizes = [8, 8], strides = [1, 1]} : vector<16x32xf32> to vector<8x8xf32>
    %332 = arith.truncf %331 : vector<8x8xf32> to vector<8x8xbf16>
    %333 = vector.extract_strided_slice %241 {offsets = [8, 0], sizes = [8, 8], strides = [1, 1]} : vector<16x32xf32> to vector<8x8xf32>
    %334 = arith.truncf %333 : vector<8x8xf32> to vector<8x8xbf16>
    %335 = vector.extract_strided_slice %242 {offsets = [8, 0], sizes = [8, 8], strides = [1, 1]} : vector<16x32xf32> to vector<8x8xf32>
    %336 = arith.truncf %335 : vector<8x8xf32> to vector<8x8xbf16>
    %cst_124 = arith.constant dense<0.000000e+00> : vector<8x8xf32>
    %337 = tpu.matmul %332, %334, %cst_124 {dimension_numbers = #tpu.dot_dimension_numbers<[1], [1], [0], [0], [0, 0, 1, 0], [], []>} : vector<8x8xbf16>, vector<8x8xbf16>, vector<8x8xf32> -> vector<8x8xf32>
    %cst_125 = arith.constant 0.353553385 : f32
    %338 = vector.broadcast %cst_125 : f32 to vector<8x8xf32>
    %339 = arith.mulf %337, %338 : vector<8x8xf32>
    %cst_126 = arith.constant dense<0xFF800000> : vector<8xf32>
    %340 = vector.multi_reduction <maximumf>, %339, %cst_126 [1] : vector<8x8xf32> to vector<8xf32>
    %341 = vector.shape_cast %340 : vector<8xf32> to vector<8x1xf32>
    %342 = vector.broadcast %341 : vector<8x1xf32> to vector<8x8xf32>
    %343 = arith.subf %339, %342 : vector<8x8xf32>
    %344 = math.exp %343 : vector<8x8xf32>
    %cst_127 = arith.constant dense<0.000000e+00> : vector<8xf32>
    %345 = vector.multi_reduction <add>, %344, %cst_127 [1] : vector<8x8xf32> to vector<8xf32>
    %346 = vector.shape_cast %345 : vector<8xf32> to vector<8x1xf32>
    %347 = tpu.reciprocal %346 {approx = true} : vector<8x1xf32> -> vector<8x1xf32>
    %348 = vector.broadcast %347 : vector<8x1xf32> to vector<8x8xf32>
    %349 = arith.mulf %344, %348 : vector<8x8xf32>
    %350 = arith.truncf %349 : vector<8x8xf32> to vector<8x8xbf16>
    %cst_128 = arith.constant dense<0.000000e+00> : vector<8x8xf32>
    %351 = tpu.matmul %350, %336, %cst_128 {dimension_numbers = #tpu.dot_dimension_numbers<[1], [0], [0], [1], [0, 0, 1, 1], [], []>} : vector<8x8xbf16>, vector<8x8xbf16>, vector<8x8xf32> -> vector<8x8xf32>
    %c8_129 = arith.constant 8 : index
    %c0_130 = arith.constant 0 : index
    %352 = vector.load %arg26[%c8_129, %c0_130] : memref<16x32xf32, #tpu.memory_space<vmem>>, vector<8x8xf32>
    tpu.vector_store %arg26[%c8_129, %c0_130], %351 {strides = array<i32>} : memref<16x32xf32, #tpu.memory_space<vmem>>, vector<8x8xf32>,
    %353 = vector.extract_strided_slice %232 {offsets = [8, 8], sizes = [8, 8], strides = [1, 1]} : vector<16x32xf32> to vector<8x8xf32>
    %354 = arith.truncf %353 : vector<8x8xf32> to vector<8x8xbf16>
    %355 = vector.extract_strided_slice %241 {offsets = [8, 8], sizes = [8, 8], strides = [1, 1]} : vector<16x32xf32> to vector<8x8xf32>
    %356 = arith.truncf %355 : vector<8x8xf32> to vector<8x8xbf16>
    %357 = vector.extract_strided_slice %242 {offsets = [8, 8], sizes = [8, 8], strides = [1, 1]} : vector<16x32xf32> to vector<8x8xf32>
    %358 = arith.truncf %357 : vector<8x8xf32> to vector<8x8xbf16>
    %cst_131 = arith.constant dense<0.000000e+00> : vector<8x8xf32>
    %359 = tpu.matmul %354, %356, %cst_131 {dimension_numbers = #tpu.dot_dimension_numbers<[1], [1], [0], [0], [0, 0, 1, 0], [], []>} : vector<8x8xbf16>, vector<8x8xbf16>, vector<8x8xf32> -> vector<8x8xf32>
    %cst_132 = arith.constant 0.353553385 : f32
    %360 = vector.broadcast %cst_132 : f32 to vector<8x8xf32>
    %361 = arith.mulf %359, %360 : vector<8x8xf32>
    %cst_133 = arith.constant dense<0xFF800000> : vector<8xf32>
    %362 = vector.multi_reduction <maximumf>, %361, %cst_133 [1] : vector<8x8xf32> to vector<8xf32>
    %363 = vector.shape_cast %362 : vector<8xf32> to vector<8x1xf32>
    %364 = vector.broadcast %363 : vector<8x1xf32> to vector<8x8xf32>
    %365 = arith.subf %361, %364 : vector<8x8xf32>
    %366 = math.exp %365 : vector<8x8xf32>
    %cst_134 = arith.constant dense<0.000000e+00> : vector<8xf32>
    %367 = vector.multi_reduction <add>, %366, %cst_134 [1] : vector<8x8xf32> to vector<8xf32>
    %368 = vector.shape_cast %367 : vector<8xf32> to vector<8x1xf32>
    %369 = tpu.reciprocal %368 {approx = true} : vector<8x1xf32> -> vector<8x1xf32>
    %370 = vector.broadcast %369 : vector<8x1xf32> to vector<8x8xf32>
    %371 = arith.mulf %366, %370 : vector<8x8xf32>
    %372 = arith.truncf %371 : vector<8x8xf32> to vector<8x8xbf16>
    %cst_135 = arith.constant dense<0.000000e+00> : vector<8x8xf32>
    %373 = tpu.matmul %372, %358, %cst_135 {dimension_numbers = #tpu.dot_dimension_numbers<[1], [0], [0], [1], [0, 0, 1, 1], [], []>} : vector<8x8xbf16>, vector<8x8xbf16>, vector<8x8xf32> -> vector<8x8xf32>
    %c8_136 = arith.constant 8 : index
    %c8_137 = arith.constant 8 : index
    %374 = vector.load %arg26[%c8_136, %c8_137] : memref<16x32xf32, #tpu.memory_space<vmem>>, vector<8x8xf32>
    tpu.vector_store %arg26[%c8_136, %c8_137], %373 {strides = array<i32>} : memref<16x32xf32, #tpu.memory_space<vmem>>, vector<8x8xf32>,
    %375 = vector.extract_strided_slice %232 {offsets = [8, 16], sizes = [8, 8], strides = [1, 1]} : vector<16x32xf32> to vector<8x8xf32>
    %376 = arith.truncf %375 : vector<8x8xf32> to vector<8x8xbf16>
    %377 = vector.extract_strided_slice %241 {offsets = [8, 16], sizes = [8, 8], strides = [1, 1]} : vector<16x32xf32> to vector<8x8xf32>
    %378 = arith.truncf %377 : vector<8x8xf32> to vector<8x8xbf16>
    %379 = vector.extract_strided_slice %242 {offsets = [8, 16], sizes = [8, 8], strides = [1, 1]} : vector<16x32xf32> to vector<8x8xf32>
    %380 = arith.truncf %379 : vector<8x8xf32> to vector<8x8xbf16>
    %cst_138 = arith.constant dense<0.000000e+00> : vector<8x8xf32>
    %381 = tpu.matmul %376, %378, %cst_138 {dimension_numbers = #tpu.dot_dimension_numbers<[1], [1], [0], [0], [0, 0, 1, 0], [], []>} : vector<8x8xbf16>, vector<8x8xbf16>, vector<8x8xf32> -> vector<8x8xf32>
    %cst_139 = arith.constant 0.353553385 : f32
    %382 = vector.broadcast %cst_139 : f32 to vector<8x8xf32>
    %383 = arith.mulf %381, %382 : vector<8x8xf32>
    %cst_140 = arith.constant dense<0xFF800000> : vector<8xf32>
    %384 = vector.multi_reduction <maximumf>, %383, %cst_140 [1] : vector<8x8xf32> to vector<8xf32>
    %385 = vector.shape_cast %384 : vector<8xf32> to vector<8x1xf32>
    %386 = vector.broadcast %385 : vector<8x1xf32> to vector<8x8xf32>
    %387 = arith.subf %383, %386 : vector<8x8xf32>
    %388 = math.exp %387 : vector<8x8xf32>
    %cst_141 = arith.constant dense<0.000000e+00> : vector<8xf32>
    %389 = vector.multi_reduction <add>, %388, %cst_141 [1] : vector<8x8xf32> to vector<8xf32>
    %390 = vector.shape_cast %389 : vector<8xf32> to vector<8x1xf32>
    %391 = tpu.reciprocal %390 {approx = true} : vector<8x1xf32> -> vector<8x1xf32>
    %392 = vector.broadcast %391 : vector<8x1xf32> to vector<8x8xf32>
    %393 = arith.mulf %388, %392 : vector<8x8xf32>
    %394 = arith.truncf %393 : vector<8x8xf32> to vector<8x8xbf16>
    %cst_142 = arith.constant dense<0.000000e+00> : vector<8x8xf32>
    %395 = tpu.matmul %394, %380, %cst_142 {dimension_numbers = #tpu.dot_dimension_numbers<[1], [0], [0], [1], [0, 0, 1, 1], [], []>} : vector<8x8xbf16>, vector<8x8xbf16>, vector<8x8xf32> -> vector<8x8xf32>
    %c8_143 = arith.constant 8 : index
    %c16_144 = arith.constant 16 : index
    %396 = vector.load %arg26[%c8_143, %c16_144] : memref<16x32xf32, #tpu.memory_space<vmem>>, vector<8x8xf32>
    tpu.vector_store %arg26[%c8_143, %c16_144], %395 {strides = array<i32>} : memref<16x32xf32, #tpu.memory_space<vmem>>, vector<8x8xf32>,
    %397 = vector.extract_strided_slice %232 {offsets = [8, 24], sizes = [8, 8], strides = [1, 1]} : vector<16x32xf32> to vector<8x8xf32>
    %398 = arith.truncf %397 : vector<8x8xf32> to vector<8x8xbf16>
    %399 = vector.extract_strided_slice %241 {offsets = [8, 24], sizes = [8, 8], strides = [1, 1]} : vector<16x32xf32> to vector<8x8xf32>
    %400 = arith.truncf %399 : vector<8x8xf32> to vector<8x8xbf16>
    %401 = vector.extract_strided_slice %242 {offsets = [8, 24], sizes = [8, 8], strides = [1, 1]} : vector<16x32xf32> to vector<8x8xf32>
    %402 = arith.truncf %401 : vector<8x8xf32> to vector<8x8xbf16>
    %cst_145 = arith.constant dense<0.000000e+00> : vector<8x8xf32>
    %403 = tpu.matmul %398, %400, %cst_145 {dimension_numbers = #tpu.dot_dimension_numbers<[1], [1], [0], [0], [0, 0, 1, 0], [], []>} : vector<8x8xbf16>, vector<8x8xbf16>, vector<8x8xf32> -> vector<8x8xf32>
    %cst_146 = arith.constant 0.353553385 : f32
    %404 = vector.broadcast %cst_146 : f32 to vector<8x8xf32>
    %405 = arith.mulf %403, %404 : vector<8x8xf32>
    %cst_147 = arith.constant dense<0xFF800000> : vector<8xf32>
    %406 = vector.multi_reduction <maximumf>, %405, %cst_147 [1] : vector<8x8xf32> to vector<8xf32>
    %407 = vector.shape_cast %406 : vector<8xf32> to vector<8x1xf32>
    %408 = vector.broadcast %407 : vector<8x1xf32> to vector<8x8xf32>
    %409 = arith.subf %405, %408 : vector<8x8xf32>
    %410 = math.exp %409 : vector<8x8xf32>
    %cst_148 = arith.constant dense<0.000000e+00> : vector<8xf32>
    %411 = vector.multi_reduction <add>, %410, %cst_148 [1] : vector<8x8xf32> to vector<8xf32>
    %412 = vector.shape_cast %411 : vector<8xf32> to vector<8x1xf32>
    %413 = tpu.reciprocal %412 {approx = true} : vector<8x1xf32> -> vector<8x1xf32>
    %414 = vector.broadcast %413 : vector<8x1xf32> to vector<8x8xf32>
    %415 = arith.mulf %410, %414 : vector<8x8xf32>
    %416 = arith.truncf %415 : vector<8x8xf32> to vector<8x8xbf16>
    %cst_149 = arith.constant dense<0.000000e+00> : vector<8x8xf32>
    %417 = tpu.matmul %416, %402, %cst_149 {dimension_numbers = #tpu.dot_dimension_numbers<[1], [0], [0], [1], [0, 0, 1, 1], [], []>} : vector<8x8xbf16>, vector<8x8xbf16>, vector<8x8xf32> -> vector<8x8xf32>
    %c8_150 = arith.constant 8 : index
    %c24_151 = arith.constant 24 : index
    %418 = vector.load %arg26[%c8_150, %c24_151] : memref<16x32xf32, #tpu.memory_space<vmem>>, vector<8x8xf32>
    tpu.vector_store %arg26[%c8_150, %c24_151], %417 {strides = array<i32>} : memref<16x32xf32, #tpu.memory_space<vmem>>, vector<8x8xf32>,
    %c0_152 = arith.constant 0 : index
    %c0_153 = arith.constant 0 : index
    %419 = vector.load %arg26[%c0_152, %c0_153] : memref<16x32xf32, #tpu.memory_space<vmem>>, vector<16x32xf32>
    %420 = arith.truncf %419 : vector<16x32xf32> to vector<16x32xbf16>
    %c0_154 = arith.constant 0 : index
    %c0_155 = arith.constant 0 : index
    %c0_156 = arith.constant 0 : index
    %421 = vector.load %arg11[%c0_154, %c0_155, %c0_156] : memref<2x32x32xbf16, #tpu.memory_space<vmem>>, vector<1x32x32xbf16>
    %422 = vector.shape_cast %421 : vector<1x32x32xbf16> to vector<32x32xbf16>
    %cst_157 = arith.constant dense<0.000000e+00> : vector<16x32xf32>
    %423 = tpu.matmul %420, %422, %cst_157 {dimension_numbers = #tpu.dot_dimension_numbers<[1], [0], [0], [1], [0, 0, 1, 1], [], []>} : vector<16x32xbf16>, vector<32x32xbf16>, vector<16x32xf32> -> vector<16x32xf32>
    %c0_158 = arith.constant 0 : index
    %c0_159 = arith.constant 0 : index
    %c0_160 = arith.constant 0 : index
    %424 = vector.load %arg12[%c0_158, %c0_159, %c0_160] : memref<2x1x32xf32, #tpu.memory_space<vmem>>, vector<1x1x32xf32>
    %425 = vector.shape_cast %424 : vector<1x1x32xf32> to vector<1x32xf32>
    %426 = vector.broadcast %425 : vector<1x32xf32> to vector<16x32xf32>
    %427 = arith.addf %423, %426 : vector<16x32xf32>
    %428 = arith.addf %224, %427 : vector<16x32xf32>
    %c0_161 = arith.constant 0 : index
    %c0_162 = arith.constant 0 : index
    %c0_163 = arith.constant 0 : index
    %429 = vector.load %arg15[%c0_161, %c0_162, %c0_163] : memref<2x1x32xf32, #tpu.memory_space<vmem>>, vector<1x1x32xf32>
    %430 = vector.shape_cast %429 : vector<1x1x32xf32> to vector<1x32xf32>
    %c0_164 = arith.constant 0 : index
    %c0_165 = arith.constant 0 : index
    %c0_166 = arith.constant 0 : index
    %431 = vector.load %arg16[%c0_164, %c0_165, %c0_166] : memref<2x1x32xf32, #tpu.memory_space<vmem>>, vector<1x1x32xf32>
    %432 = vector.shape_cast %431 : vector<1x1x32xf32> to vector<1x32xf32>
    %cst_167 = arith.constant dense<0.000000e+00> : vector<16xf32>
    %433 = vector.multi_reduction <add>, %428, %cst_167 [1] : vector<16x32xf32> to vector<16xf32>
    %434 = vector.shape_cast %433 : vector<16xf32> to vector<16x1xf32>
    %cst_168 = arith.constant 3.200000e+01 : f32
    %435 = vector.broadcast %cst_168 : f32 to vector<16x1xf32>
    %436 = arith.divf %434, %435 : vector<16x1xf32>
    %437 = arith.mulf %428, %428 : vector<16x32xf32>
    %cst_169 = arith.constant dense<0.000000e+00> : vector<16xf32>
    %438 = vector.multi_reduction <add>, %437, %cst_169 [1] : vector<16x32xf32> to vector<16xf32>
    %439 = vector.shape_cast %438 : vector<16xf32> to vector<16x1xf32>
    %cst_170 = arith.constant 3.200000e+01 : f32
    %440 = vector.broadcast %cst_170 : f32 to vector<16x1xf32>
    %441 = arith.divf %439, %440 : vector<16x1xf32>
    %442 = arith.mulf %436, %436 : vector<16x1xf32>
    %443 = arith.subf %441, %442 : vector<16x1xf32>
    %444 = vector.broadcast %436 : vector<16x1xf32> to vector<16x32xf32>
    %445 = arith.subf %428, %444 : vector<16x32xf32>
    %cst_171 = arith.constant 9.99999974E-6 : f32
    %446 = vector.broadcast %cst_171 : f32 to vector<16x1xf32>
    %447 = arith.addf %443, %446 : vector<16x1xf32>
    %448 = math.rsqrt %447 : vector<16x1xf32>
    %449 = vector.broadcast %448 : vector<16x1xf32> to vector<16x32xf32>
    %450 = arith.mulf %445, %449 : vector<16x32xf32>
    %451 = vector.broadcast %430 : vector<1x32xf32> to vector<16x32xf32>
    %452 = arith.mulf %450, %451 : vector<16x32xf32>
    %453 = vector.broadcast %432 : vector<1x32xf32> to vector<16x32xf32>
    %454 = arith.addf %452, %453 : vector<16x32xf32>
    %455 = arith.truncf %454 : vector<16x32xf32> to vector<16x32xbf16>
    %c0_172 = arith.constant 0 : index
    %c0_173 = arith.constant 0 : index
    %c0_174 = arith.constant 0 : index
    %456 = vector.load %arg19[%c0_172, %c0_173, %c0_174] : memref<2x32x64xbf16, #tpu.memory_space<vmem>>, vector<1x32x64xbf16>
    %457 = vector.shape_cast %456 : vector<1x32x64xbf16> to vector<32x64xbf16>
    %cst_175 = arith.constant dense<0.000000e+00> : vector<16x64xf32>
    %458 = tpu.matmul %455, %457, %cst_175 {dimension_numbers = #tpu.dot_dimension_numbers<[1], [0], [0], [1], [0, 0, 1, 1], [], []>} : vector<16x32xbf16>, vector<32x64xbf16>, vector<16x64xf32> -> vector<16x64xf32>
    %c0_176 = arith.constant 0 : index
    %c0_177 = arith.constant 0 : index
    %c0_178 = arith.constant 0 : index
    %459 = vector.load %arg20[%c0_176, %c0_177, %c0_178] : memref<2x1x64xf32, #tpu.memory_space<vmem>>, vector<1x1x64xf32>
    %460 = vector.shape_cast %459 : vector<1x1x64xf32> to vector<1x64xf32>
    %461 = vector.broadcast %460 : vector<1x64xf32> to vector<16x64xf32>
    %462 = arith.addf %458, %461 : vector<16x64xf32>
    %cst_179 = arith.constant 0.000000e+00 : f32
    %463 = vector.broadcast %cst_179 : f32 to vector<16x64xf32>
    %464 = arith.maximumf %462, %463 : vector<16x64xf32>
    %465 = arith.truncf %464 : vector<16x64xf32> to vector<16x64xbf16>
    %c0_180 = arith.constant 0 : index
    %c0_181 = arith.constant 0 : index
    %c0_182 = arith.constant 0 : index
    %466 = vector.load %arg21[%c0_180, %c0_181, %c0_182] : memref<2x64x32xbf16, #tpu.memory_space<vmem>>, vector<1x64x32xbf16>
    %467 = vector.shape_cast %466 : vector<1x64x32xbf16> to vector<64x32xbf16>
    %cst_183 = arith.constant dense<0.000000e+00> : vector<16x32xf32>
    %468 = tpu.matmul %465, %467, %cst_183 {dimension_numbers = #tpu.dot_dimension_numbers<[1], [0], [0], [1], [0, 0, 1, 1], [], []>} : vector<16x64xbf16>, vector<64x32xbf16>, vector<16x32xf32> -> vector<16x32xf32>
    %c0_184 = arith.constant 0 : index
    %c0_185 = arith.constant 0 : index
    %c0_186 = arith.constant 0 : index
    %469 = vector.load %arg22[%c0_184, %c0_185, %c0_186] : memref<2x1x32xf32, #tpu.memory_space<vmem>>, vector<1x1x32xf32>
    %470 = vector.shape_cast %469 : vector<1x1x32xf32> to vector<1x32xf32>
    %471 = vector.broadcast %470 : vector<1x32xf32> to vector<16x32xf32>
    %472 = arith.addf %468, %471 : vector<16x32xf32>
    %473 = arith.addf %454, %472 : vector<16x32xf32>
    %c0_187 = arith.constant 0 : index
    %c0_188 = arith.constant 0 : index
    %c0_189 = arith.constant 0 : index
    %474 = vector.load %arg17[%c0_187, %c0_188, %c0_189] : memref<2x1x32xf32, #tpu.memory_space<vmem>>, vector<1x1x32xf32>
    %475 = vector.shape_cast %474 : vector<1x1x32xf32> to vector<1x32xf32>
    %c0_190 = arith.constant 0 : index
    %c0_191 = arith.constant 0 : index
    %c0_192 = arith.constant 0 : index
    %476 = vector.load %arg18[%c0_190, %c0_191, %c0_192] : memref<2x1x32xf32, #tpu.memory_space<vmem>>, vector<1x1x32xf32>
    %477 = vector.shape_cast %476 : vector<1x1x32xf32> to vector<1x32xf32>
    %cst_193 = arith.constant dense<0.000000e+00> : vector<16xf32>
    %478 = vector.multi_reduction <add>, %473, %cst_193 [1] : vector<16x32xf32> to vector<16xf32>
    %479 = vector.shape_cast %478 : vector<16xf32> to vector<16x1xf32>
    %cst_194 = arith.constant 3.200000e+01 : f32
    %480 = vector.broadcast %cst_194 : f32 to vector<16x1xf32>
    %481 = arith.divf %479, %480 : vector<16x1xf32>
    %482 = arith.mulf %473, %473 : vector<16x32xf32>
    %cst_195 = arith.constant dense<0.000000e+00> : vector<16xf32>
    %483 = vector.multi_reduction <add>, %482, %cst_195 [1] : vector<16x32xf32> to vector<16xf32>
    %484 = vector.shape_cast %483 : vector<16xf32> to vector<16x1xf32>
    %cst_196 = arith.constant 3.200000e+01 : f32
    %485 = vector.broadcast %cst_196 : f32 to vector<16x1xf32>
    %486 = arith.divf %484, %485 : vector<16x1xf32>
    %487 = arith.mulf %481, %481 : vector<16x1xf32>
    %488 = arith.subf %486, %487 : vector<16x1xf32>
    %489 = vector.broadcast %481 : vector<16x1xf32> to vector<16x32xf32>
    %490 = arith.subf %473, %489 : vector<16x32xf32>
    %cst_197 = arith.constant 9.99999974E-6 : f32
    %491 = vector.broadcast %cst_197 : f32 to vector<16x1xf32>
    %492 = arith.addf %488, %491 : vector<16x1xf32>
    %493 = math.rsqrt %492 : vector<16x1xf32>
    %494 = vector.broadcast %493 : vector<16x1xf32> to vector<16x32xf32>
    %495 = arith.mulf %490, %494 : vector<16x32xf32>
    %496 = vector.broadcast %475 : vector<1x32xf32> to vector<16x32xf32>
    %497 = arith.mulf %495, %496 : vector<16x32xf32>
    %498 = vector.broadcast %477 : vector<1x32xf32> to vector<16x32xf32>
    %499 = arith.addf %497, %498 : vector<16x32xf32>
    %500 = arith.truncf %499 : vector<16x32xf32> to vector<16x32xbf16>
    %c1 = arith.constant 1 : index
    %c0_198 = arith.constant 0 : index
    %c0_199 = arith.constant 0 : index
    %501 = vector.load %arg3[%c1, %c0_198, %c0_199] : memref<2x32x96xbf16, #tpu.memory_space<vmem>>, vector<1x32x96xbf16>
    %502 = vector.shape_cast %501 : vector<1x32x96xbf16> to vector<32x96xbf16>
    %cst_200 = arith.constant dense<0.000000e+00> : vector<16x96xf32>
    %503 = tpu.matmul %500, %502, %cst_200 {dimension_numbers = #tpu.dot_dimension_numbers<[1], [0], [0], [1], [0, 0, 1, 1], [], []>} : vector<16x32xbf16>, vector<32x96xbf16>, vector<16x96xf32> -> vector<16x96xf32>
    %c1_201 = arith.constant 1 : index
    %c0_202 = arith.constant 0 : index
    %c0_203 = arith.constant 0 : index
    %504 = vector.load %arg4[%c1_201, %c0_202, %c0_203] : memref<2x1x96xf32, #tpu.memory_space<vmem>>, vector<1x1x96xf32>
    %505 = vector.shape_cast %504 : vector<1x1x96xf32> to vector<1x96xf32>
    %506 = vector.broadcast %505 : vector<1x96xf32> to vector<16x96xf32>
    %507 = arith.addf %503, %506 : vector<16x96xf32>
    %508 = vector.extract_strided_slice %507 {offsets = [0, 0], sizes = [16, 32], strides = [1, 1]} : vector<16x96xf32> to vector<16x32xf32>
    %509 = vector.extract_strided_slice %507 {offsets = [0, 32], sizes = [16, 32], strides = [1, 1]} : vector<16x96xf32> to vector<16x32xf32>
    %510 = vector.extract_strided_slice %507 {offsets = [0, 64], sizes = [16, 32], strides = [1, 1]} : vector<16x96xf32> to vector<16x32xf32>
    %511 = vector.extract_strided_slice %508 {offsets = [0, 0], sizes = [8, 8], strides = [1, 1]} : vector<16x32xf32> to vector<8x8xf32>
    %512 = arith.truncf %511 : vector<8x8xf32> to vector<8x8xbf16>
    %513 = vector.extract_strided_slice %509 {offsets = [0, 0], sizes = [8, 8], strides = [1, 1]} : vector<16x32xf32> to vector<8x8xf32>
    %514 = arith.truncf %513 : vector<8x8xf32> to vector<8x8xbf16>
    %515 = vector.extract_strided_slice %510 {offsets = [0, 0], sizes = [8, 8], strides = [1, 1]} : vector<16x32xf32> to vector<8x8xf32>
    %516 = arith.truncf %515 : vector<8x8xf32> to vector<8x8xbf16>
    %cst_204 = arith.constant dense<0.000000e+00> : vector<8x8xf32>
    %517 = tpu.matmul %512, %514, %cst_204 {dimension_numbers = #tpu.dot_dimension_numbers<[1], [1], [0], [0], [0, 0, 1, 0], [], []>} : vector<8x8xbf16>, vector<8x8xbf16>, vector<8x8xf32> -> vector<8x8xf32>
    %cst_205 = arith.constant 0.353553385 : f32
    %518 = vector.broadcast %cst_205 : f32 to vector<8x8xf32>
    %519 = arith.mulf %517, %518 : vector<8x8xf32>
    %cst_206 = arith.constant dense<0xFF800000> : vector<8xf32>
    %520 = vector.multi_reduction <maximumf>, %519, %cst_206 [1] : vector<8x8xf32> to vector<8xf32>
    %521 = vector.shape_cast %520 : vector<8xf32> to vector<8x1xf32>
    %522 = vector.broadcast %521 : vector<8x1xf32> to vector<8x8xf32>
    %523 = arith.subf %519, %522 : vector<8x8xf32>
    %524 = math.exp %523 : vector<8x8xf32>
    %cst_207 = arith.constant dense<0.000000e+00> : vector<8xf32>
    %525 = vector.multi_reduction <add>, %524, %cst_207 [1] : vector<8x8xf32> to vector<8xf32>
    %526 = vector.shape_cast %525 : vector<8xf32> to vector<8x1xf32>
    %527 = tpu.reciprocal %526 {approx = true} : vector<8x1xf32> -> vector<8x1xf32>
    %528 = vector.broadcast %527 : vector<8x1xf32> to vector<8x8xf32>
    %529 = arith.mulf %524, %528 : vector<8x8xf32>
    %530 = arith.truncf %529 : vector<8x8xf32> to vector<8x8xbf16>
    %cst_208 = arith.constant dense<0.000000e+00> : vector<8x8xf32>
    %531 = tpu.matmul %530, %516, %cst_208 {dimension_numbers = #tpu.dot_dimension_numbers<[1], [0], [0], [1], [0, 0, 1, 1], [], []>} : vector<8x8xbf16>, vector<8x8xbf16>, vector<8x8xf32> -> vector<8x8xf32>
    %c0_209 = arith.constant 0 : index
    %c0_210 = arith.constant 0 : index
    %532 = vector.load %arg26[%c0_209, %c0_210] : memref<16x32xf32, #tpu.memory_space<vmem>>, vector<8x8xf32>
    tpu.vector_store %arg26[%c0_209, %c0_210], %531 {strides = array<i32>} : memref<16x32xf32, #tpu.memory_space<vmem>>, vector<8x8xf32>,
    %533 = vector.extract_strided_slice %508 {offsets = [0, 8], sizes = [8, 8], strides = [1, 1]} : vector<16x32xf32> to vector<8x8xf32>
    %534 = arith.truncf %533 : vector<8x8xf32> to vector<8x8xbf16>
    %535 = vector.extract_strided_slice %509 {offsets = [0, 8], sizes = [8, 8], strides = [1, 1]} : vector<16x32xf32> to vector<8x8xf32>
    %536 = arith.truncf %535 : vector<8x8xf32> to vector<8x8xbf16>
    %537 = vector.extract_strided_slice %510 {offsets = [0, 8], sizes = [8, 8], strides = [1, 1]} : vector<16x32xf32> to vector<8x8xf32>
    %538 = arith.truncf %537 : vector<8x8xf32> to vector<8x8xbf16>
    %cst_211 = arith.constant dense<0.000000e+00> : vector<8x8xf32>
    %539 = tpu.matmul %534, %536, %cst_211 {dimension_numbers = #tpu.dot_dimension_numbers<[1], [1], [0], [0], [0, 0, 1, 0], [], []>} : vector<8x8xbf16>, vector<8x8xbf16>, vector<8x8xf32> -> vector<8x8xf32>
    %cst_212 = arith.constant 0.353553385 : f32
    %540 = vector.broadcast %cst_212 : f32 to vector<8x8xf32>
    %541 = arith.mulf %539, %540 : vector<8x8xf32>
    %cst_213 = arith.constant dense<0xFF800000> : vector<8xf32>
    %542 = vector.multi_reduction <maximumf>, %541, %cst_213 [1] : vector<8x8xf32> to vector<8xf32>
    %543 = vector.shape_cast %542 : vector<8xf32> to vector<8x1xf32>
    %544 = vector.broadcast %543 : vector<8x1xf32> to vector<8x8xf32>
    %545 = arith.subf %541, %544 : vector<8x8xf32>
    %546 = math.exp %545 : vector<8x8xf32>
    %cst_214 = arith.constant dense<0.000000e+00> : vector<8xf32>
    %547 = vector.multi_reduction <add>, %546, %cst_214 [1] : vector<8x8xf32> to vector<8xf32>
    %548 = vector.shape_cast %547 : vector<8xf32> to vector<8x1xf32>
    %549 = tpu.reciprocal %548 {approx = true} : vector<8x1xf32> -> vector<8x1xf32>
    %550 = vector.broadcast %549 : vector<8x1xf32> to vector<8x8xf32>
    %551 = arith.mulf %546, %550 : vector<8x8xf32>
    %552 = arith.truncf %551 : vector<8x8xf32> to vector<8x8xbf16>
    %cst_215 = arith.constant dense<0.000000e+00> : vector<8x8xf32>
    %553 = tpu.matmul %552, %538, %cst_215 {dimension_numbers = #tpu.dot_dimension_numbers<[1], [0], [0], [1], [0, 0, 1, 1], [], []>} : vector<8x8xbf16>, vector<8x8xbf16>, vector<8x8xf32> -> vector<8x8xf32>
    %c0_216 = arith.constant 0 : index
    %c8_217 = arith.constant 8 : index
    %554 = vector.load %arg26[%c0_216, %c8_217] : memref<16x32xf32, #tpu.memory_space<vmem>>, vector<8x8xf32>
    tpu.vector_store %arg26[%c0_216, %c8_217], %553 {strides = array<i32>} : memref<16x32xf32, #tpu.memory_space<vmem>>, vector<8x8xf32>,
    %555 = vector.extract_strided_slice %508 {offsets = [0, 16], sizes = [8, 8], strides = [1, 1]} : vector<16x32xf32> to vector<8x8xf32>
    %556 = arith.truncf %555 : vector<8x8xf32> to vector<8x8xbf16>
    %557 = vector.extract_strided_slice %509 {offsets = [0, 16], sizes = [8, 8], strides = [1, 1]} : vector<16x32xf32> to vector<8x8xf32>
    %558 = arith.truncf %557 : vector<8x8xf32> to vector<8x8xbf16>
    %559 = vector.extract_strided_slice %510 {offsets = [0, 16], sizes = [8, 8], strides = [1, 1]} : vector<16x32xf32> to vector<8x8xf32>
    %560 = arith.truncf %559 : vector<8x8xf32> to vector<8x8xbf16>
    %cst_218 = arith.constant dense<0.000000e+00> : vector<8x8xf32>
    %561 = tpu.matmul %556, %558, %cst_218 {dimension_numbers = #tpu.dot_dimension_numbers<[1], [1], [0], [0], [0, 0, 1, 0], [], []>} : vector<8x8xbf16>, vector<8x8xbf16>, vector<8x8xf32> -> vector<8x8xf32>
    %cst_219 = arith.constant 0.353553385 : f32
    %562 = vector.broadcast %cst_219 : f32 to vector<8x8xf32>
    %563 = arith.mulf %561, %562 : vector<8x8xf32>
    %cst_220 = arith.constant dense<0xFF800000> : vector<8xf32>
    %564 = vector.multi_reduction <maximumf>, %563, %cst_220 [1] : vector<8x8xf32> to vector<8xf32>
    %565 = vector.shape_cast %564 : vector<8xf32> to vector<8x1xf32>
    %566 = vector.broadcast %565 : vector<8x1xf32> to vector<8x8xf32>
    %567 = arith.subf %563, %566 : vector<8x8xf32>
    %568 = math.exp %567 : vector<8x8xf32>
    %cst_221 = arith.constant dense<0.000000e+00> : vector<8xf32>
    %569 = vector.multi_reduction <add>, %568, %cst_221 [1] : vector<8x8xf32> to vector<8xf32>
    %570 = vector.shape_cast %569 : vector<8xf32> to vector<8x1xf32>
    %571 = tpu.reciprocal %570 {approx = true} : vector<8x1xf32> -> vector<8x1xf32>
    %572 = vector.broadcast %571 : vector<8x1xf32> to vector<8x8xf32>
    %573 = arith.mulf %568, %572 : vector<8x8xf32>
    %574 = arith.truncf %573 : vector<8x8xf32> to vector<8x8xbf16>
    %cst_222 = arith.constant dense<0.000000e+00> : vector<8x8xf32>
    %575 = tpu.matmul %574, %560, %cst_222 {dimension_numbers = #tpu.dot_dimension_numbers<[1], [0], [0], [1], [0, 0, 1, 1], [], []>} : vector<8x8xbf16>, vector<8x8xbf16>, vector<8x8xf32> -> vector<8x8xf32>
    %c0_223 = arith.constant 0 : index
    %c16_224 = arith.constant 16 : index
    %576 = vector.load %arg26[%c0_223, %c16_224] : memref<16x32xf32, #tpu.memory_space<vmem>>, vector<8x8xf32>
    tpu.vector_store %arg26[%c0_223, %c16_224], %575 {strides = array<i32>} : memref<16x32xf32, #tpu.memory_space<vmem>>, vector<8x8xf32>,
    %577 = vector.extract_strided_slice %508 {offsets = [0, 24], sizes = [8, 8], strides = [1, 1]} : vector<16x32xf32> to vector<8x8xf32>
    %578 = arith.truncf %577 : vector<8x8xf32> to vector<8x8xbf16>
    %579 = vector.extract_strided_slice %509 {offsets = [0, 24], sizes = [8, 8], strides = [1, 1]} : vector<16x32xf32> to vector<8x8xf32>
    %580 = arith.truncf %579 : vector<8x8xf32> to vector<8x8xbf16>
    %581 = vector.extract_strided_slice %510 {offsets = [0, 24], sizes = [8, 8], strides = [1, 1]} : vector<16x32xf32> to vector<8x8xf32>
    %582 = arith.truncf %581 : vector<8x8xf32> to vector<8x8xbf16>
    %cst_225 = arith.constant dense<0.000000e+00> : vector<8x8xf32>
    %583 = tpu.matmul %578, %580, %cst_225 {dimension_numbers = #tpu.dot_dimension_numbers<[1], [1], [0], [0], [0, 0, 1, 0], [], []>} : vector<8x8xbf16>, vector<8x8xbf16>, vector<8x8xf32> -> vector<8x8xf32>
    %cst_226 = arith.constant 0.353553385 : f32
    %584 = vector.broadcast %cst_226 : f32 to vector<8x8xf32>
    %585 = arith.mulf %583, %584 : vector<8x8xf32>
    %cst_227 = arith.constant dense<0xFF800000> : vector<8xf32>
    %586 = vector.multi_reduction <maximumf>, %585, %cst_227 [1] : vector<8x8xf32> to vector<8xf32>
    %587 = vector.shape_cast %586 : vector<8xf32> to vector<8x1xf32>
    %588 = vector.broadcast %587 : vector<8x1xf32> to vector<8x8xf32>
    %589 = arith.subf %585, %588 : vector<8x8xf32>
    %590 = math.exp %589 : vector<8x8xf32>
    %cst_228 = arith.constant dense<0.000000e+00> : vector<8xf32>
    %591 = vector.multi_reduction <add>, %590, %cst_228 [1] : vector<8x8xf32> to vector<8xf32>
    %592 = vector.shape_cast %591 : vector<8xf32> to vector<8x1xf32>
    %593 = tpu.reciprocal %592 {approx = true} : vector<8x1xf32> -> vector<8x1xf32>
    %594 = vector.broadcast %593 : vector<8x1xf32> to vector<8x8xf32>
    %595 = arith.mulf %590, %594 : vector<8x8xf32>
    %596 = arith.truncf %595 : vector<8x8xf32> to vector<8x8xbf16>
    %cst_229 = arith.constant dense<0.000000e+00> : vector<8x8xf32>
    %597 = tpu.matmul %596, %582, %cst_229 {dimension_numbers = #tpu.dot_dimension_numbers<[1], [0], [0], [1], [0, 0, 1, 1], [], []>} : vector<8x8xbf16>, vector<8x8xbf16>, vector<8x8xf32> -> vector<8x8xf32>
    %c0_230 = arith.constant 0 : index
    %c24_231 = arith.constant 24 : index
    %598 = vector.load %arg26[%c0_230, %c24_231] : memref<16x32xf32, #tpu.memory_space<vmem>>, vector<8x8xf32>
    tpu.vector_store %arg26[%c0_230, %c24_231], %597 {strides = array<i32>} : memref<16x32xf32, #tpu.memory_space<vmem>>, vector<8x8xf32>,
    %599 = vector.extract_strided_slice %508 {offsets = [8, 0], sizes = [8, 8], strides = [1, 1]} : vector<16x32xf32> to vector<8x8xf32>
    %600 = arith.truncf %599 : vector<8x8xf32> to vector<8x8xbf16>
    %601 = vector.extract_strided_slice %509 {offsets = [8, 0], sizes = [8, 8], strides = [1, 1]} : vector<16x32xf32> to vector<8x8xf32>
    %602 = arith.truncf %601 : vector<8x8xf32> to vector<8x8xbf16>
    %603 = vector.extract_strided_slice %510 {offsets = [8, 0], sizes = [8, 8], strides = [1, 1]} : vector<16x32xf32> to vector<8x8xf32>
    %604 = arith.truncf %603 : vector<8x8xf32> to vector<8x8xbf16>
    %cst_232 = arith.constant dense<0.000000e+00> : vector<8x8xf32>
    %605 = tpu.matmul %600, %602, %cst_232 {dimension_numbers = #tpu.dot_dimension_numbers<[1], [1], [0], [0], [0, 0, 1, 0], [], []>} : vector<8x8xbf16>, vector<8x8xbf16>, vector<8x8xf32> -> vector<8x8xf32>
    %cst_233 = arith.constant 0.353553385 : f32
    %606 = vector.broadcast %cst_233 : f32 to vector<8x8xf32>
    %607 = arith.mulf %605, %606 : vector<8x8xf32>
    %cst_234 = arith.constant dense<0xFF800000> : vector<8xf32>
    %608 = vector.multi_reduction <maximumf>, %607, %cst_234 [1] : vector<8x8xf32> to vector<8xf32>
    %609 = vector.shape_cast %608 : vector<8xf32> to vector<8x1xf32>
    %610 = vector.broadcast %609 : vector<8x1xf32> to vector<8x8xf32>
    %611 = arith.subf %607, %610 : vector<8x8xf32>
    %612 = math.exp %611 : vector<8x8xf32>
    %cst_235 = arith.constant dense<0.000000e+00> : vector<8xf32>
    %613 = vector.multi_reduction <add>, %612, %cst_235 [1] : vector<8x8xf32> to vector<8xf32>
    %614 = vector.shape_cast %613 : vector<8xf32> to vector<8x1xf32>
    %615 = tpu.reciprocal %614 {approx = true} : vector<8x1xf32> -> vector<8x1xf32>
    %616 = vector.broadcast %615 : vector<8x1xf32> to vector<8x8xf32>
    %617 = arith.mulf %612, %616 : vector<8x8xf32>
    %618 = arith.truncf %617 : vector<8x8xf32> to vector<8x8xbf16>
    %cst_236 = arith.constant dense<0.000000e+00> : vector<8x8xf32>
    %619 = tpu.matmul %618, %604, %cst_236 {dimension_numbers = #tpu.dot_dimension_numbers<[1], [0], [0], [1], [0, 0, 1, 1], [], []>} : vector<8x8xbf16>, vector<8x8xbf16>, vector<8x8xf32> -> vector<8x8xf32>
    %c8_237 = arith.constant 8 : index
    %c0_238 = arith.constant 0 : index
    %620 = vector.load %arg26[%c8_237, %c0_238] : memref<16x32xf32, #tpu.memory_space<vmem>>, vector<8x8xf32>
    tpu.vector_store %arg26[%c8_237, %c0_238], %619 {strides = array<i32>} : memref<16x32xf32, #tpu.memory_space<vmem>>, vector<8x8xf32>,
    %621 = vector.extract_strided_slice %508 {offsets = [8, 8], sizes = [8, 8], strides = [1, 1]} : vector<16x32xf32> to vector<8x8xf32>
    %622 = arith.truncf %621 : vector<8x8xf32> to vector<8x8xbf16>
    %623 = vector.extract_strided_slice %509 {offsets = [8, 8], sizes = [8, 8], strides = [1, 1]} : vector<16x32xf32> to vector<8x8xf32>
    %624 = arith.truncf %623 : vector<8x8xf32> to vector<8x8xbf16>
    %625 = vector.extract_strided_slice %510 {offsets = [8, 8], sizes = [8, 8], strides = [1, 1]} : vector<16x32xf32> to vector<8x8xf32>
    %626 = arith.truncf %625 : vector<8x8xf32> to vector<8x8xbf16>
    %cst_239 = arith.constant dense<0.000000e+00> : vector<8x8xf32>
    %627 = tpu.matmul %622, %624, %cst_239 {dimension_numbers = #tpu.dot_dimension_numbers<[1], [1], [0], [0], [0, 0, 1, 0], [], []>} : vector<8x8xbf16>, vector<8x8xbf16>, vector<8x8xf32> -> vector<8x8xf32>
    %cst_240 = arith.constant 0.353553385 : f32
    %628 = vector.broadcast %cst_240 : f32 to vector<8x8xf32>
    %629 = arith.mulf %627, %628 : vector<8x8xf32>
    %cst_241 = arith.constant dense<0xFF800000> : vector<8xf32>
    %630 = vector.multi_reduction <maximumf>, %629, %cst_241 [1] : vector<8x8xf32> to vector<8xf32>
    %631 = vector.shape_cast %630 : vector<8xf32> to vector<8x1xf32>
    %632 = vector.broadcast %631 : vector<8x1xf32> to vector<8x8xf32>
    %633 = arith.subf %629, %632 : vector<8x8xf32>
    %634 = math.exp %633 : vector<8x8xf32>
    %cst_242 = arith.constant dense<0.000000e+00> : vector<8xf32>
    %635 = vector.multi_reduction <add>, %634, %cst_242 [1] : vector<8x8xf32> to vector<8xf32>
    %636 = vector.shape_cast %635 : vector<8xf32> to vector<8x1xf32>
    %637 = tpu.reciprocal %636 {approx = true} : vector<8x1xf32> -> vector<8x1xf32>
    %638 = vector.broadcast %637 : vector<8x1xf32> to vector<8x8xf32>
    %639 = arith.mulf %634, %638 : vector<8x8xf32>
    %640 = arith.truncf %639 : vector<8x8xf32> to vector<8x8xbf16>
    %cst_243 = arith.constant dense<0.000000e+00> : vector<8x8xf32>
    %641 = tpu.matmul %640, %626, %cst_243 {dimension_numbers = #tpu.dot_dimension_numbers<[1], [0], [0], [1], [0, 0, 1, 1], [], []>} : vector<8x8xbf16>, vector<8x8xbf16>, vector<8x8xf32> -> vector<8x8xf32>
    %c8_244 = arith.constant 8 : index
    %c8_245 = arith.constant 8 : index
    %642 = vector.load %arg26[%c8_244, %c8_245] : memref<16x32xf32, #tpu.memory_space<vmem>>, vector<8x8xf32>
    tpu.vector_store %arg26[%c8_244, %c8_245], %641 {strides = array<i32>} : memref<16x32xf32, #tpu.memory_space<vmem>>, vector<8x8xf32>,
    %643 = vector.extract_strided_slice %508 {offsets = [8, 16], sizes = [8, 8], strides = [1, 1]} : vector<16x32xf32> to vector<8x8xf32>
    %644 = arith.truncf %643 : vector<8x8xf32> to vector<8x8xbf16>
    %645 = vector.extract_strided_slice %509 {offsets = [8, 16], sizes = [8, 8], strides = [1, 1]} : vector<16x32xf32> to vector<8x8xf32>
    %646 = arith.truncf %645 : vector<8x8xf32> to vector<8x8xbf16>
    %647 = vector.extract_strided_slice %510 {offsets = [8, 16], sizes = [8, 8], strides = [1, 1]} : vector<16x32xf32> to vector<8x8xf32>
    %648 = arith.truncf %647 : vector<8x8xf32> to vector<8x8xbf16>
    %cst_246 = arith.constant dense<0.000000e+00> : vector<8x8xf32>
    %649 = tpu.matmul %644, %646, %cst_246 {dimension_numbers = #tpu.dot_dimension_numbers<[1], [1], [0], [0], [0, 0, 1, 0], [], []>} : vector<8x8xbf16>, vector<8x8xbf16>, vector<8x8xf32> -> vector<8x8xf32>
    %cst_247 = arith.constant 0.353553385 : f32
    %650 = vector.broadcast %cst_247 : f32 to vector<8x8xf32>
    %651 = arith.mulf %649, %650 : vector<8x8xf32>
    %cst_248 = arith.constant dense<0xFF800000> : vector<8xf32>
    %652 = vector.multi_reduction <maximumf>, %651, %cst_248 [1] : vector<8x8xf32> to vector<8xf32>
    %653 = vector.shape_cast %652 : vector<8xf32> to vector<8x1xf32>
    %654 = vector.broadcast %653 : vector<8x1xf32> to vector<8x8xf32>
    %655 = arith.subf %651, %654 : vector<8x8xf32>
    %656 = math.exp %655 : vector<8x8xf32>
    %cst_249 = arith.constant dense<0.000000e+00> : vector<8xf32>
    %657 = vector.multi_reduction <add>, %656, %cst_249 [1] : vector<8x8xf32> to vector<8xf32>
    %658 = vector.shape_cast %657 : vector<8xf32> to vector<8x1xf32>
    %659 = tpu.reciprocal %658 {approx = true} : vector<8x1xf32> -> vector<8x1xf32>
    %660 = vector.broadcast %659 : vector<8x1xf32> to vector<8x8xf32>
    %661 = arith.mulf %656, %660 : vector<8x8xf32>
    %662 = arith.truncf %661 : vector<8x8xf32> to vector<8x8xbf16>
    %cst_250 = arith.constant dense<0.000000e+00> : vector<8x8xf32>
    %663 = tpu.matmul %662, %648, %cst_250 {dimension_numbers = #tpu.dot_dimension_numbers<[1], [0], [0], [1], [0, 0, 1, 1], [], []>} : vector<8x8xbf16>, vector<8x8xbf16>, vector<8x8xf32> -> vector<8x8xf32>
    %c8_251 = arith.constant 8 : index
    %c16_252 = arith.constant 16 : index
    %664 = vector.load %arg26[%c8_251, %c16_252] : memref<16x32xf32, #tpu.memory_space<vmem>>, vector<8x8xf32>
    tpu.vector_store %arg26[%c8_251, %c16_252], %663 {strides = array<i32>} : memref<16x32xf32, #tpu.memory_space<vmem>>, vector<8x8xf32>,
    %665 = vector.extract_strided_slice %508 {offsets = [8, 24], sizes = [8, 8], strides = [1, 1]} : vector<16x32xf32> to vector<8x8xf32>
    %666 = arith.truncf %665 : vector<8x8xf32> to vector<8x8xbf16>
    %667 = vector.extract_strided_slice %509 {offsets = [8, 24], sizes = [8, 8], strides = [1, 1]} : vector<16x32xf32> to vector<8x8xf32>
    %668 = arith.truncf %667 : vector<8x8xf32> to vector<8x8xbf16>
    %669 = vector.extract_strided_slice %510 {offsets = [8, 24], sizes = [8, 8], strides = [1, 1]} : vector<16x32xf32> to vector<8x8xf32>
    %670 = arith.truncf %669 : vector<8x8xf32> to vector<8x8xbf16>
    %cst_253 = arith.constant dense<0.000000e+00> : vector<8x8xf32>
    %671 = tpu.matmul %666, %668, %cst_253 {dimension_numbers = #tpu.dot_dimension_numbers<[1], [1], [0], [0], [0, 0, 1, 0], [], []>} : vector<8x8xbf16>, vector<8x8xbf16>, vector<8x8xf32> -> vector<8x8xf32>
    %cst_254 = arith.constant 0.353553385 : f32
    %672 = vector.broadcast %cst_254 : f32 to vector<8x8xf32>
    %673 = arith.mulf %671, %672 : vector<8x8xf32>
    %cst_255 = arith.constant dense<0xFF800000> : vector<8xf32>
    %674 = vector.multi_reduction <maximumf>, %673, %cst_255 [1] : vector<8x8xf32> to vector<8xf32>
    %675 = vector.shape_cast %674 : vector<8xf32> to vector<8x1xf32>
    %676 = vector.broadcast %675 : vector<8x1xf32> to vector<8x8xf32>
    %677 = arith.subf %673, %676 : vector<8x8xf32>
    %678 = math.exp %677 : vector<8x8xf32>
    %cst_256 = arith.constant dense<0.000000e+00> : vector<8xf32>
    %679 = vector.multi_reduction <add>, %678, %cst_256 [1] : vector<8x8xf32> to vector<8xf32>
    %680 = vector.shape_cast %679 : vector<8xf32> to vector<8x1xf32>
    %681 = tpu.reciprocal %680 {approx = true} : vector<8x1xf32> -> vector<8x1xf32>
    %682 = vector.broadcast %681 : vector<8x1xf32> to vector<8x8xf32>
    %683 = arith.mulf %678, %682 : vector<8x8xf32>
    %684 = arith.truncf %683 : vector<8x8xf32> to vector<8x8xbf16>
    %cst_257 = arith.constant dense<0.000000e+00> : vector<8x8xf32>
    %685 = tpu.matmul %684, %670, %cst_257 {dimension_numbers = #tpu.dot_dimension_numbers<[1], [0], [0], [1], [0, 0, 1, 1], [], []>} : vector<8x8xbf16>, vector<8x8xbf16>, vector<8x8xf32> -> vector<8x8xf32>
    %c8_258 = arith.constant 8 : index
    %c24_259 = arith.constant 24 : index
    %686 = vector.load %arg26[%c8_258, %c24_259] : memref<16x32xf32, #tpu.memory_space<vmem>>, vector<8x8xf32>
    tpu.vector_store %arg26[%c8_258, %c24_259], %685 {strides = array<i32>} : memref<16x32xf32, #tpu.memory_space<vmem>>, vector<8x8xf32>,
    %c0_260 = arith.constant 0 : index
    %c0_261 = arith.constant 0 : index
    %687 = vector.load %arg26[%c0_260, %c0_261] : memref<16x32xf32, #tpu.memory_space<vmem>>, vector<16x32xf32>
    %688 = arith.truncf %687 : vector<16x32xf32> to vector<16x32xbf16>
    %c1_262 = arith.constant 1 : index
    %c0_263 = arith.constant 0 : index
    %c0_264 = arith.constant 0 : index
    %689 = vector.load %arg5[%c1_262, %c0_263, %c0_264] : memref<2x32x32xbf16, #tpu.memory_space<vmem>>, vector<1x32x32xbf16>
    %690 = vector.shape_cast %689 : vector<1x32x32xbf16> to vector<32x32xbf16>
    %cst_265 = arith.constant dense<0.000000e+00> : vector<16x32xf32>
    %691 = tpu.matmul %688, %690, %cst_265 {dimension_numbers = #tpu.dot_dimension_numbers<[1], [0], [0], [1], [0, 0, 1, 1], [], []>} : vector<16x32xbf16>, vector<32x32xbf16>, vector<16x32xf32> -> vector<16x32xf32>
    %c1_266 = arith.constant 1 : index
    %c0_267 = arith.constant 0 : index
    %c0_268 = arith.constant 0 : index
    %692 = vector.load %arg6[%c1_266, %c0_267, %c0_268] : memref<2x1x32xf32, #tpu.memory_space<vmem>>, vector<1x1x32xf32>
    %693 = vector.shape_cast %692 : vector<1x1x32xf32> to vector<1x32xf32>
    %694 = vector.broadcast %693 : vector<1x32xf32> to vector<16x32xf32>
    %695 = arith.addf %691, %694 : vector<16x32xf32>
    %696 = arith.addf %499, %695 : vector<16x32xf32>
    %c1_269 = arith.constant 1 : index
    %c0_270 = arith.constant 0 : index
    %c0_271 = arith.constant 0 : index
    %697 = vector.load %arg13[%c1_269, %c0_270, %c0_271] : memref<2x1x32xf32, #tpu.memory_space<vmem>>, vector<1x1x32xf32>
    %698 = vector.shape_cast %697 : vector<1x1x32xf32> to vector<1x32xf32>
    %c1_272 = arith.constant 1 : index
    %c0_273 = arith.constant 0 : index
    %c0_274 = arith.constant 0 : index
    %699 = vector.load %arg14[%c1_272, %c0_273, %c0_274] : memref<2x1x32xf32, #tpu.memory_space<vmem>>, vector<1x1x32xf32>
    %700 = vector.shape_cast %699 : vector<1x1x32xf32> to vector<1x32xf32>
    %cst_275 = arith.constant dense<0.000000e+00> : vector<16xf32>
    %701 = vector.multi_reduction <add>, %696, %cst_275 [1] : vector<16x32xf32> to vector<16xf32>
    %702 = vector.shape_cast %701 : vector<16xf32> to vector<16x1xf32>
    %cst_276 = arith.constant 3.200000e+01 : f32
    %703 = vector.broadcast %cst_276 : f32 to vector<16x1xf32>
    %704 = arith.divf %702, %703 : vector<16x1xf32>
    %705 = arith.mulf %696, %696 : vector<16x32xf32>
    %cst_277 = arith.constant dense<0.000000e+00> : vector<16xf32>
    %706 = vector.multi_reduction <add>, %705, %cst_277 [1] : vector<16x32xf32> to vector<16xf32>
    %707 = vector.shape_cast %706 : vector<16xf32> to vector<16x1xf32>
    %cst_278 = arith.constant 3.200000e+01 : f32
    %708 = vector.broadcast %cst_278 : f32 to vector<16x1xf32>
    %709 = arith.divf %707, %708 : vector<16x1xf32>
    %710 = arith.mulf %704, %704 : vector<16x1xf32>
    %711 = arith.subf %709, %710 : vector<16x1xf32>
    %712 = vector.broadcast %704 : vector<16x1xf32> to vector<16x32xf32>
    %713 = arith.subf %696, %712 : vector<16x32xf32>
    %cst_279 = arith.constant 9.99999974E-6 : f32
    %714 = vector.broadcast %cst_279 : f32 to vector<16x1xf32>
    %715 = arith.addf %711, %714 : vector<16x1xf32>
    %716 = math.rsqrt %715 : vector<16x1xf32>
    %717 = vector.broadcast %716 : vector<16x1xf32> to vector<16x32xf32>
    %718 = arith.mulf %713, %717 : vector<16x32xf32>
    %719 = vector.broadcast %698 : vector<1x32xf32> to vector<16x32xf32>
    %720 = arith.mulf %718, %719 : vector<16x32xf32>
    %721 = vector.broadcast %700 : vector<1x32xf32> to vector<16x32xf32>
    %722 = arith.addf %720, %721 : vector<16x32xf32>
    %723 = arith.truncf %722 : vector<16x32xf32> to vector<16x32xbf16>
    %c1_280 = arith.constant 1 : index
    %c0_281 = arith.constant 0 : index
    %c0_282 = arith.constant 0 : index
    %724 = vector.load %arg7[%c1_280, %c0_281, %c0_282] : memref<2x32x32xbf16, #tpu.memory_space<vmem>>, vector<1x32x32xbf16>
    %725 = vector.shape_cast %724 : vector<1x32x32xbf16> to vector<32x32xbf16>
    %cst_283 = arith.constant dense<0.000000e+00> : vector<16x32xf32>
    %726 = tpu.matmul %723, %725, %cst_283 {dimension_numbers = #tpu.dot_dimension_numbers<[1], [0], [0], [1], [0, 0, 1, 1], [], []>} : vector<16x32xbf16>, vector<32x32xbf16>, vector<16x32xf32> -> vector<16x32xf32>
    %c1_284 = arith.constant 1 : index
    %c0_285 = arith.constant 0 : index
    %c0_286 = arith.constant 0 : index
    %727 = vector.load %arg8[%c1_284, %c0_285, %c0_286] : memref<2x1x32xf32, #tpu.memory_space<vmem>>, vector<1x1x32xf32>
    %728 = vector.shape_cast %727 : vector<1x1x32xf32> to vector<1x32xf32>
    %729 = vector.broadcast %728 : vector<1x32xf32> to vector<16x32xf32>
    %730 = arith.addf %726, %729 : vector<16x32xf32>
    %731 = arith.truncf %1 : vector<16x32xf32> to vector<16x32xbf16>
    %c1_287 = arith.constant 1 : index
    %c0_288 = arith.constant 0 : index
    %c0_289 = arith.constant 0 : index
    %732 = vector.load %arg9[%c1_287, %c0_288, %c0_289] : memref<2x32x64xbf16, #tpu.memory_space<vmem>>, vector<1x32x64xbf16>
    %733 = vector.shape_cast %732 : vector<1x32x64xbf16> to vector<32x64xbf16>
    %cst_290 = arith.constant dense<0.000000e+00> : vector<16x64xf32>
    %734 = tpu.matmul %731, %733, %cst_290 {dimension_numbers = #tpu.dot_dimension_numbers<[1], [0], [0], [1], [0, 0, 1, 1], [], []>} : vector<16x32xbf16>, vector<32x64xbf16>, vector<16x64xf32> -> vector<16x64xf32>
    %c1_291 = arith.constant 1 : index
    %c0_292 = arith.constant 0 : index
    %c0_293 = arith.constant 0 : index
    %735 = vector.load %arg10[%c1_291, %c0_292, %c0_293] : memref<2x1x64xf32, #tpu.memory_space<vmem>>, vector<1x1x64xf32>
    %736 = vector.shape_cast %735 : vector<1x1x64xf32> to vector<1x64xf32>
    %737 = vector.broadcast %736 : vector<1x64xf32> to vector<16x64xf32>
    %738 = arith.addf %734, %737 : vector<16x64xf32>
    %739 = vector.extract_strided_slice %738 {offsets = [0, 0], sizes = [16, 32], strides = [1, 1]} : vector<16x64xf32> to vector<16x32xf32>
    %740 = vector.extract_strided_slice %738 {offsets = [0, 32], sizes = [16, 32], strides = [1, 1]} : vector<16x64xf32> to vector<16x32xf32>
    %741 = vector.extract_strided_slice %730 {offsets = [0, 0], sizes = [8, 8], strides = [1, 1]} : vector<16x32xf32> to vector<8x8xf32>
    %742 = arith.truncf %741 : vector<8x8xf32> to vector<8x8xbf16>
    %743 = vector.extract_strided_slice %739 {offsets = [0, 0], sizes = [8, 8], strides = [1, 1]} : vector<16x32xf32> to vector<8x8xf32>
    %744 = arith.truncf %743 : vector<8x8xf32> to vector<8x8xbf16>
    %745 = vector.extract_strided_slice %740 {offsets = [0, 0], sizes = [8, 8], strides = [1, 1]} : vector<16x32xf32> to vector<8x8xf32>
    %746 = arith.truncf %745 : vector<8x8xf32> to vector<8x8xbf16>
    %cst_294 = arith.constant dense<0.000000e+00> : vector<8x8xf32>
    %747 = tpu.matmul %742, %744, %cst_294 {dimension_numbers = #tpu.dot_dimension_numbers<[1], [1], [0], [0], [0, 0, 1, 0], [], []>} : vector<8x8xbf16>, vector<8x8xbf16>, vector<8x8xf32> -> vector<8x8xf32>
    %cst_295 = arith.constant 0.353553385 : f32
    %748 = vector.broadcast %cst_295 : f32 to vector<8x8xf32>
    %749 = arith.mulf %747, %748 : vector<8x8xf32>
    %cst_296 = arith.constant dense<0xFF800000> : vector<8xf32>
    %750 = vector.multi_reduction <maximumf>, %749, %cst_296 [1] : vector<8x8xf32> to vector<8xf32>
    %751 = vector.shape_cast %750 : vector<8xf32> to vector<8x1xf32>
    %752 = vector.broadcast %751 : vector<8x1xf32> to vector<8x8xf32>
    %753 = arith.subf %749, %752 : vector<8x8xf32>
    %754 = math.exp %753 : vector<8x8xf32>
    %cst_297 = arith.constant dense<0.000000e+00> : vector<8xf32>
    %755 = vector.multi_reduction <add>, %754, %cst_297 [1] : vector<8x8xf32> to vector<8xf32>
    %756 = vector.shape_cast %755 : vector<8xf32> to vector<8x1xf32>
    %757 = tpu.reciprocal %756 {approx = true} : vector<8x1xf32> -> vector<8x1xf32>
    %758 = vector.broadcast %757 : vector<8x1xf32> to vector<8x8xf32>
    %759 = arith.mulf %754, %758 : vector<8x8xf32>
    %760 = arith.truncf %759 : vector<8x8xf32> to vector<8x8xbf16>
    %cst_298 = arith.constant dense<0.000000e+00> : vector<8x8xf32>
    %761 = tpu.matmul %760, %746, %cst_298 {dimension_numbers = #tpu.dot_dimension_numbers<[1], [0], [0], [1], [0, 0, 1, 1], [], []>} : vector<8x8xbf16>, vector<8x8xbf16>, vector<8x8xf32> -> vector<8x8xf32>
    %c0_299 = arith.constant 0 : index
    %c0_300 = arith.constant 0 : index
    %762 = vector.load %arg26[%c0_299, %c0_300] : memref<16x32xf32, #tpu.memory_space<vmem>>, vector<8x8xf32>
    tpu.vector_store %arg26[%c0_299, %c0_300], %761 {strides = array<i32>} : memref<16x32xf32, #tpu.memory_space<vmem>>, vector<8x8xf32>,
    %763 = vector.extract_strided_slice %730 {offsets = [0, 8], sizes = [8, 8], strides = [1, 1]} : vector<16x32xf32> to vector<8x8xf32>
    %764 = arith.truncf %763 : vector<8x8xf32> to vector<8x8xbf16>
    %765 = vector.extract_strided_slice %739 {offsets = [0, 8], sizes = [8, 8], strides = [1, 1]} : vector<16x32xf32> to vector<8x8xf32>
    %766 = arith.truncf %765 : vector<8x8xf32> to vector<8x8xbf16>
    %767 = vector.extract_strided_slice %740 {offsets = [0, 8], sizes = [8, 8], strides = [1, 1]} : vector<16x32xf32> to vector<8x8xf32>
    %768 = arith.truncf %767 : vector<8x8xf32> to vector<8x8xbf16>
    %cst_301 = arith.constant dense<0.000000e+00> : vector<8x8xf32>
    %769 = tpu.matmul %764, %766, %cst_301 {dimension_numbers = #tpu.dot_dimension_numbers<[1], [1], [0], [0], [0, 0, 1, 0], [], []>} : vector<8x8xbf16>, vector<8x8xbf16>, vector<8x8xf32> -> vector<8x8xf32>
    %cst_302 = arith.constant 0.353553385 : f32
    %770 = vector.broadcast %cst_302 : f32 to vector<8x8xf32>
    %771 = arith.mulf %769, %770 : vector<8x8xf32>
    %cst_303 = arith.constant dense<0xFF800000> : vector<8xf32>
    %772 = vector.multi_reduction <maximumf>, %771, %cst_303 [1] : vector<8x8xf32> to vector<8xf32>
    %773 = vector.shape_cast %772 : vector<8xf32> to vector<8x1xf32>
    %774 = vector.broadcast %773 : vector<8x1xf32> to vector<8x8xf32>
    %775 = arith.subf %771, %774 : vector<8x8xf32>
    %776 = math.exp %775 : vector<8x8xf32>
    %cst_304 = arith.constant dense<0.000000e+00> : vector<8xf32>
    %777 = vector.multi_reduction <add>, %776, %cst_304 [1] : vector<8x8xf32> to vector<8xf32>
    %778 = vector.shape_cast %777 : vector<8xf32> to vector<8x1xf32>
    %779 = tpu.reciprocal %778 {approx = true} : vector<8x1xf32> -> vector<8x1xf32>
    %780 = vector.broadcast %779 : vector<8x1xf32> to vector<8x8xf32>
    %781 = arith.mulf %776, %780 : vector<8x8xf32>
    %782 = arith.truncf %781 : vector<8x8xf32> to vector<8x8xbf16>
    %cst_305 = arith.constant dense<0.000000e+00> : vector<8x8xf32>
    %783 = tpu.matmul %782, %768, %cst_305 {dimension_numbers = #tpu.dot_dimension_numbers<[1], [0], [0], [1], [0, 0, 1, 1], [], []>} : vector<8x8xbf16>, vector<8x8xbf16>, vector<8x8xf32> -> vector<8x8xf32>
    %c0_306 = arith.constant 0 : index
    %c8_307 = arith.constant 8 : index
    %784 = vector.load %arg26[%c0_306, %c8_307] : memref<16x32xf32, #tpu.memory_space<vmem>>, vector<8x8xf32>
    tpu.vector_store %arg26[%c0_306, %c8_307], %783 {strides = array<i32>} : memref<16x32xf32, #tpu.memory_space<vmem>>, vector<8x8xf32>,
    %785 = vector.extract_strided_slice %730 {offsets = [0, 16], sizes = [8, 8], strides = [1, 1]} : vector<16x32xf32> to vector<8x8xf32>
    %786 = arith.truncf %785 : vector<8x8xf32> to vector<8x8xbf16>
    %787 = vector.extract_strided_slice %739 {offsets = [0, 16], sizes = [8, 8], strides = [1, 1]} : vector<16x32xf32> to vector<8x8xf32>
    %788 = arith.truncf %787 : vector<8x8xf32> to vector<8x8xbf16>
    %789 = vector.extract_strided_slice %740 {offsets = [0, 16], sizes = [8, 8], strides = [1, 1]} : vector<16x32xf32> to vector<8x8xf32>
    %790 = arith.truncf %789 : vector<8x8xf32> to vector<8x8xbf16>
    %cst_308 = arith.constant dense<0.000000e+00> : vector<8x8xf32>
    %791 = tpu.matmul %786, %788, %cst_308 {dimension_numbers = #tpu.dot_dimension_numbers<[1], [1], [0], [0], [0, 0, 1, 0], [], []>} : vector<8x8xbf16>, vector<8x8xbf16>, vector<8x8xf32> -> vector<8x8xf32>
    %cst_309 = arith.constant 0.353553385 : f32
    %792 = vector.broadcast %cst_309 : f32 to vector<8x8xf32>
    %793 = arith.mulf %791, %792 : vector<8x8xf32>
    %cst_310 = arith.constant dense<0xFF800000> : vector<8xf32>
    %794 = vector.multi_reduction <maximumf>, %793, %cst_310 [1] : vector<8x8xf32> to vector<8xf32>
    %795 = vector.shape_cast %794 : vector<8xf32> to vector<8x1xf32>
    %796 = vector.broadcast %795 : vector<8x1xf32> to vector<8x8xf32>
    %797 = arith.subf %793, %796 : vector<8x8xf32>
    %798 = math.exp %797 : vector<8x8xf32>
    %cst_311 = arith.constant dense<0.000000e+00> : vector<8xf32>
    %799 = vector.multi_reduction <add>, %798, %cst_311 [1] : vector<8x8xf32> to vector<8xf32>
    %800 = vector.shape_cast %799 : vector<8xf32> to vector<8x1xf32>
    %801 = tpu.reciprocal %800 {approx = true} : vector<8x1xf32> -> vector<8x1xf32>
    %802 = vector.broadcast %801 : vector<8x1xf32> to vector<8x8xf32>
    %803 = arith.mulf %798, %802 : vector<8x8xf32>
    %804 = arith.truncf %803 : vector<8x8xf32> to vector<8x8xbf16>
    %cst_312 = arith.constant dense<0.000000e+00> : vector<8x8xf32>
    %805 = tpu.matmul %804, %790, %cst_312 {dimension_numbers = #tpu.dot_dimension_numbers<[1], [0], [0], [1], [0, 0, 1, 1], [], []>} : vector<8x8xbf16>, vector<8x8xbf16>, vector<8x8xf32> -> vector<8x8xf32>
    %c0_313 = arith.constant 0 : index
    %c16_314 = arith.constant 16 : index
    %806 = vector.load %arg26[%c0_313, %c16_314] : memref<16x32xf32, #tpu.memory_space<vmem>>, vector<8x8xf32>
    tpu.vector_store %arg26[%c0_313, %c16_314], %805 {strides = array<i32>} : memref<16x32xf32, #tpu.memory_space<vmem>>, vector<8x8xf32>,
    %807 = vector.extract_strided_slice %730 {offsets = [0, 24], sizes = [8, 8], strides = [1, 1]} : vector<16x32xf32> to vector<8x8xf32>
    %808 = arith.truncf %807 : vector<8x8xf32> to vector<8x8xbf16>
    %809 = vector.extract_strided_slice %739 {offsets = [0, 24], sizes = [8, 8], strides = [1, 1]} : vector<16x32xf32> to vector<8x8xf32>
    %810 = arith.truncf %809 : vector<8x8xf32> to vector<8x8xbf16>
    %811 = vector.extract_strided_slice %740 {offsets = [0, 24], sizes = [8, 8], strides = [1, 1]} : vector<16x32xf32> to vector<8x8xf32>
    %812 = arith.truncf %811 : vector<8x8xf32> to vector<8x8xbf16>
    %cst_315 = arith.constant dense<0.000000e+00> : vector<8x8xf32>
    %813 = tpu.matmul %808, %810, %cst_315 {dimension_numbers = #tpu.dot_dimension_numbers<[1], [1], [0], [0], [0, 0, 1, 0], [], []>} : vector<8x8xbf16>, vector<8x8xbf16>, vector<8x8xf32> -> vector<8x8xf32>
    %cst_316 = arith.constant 0.353553385 : f32
    %814 = vector.broadcast %cst_316 : f32 to vector<8x8xf32>
    %815 = arith.mulf %813, %814 : vector<8x8xf32>
    %cst_317 = arith.constant dense<0xFF800000> : vector<8xf32>
    %816 = vector.multi_reduction <maximumf>, %815, %cst_317 [1] : vector<8x8xf32> to vector<8xf32>
    %817 = vector.shape_cast %816 : vector<8xf32> to vector<8x1xf32>
    %818 = vector.broadcast %817 : vector<8x1xf32> to vector<8x8xf32>
    %819 = arith.subf %815, %818 : vector<8x8xf32>
    %820 = math.exp %819 : vector<8x8xf32>
    %cst_318 = arith.constant dense<0.000000e+00> : vector<8xf32>
    %821 = vector.multi_reduction <add>, %820, %cst_318 [1] : vector<8x8xf32> to vector<8xf32>
    %822 = vector.shape_cast %821 : vector<8xf32> to vector<8x1xf32>
    %823 = tpu.reciprocal %822 {approx = true} : vector<8x1xf32> -> vector<8x1xf32>
    %824 = vector.broadcast %823 : vector<8x1xf32> to vector<8x8xf32>
    %825 = arith.mulf %820, %824 : vector<8x8xf32>
    %826 = arith.truncf %825 : vector<8x8xf32> to vector<8x8xbf16>
    %cst_319 = arith.constant dense<0.000000e+00> : vector<8x8xf32>
    %827 = tpu.matmul %826, %812, %cst_319 {dimension_numbers = #tpu.dot_dimension_numbers<[1], [0], [0], [1], [0, 0, 1, 1], [], []>} : vector<8x8xbf16>, vector<8x8xbf16>, vector<8x8xf32> -> vector<8x8xf32>
    %c0_320 = arith.constant 0 : index
    %c24_321 = arith.constant 24 : index
    %828 = vector.load %arg26[%c0_320, %c24_321] : memref<16x32xf32, #tpu.memory_space<vmem>>, vector<8x8xf32>
    tpu.vector_store %arg26[%c0_320, %c24_321], %827 {strides = array<i32>} : memref<16x32xf32, #tpu.memory_space<vmem>>, vector<8x8xf32>,
    %829 = vector.extract_strided_slice %730 {offsets = [8, 0], sizes = [8, 8], strides = [1, 1]} : vector<16x32xf32> to vector<8x8xf32>
    %830 = arith.truncf %829 : vector<8x8xf32> to vector<8x8xbf16>
    %831 = vector.extract_strided_slice %739 {offsets = [8, 0], sizes = [8, 8], strides = [1, 1]} : vector<16x32xf32> to vector<8x8xf32>
    %832 = arith.truncf %831 : vector<8x8xf32> to vector<8x8xbf16>
    %833 = vector.extract_strided_slice %740 {offsets = [8, 0], sizes = [8, 8], strides = [1, 1]} : vector<16x32xf32> to vector<8x8xf32>
    %834 = arith.truncf %833 : vector<8x8xf32> to vector<8x8xbf16>
    %cst_322 = arith.constant dense<0.000000e+00> : vector<8x8xf32>
    %835 = tpu.matmul %830, %832, %cst_322 {dimension_numbers = #tpu.dot_dimension_numbers<[1], [1], [0], [0], [0, 0, 1, 0], [], []>} : vector<8x8xbf16>, vector<8x8xbf16>, vector<8x8xf32> -> vector<8x8xf32>
    %cst_323 = arith.constant 0.353553385 : f32
    %836 = vector.broadcast %cst_323 : f32 to vector<8x8xf32>
    %837 = arith.mulf %835, %836 : vector<8x8xf32>
    %cst_324 = arith.constant dense<0xFF800000> : vector<8xf32>
    %838 = vector.multi_reduction <maximumf>, %837, %cst_324 [1] : vector<8x8xf32> to vector<8xf32>
    %839 = vector.shape_cast %838 : vector<8xf32> to vector<8x1xf32>
    %840 = vector.broadcast %839 : vector<8x1xf32> to vector<8x8xf32>
    %841 = arith.subf %837, %840 : vector<8x8xf32>
    %842 = math.exp %841 : vector<8x8xf32>
    %cst_325 = arith.constant dense<0.000000e+00> : vector<8xf32>
    %843 = vector.multi_reduction <add>, %842, %cst_325 [1] : vector<8x8xf32> to vector<8xf32>
    %844 = vector.shape_cast %843 : vector<8xf32> to vector<8x1xf32>
    %845 = tpu.reciprocal %844 {approx = true} : vector<8x1xf32> -> vector<8x1xf32>
    %846 = vector.broadcast %845 : vector<8x1xf32> to vector<8x8xf32>
    %847 = arith.mulf %842, %846 : vector<8x8xf32>
    %848 = arith.truncf %847 : vector<8x8xf32> to vector<8x8xbf16>
    %cst_326 = arith.constant dense<0.000000e+00> : vector<8x8xf32>
    %849 = tpu.matmul %848, %834, %cst_326 {dimension_numbers = #tpu.dot_dimension_numbers<[1], [0], [0], [1], [0, 0, 1, 1], [], []>} : vector<8x8xbf16>, vector<8x8xbf16>, vector<8x8xf32> -> vector<8x8xf32>
    %c8_327 = arith.constant 8 : index
    %c0_328 = arith.constant 0 : index
    %850 = vector.load %arg26[%c8_327, %c0_328] : memref<16x32xf32, #tpu.memory_space<vmem>>, vector<8x8xf32>
    tpu.vector_store %arg26[%c8_327, %c0_328], %849 {strides = array<i32>} : memref<16x32xf32, #tpu.memory_space<vmem>>, vector<8x8xf32>,
    %851 = vector.extract_strided_slice %730 {offsets = [8, 8], sizes = [8, 8], strides = [1, 1]} : vector<16x32xf32> to vector<8x8xf32>
    %852 = arith.truncf %851 : vector<8x8xf32> to vector<8x8xbf16>
    %853 = vector.extract_strided_slice %739 {offsets = [8, 8], sizes = [8, 8], strides = [1, 1]} : vector<16x32xf32> to vector<8x8xf32>
    %854 = arith.truncf %853 : vector<8x8xf32> to vector<8x8xbf16>
    %855 = vector.extract_strided_slice %740 {offsets = [8, 8], sizes = [8, 8], strides = [1, 1]} : vector<16x32xf32> to vector<8x8xf32>
    %856 = arith.truncf %855 : vector<8x8xf32> to vector<8x8xbf16>
    %cst_329 = arith.constant dense<0.000000e+00> : vector<8x8xf32>
    %857 = tpu.matmul %852, %854, %cst_329 {dimension_numbers = #tpu.dot_dimension_numbers<[1], [1], [0], [0], [0, 0, 1, 0], [], []>} : vector<8x8xbf16>, vector<8x8xbf16>, vector<8x8xf32> -> vector<8x8xf32>
    %cst_330 = arith.constant 0.353553385 : f32
    %858 = vector.broadcast %cst_330 : f32 to vector<8x8xf32>
    %859 = arith.mulf %857, %858 : vector<8x8xf32>
    %cst_331 = arith.constant dense<0xFF800000> : vector<8xf32>
    %860 = vector.multi_reduction <maximumf>, %859, %cst_331 [1] : vector<8x8xf32> to vector<8xf32>
    %861 = vector.shape_cast %860 : vector<8xf32> to vector<8x1xf32>
    %862 = vector.broadcast %861 : vector<8x1xf32> to vector<8x8xf32>
    %863 = arith.subf %859, %862 : vector<8x8xf32>
    %864 = math.exp %863 : vector<8x8xf32>
    %cst_332 = arith.constant dense<0.000000e+00> : vector<8xf32>
    %865 = vector.multi_reduction <add>, %864, %cst_332 [1] : vector<8x8xf32> to vector<8xf32>
    %866 = vector.shape_cast %865 : vector<8xf32> to vector<8x1xf32>
    %867 = tpu.reciprocal %866 {approx = true} : vector<8x1xf32> -> vector<8x1xf32>
    %868 = vector.broadcast %867 : vector<8x1xf32> to vector<8x8xf32>
    %869 = arith.mulf %864, %868 : vector<8x8xf32>
    %870 = arith.truncf %869 : vector<8x8xf32> to vector<8x8xbf16>
    %cst_333 = arith.constant dense<0.000000e+00> : vector<8x8xf32>
    %871 = tpu.matmul %870, %856, %cst_333 {dimension_numbers = #tpu.dot_dimension_numbers<[1], [0], [0], [1], [0, 0, 1, 1], [], []>} : vector<8x8xbf16>, vector<8x8xbf16>, vector<8x8xf32> -> vector<8x8xf32>
    %c8_334 = arith.constant 8 : index
    %c8_335 = arith.constant 8 : index
    %872 = vector.load %arg26[%c8_334, %c8_335] : memref<16x32xf32, #tpu.memory_space<vmem>>, vector<8x8xf32>
    tpu.vector_store %arg26[%c8_334, %c8_335], %871 {strides = array<i32>} : memref<16x32xf32, #tpu.memory_space<vmem>>, vector<8x8xf32>,
    %873 = vector.extract_strided_slice %730 {offsets = [8, 16], sizes = [8, 8], strides = [1, 1]} : vector<16x32xf32> to vector<8x8xf32>
    %874 = arith.truncf %873 : vector<8x8xf32> to vector<8x8xbf16>
    %875 = vector.extract_strided_slice %739 {offsets = [8, 16], sizes = [8, 8], strides = [1, 1]} : vector<16x32xf32> to vector<8x8xf32>
    %876 = arith.truncf %875 : vector<8x8xf32> to vector<8x8xbf16>
    %877 = vector.extract_strided_slice %740 {offsets = [8, 16], sizes = [8, 8], strides = [1, 1]} : vector<16x32xf32> to vector<8x8xf32>
    %878 = arith.truncf %877 : vector<8x8xf32> to vector<8x8xbf16>
    %cst_336 = arith.constant dense<0.000000e+00> : vector<8x8xf32>
    %879 = tpu.matmul %874, %876, %cst_336 {dimension_numbers = #tpu.dot_dimension_numbers<[1], [1], [0], [0], [0, 0, 1, 0], [], []>} : vector<8x8xbf16>, vector<8x8xbf16>, vector<8x8xf32> -> vector<8x8xf32>
    %cst_337 = arith.constant 0.353553385 : f32
    %880 = vector.broadcast %cst_337 : f32 to vector<8x8xf32>
    %881 = arith.mulf %879, %880 : vector<8x8xf32>
    %cst_338 = arith.constant dense<0xFF800000> : vector<8xf32>
    %882 = vector.multi_reduction <maximumf>, %881, %cst_338 [1] : vector<8x8xf32> to vector<8xf32>
    %883 = vector.shape_cast %882 : vector<8xf32> to vector<8x1xf32>
    %884 = vector.broadcast %883 : vector<8x1xf32> to vector<8x8xf32>
    %885 = arith.subf %881, %884 : vector<8x8xf32>
    %886 = math.exp %885 : vector<8x8xf32>
    %cst_339 = arith.constant dense<0.000000e+00> : vector<8xf32>
    %887 = vector.multi_reduction <add>, %886, %cst_339 [1] : vector<8x8xf32> to vector<8xf32>
    %888 = vector.shape_cast %887 : vector<8xf32> to vector<8x1xf32>
    %889 = tpu.reciprocal %888 {approx = true} : vector<8x1xf32> -> vector<8x1xf32>
    %890 = vector.broadcast %889 : vector<8x1xf32> to vector<8x8xf32>
    %891 = arith.mulf %886, %890 : vector<8x8xf32>
    %892 = arith.truncf %891 : vector<8x8xf32> to vector<8x8xbf16>
    %cst_340 = arith.constant dense<0.000000e+00> : vector<8x8xf32>
    %893 = tpu.matmul %892, %878, %cst_340 {dimension_numbers = #tpu.dot_dimension_numbers<[1], [0], [0], [1], [0, 0, 1, 1], [], []>} : vector<8x8xbf16>, vector<8x8xbf16>, vector<8x8xf32> -> vector<8x8xf32>
    %c8_341 = arith.constant 8 : index
    %c16_342 = arith.constant 16 : index
    %894 = vector.load %arg26[%c8_341, %c16_342] : memref<16x32xf32, #tpu.memory_space<vmem>>, vector<8x8xf32>
    tpu.vector_store %arg26[%c8_341, %c16_342], %893 {strides = array<i32>} : memref<16x32xf32, #tpu.memory_space<vmem>>, vector<8x8xf32>,
    %895 = vector.extract_strided_slice %730 {offsets = [8, 24], sizes = [8, 8], strides = [1, 1]} : vector<16x32xf32> to vector<8x8xf32>
    %896 = arith.truncf %895 : vector<8x8xf32> to vector<8x8xbf16>
    %897 = vector.extract_strided_slice %739 {offsets = [8, 24], sizes = [8, 8], strides = [1, 1]} : vector<16x32xf32> to vector<8x8xf32>
    %898 = arith.truncf %897 : vector<8x8xf32> to vector<8x8xbf16>
    %899 = vector.extract_strided_slice %740 {offsets = [8, 24], sizes = [8, 8], strides = [1, 1]} : vector<16x32xf32> to vector<8x8xf32>
    %900 = arith.truncf %899 : vector<8x8xf32> to vector<8x8xbf16>
    %cst_343 = arith.constant dense<0.000000e+00> : vector<8x8xf32>
    %901 = tpu.matmul %896, %898, %cst_343 {dimension_numbers = #tpu.dot_dimension_numbers<[1], [1], [0], [0], [0, 0, 1, 0], [], []>} : vector<8x8xbf16>, vector<8x8xbf16>, vector<8x8xf32> -> vector<8x8xf32>
    %cst_344 = arith.constant 0.353553385 : f32
    %902 = vector.broadcast %cst_344 : f32 to vector<8x8xf32>
    %903 = arith.mulf %901, %902 : vector<8x8xf32>
    %cst_345 = arith.constant dense<0xFF800000> : vector<8xf32>
    %904 = vector.multi_reduction <maximumf>, %903, %cst_345 [1] : vector<8x8xf32> to vector<8xf32>
    %905 = vector.shape_cast %904 : vector<8xf32> to vector<8x1xf32>
    %906 = vector.broadcast %905 : vector<8x1xf32> to vector<8x8xf32>
    %907 = arith.subf %903, %906 : vector<8x8xf32>
    %908 = math.exp %907 : vector<8x8xf32>
    %cst_346 = arith.constant dense<0.000000e+00> : vector<8xf32>
    %909 = vector.multi_reduction <add>, %908, %cst_346 [1] : vector<8x8xf32> to vector<8xf32>
    %910 = vector.shape_cast %909 : vector<8xf32> to vector<8x1xf32>
    %911 = tpu.reciprocal %910 {approx = true} : vector<8x1xf32> -> vector<8x1xf32>
    %912 = vector.broadcast %911 : vector<8x1xf32> to vector<8x8xf32>
    %913 = arith.mulf %908, %912 : vector<8x8xf32>
    %914 = arith.truncf %913 : vector<8x8xf32> to vector<8x8xbf16>
    %cst_347 = arith.constant dense<0.000000e+00> : vector<8x8xf32>
    %915 = tpu.matmul %914, %900, %cst_347 {dimension_numbers = #tpu.dot_dimension_numbers<[1], [0], [0], [1], [0, 0, 1, 1], [], []>} : vector<8x8xbf16>, vector<8x8xbf16>, vector<8x8xf32> -> vector<8x8xf32>
    %c8_348 = arith.constant 8 : index
    %c24_349 = arith.constant 24 : index
    %916 = vector.load %arg26[%c8_348, %c24_349] : memref<16x32xf32, #tpu.memory_space<vmem>>, vector<8x8xf32>
    tpu.vector_store %arg26[%c8_348, %c24_349], %915 {strides = array<i32>} : memref<16x32xf32, #tpu.memory_space<vmem>>, vector<8x8xf32>,
    %c0_350 = arith.constant 0 : index
    %c0_351 = arith.constant 0 : index
    %917 = vector.load %arg26[%c0_350, %c0_351] : memref<16x32xf32, #tpu.memory_space<vmem>>, vector<16x32xf32>
    %918 = arith.truncf %917 : vector<16x32xf32> to vector<16x32xbf16>
    %c1_352 = arith.constant 1 : index
    %c0_353 = arith.constant 0 : index
    %c0_354 = arith.constant 0 : index
    %919 = vector.load %arg11[%c1_352, %c0_353, %c0_354] : memref<2x32x32xbf16, #tpu.memory_space<vmem>>, vector<1x32x32xbf16>
    %920 = vector.shape_cast %919 : vector<1x32x32xbf16> to vector<32x32xbf16>
    %cst_355 = arith.constant dense<0.000000e+00> : vector<16x32xf32>
    %921 = tpu.matmul %918, %920, %cst_355 {dimension_numbers = #tpu.dot_dimension_numbers<[1], [0], [0], [1], [0, 0, 1, 1], [], []>} : vector<16x32xbf16>, vector<32x32xbf16>, vector<16x32xf32> -> vector<16x32xf32>
    %c1_356 = arith.constant 1 : index
    %c0_357 = arith.constant 0 : index
    %c0_358 = arith.constant 0 : index
    %922 = vector.load %arg12[%c1_356, %c0_357, %c0_358] : memref<2x1x32xf32, #tpu.memory_space<vmem>>, vector<1x1x32xf32>
    %923 = vector.shape_cast %922 : vector<1x1x32xf32> to vector<1x32xf32>
    %924 = vector.broadcast %923 : vector<1x32xf32> to vector<16x32xf32>
    %925 = arith.addf %921, %924 : vector<16x32xf32>
    %926 = arith.addf %722, %925 : vector<16x32xf32>
    %c1_359 = arith.constant 1 : index
    %c0_360 = arith.constant 0 : index
    %c0_361 = arith.constant 0 : index
    %927 = vector.load %arg15[%c1_359, %c0_360, %c0_361] : memref<2x1x32xf32, #tpu.memory_space<vmem>>, vector<1x1x32xf32>
    %928 = vector.shape_cast %927 : vector<1x1x32xf32> to vector<1x32xf32>
    %c1_362 = arith.constant 1 : index
    %c0_363 = arith.constant 0 : index
    %c0_364 = arith.constant 0 : index
    %929 = vector.load %arg16[%c1_362, %c0_363, %c0_364] : memref<2x1x32xf32, #tpu.memory_space<vmem>>, vector<1x1x32xf32>
    %930 = vector.shape_cast %929 : vector<1x1x32xf32> to vector<1x32xf32>
    %cst_365 = arith.constant dense<0.000000e+00> : vector<16xf32>
    %931 = vector.multi_reduction <add>, %926, %cst_365 [1] : vector<16x32xf32> to vector<16xf32>
    %932 = vector.shape_cast %931 : vector<16xf32> to vector<16x1xf32>
    %cst_366 = arith.constant 3.200000e+01 : f32
    %933 = vector.broadcast %cst_366 : f32 to vector<16x1xf32>
    %934 = arith.divf %932, %933 : vector<16x1xf32>
    %935 = arith.mulf %926, %926 : vector<16x32xf32>
    %cst_367 = arith.constant dense<0.000000e+00> : vector<16xf32>
    %936 = vector.multi_reduction <add>, %935, %cst_367 [1] : vector<16x32xf32> to vector<16xf32>
    %937 = vector.shape_cast %936 : vector<16xf32> to vector<16x1xf32>
    %cst_368 = arith.constant 3.200000e+01 : f32
    %938 = vector.broadcast %cst_368 : f32 to vector<16x1xf32>
    %939 = arith.divf %937, %938 : vector<16x1xf32>
    %940 = arith.mulf %934, %934 : vector<16x1xf32>
    %941 = arith.subf %939, %940 : vector<16x1xf32>
    %942 = vector.broadcast %934 : vector<16x1xf32> to vector<16x32xf32>
    %943 = arith.subf %926, %942 : vector<16x32xf32>
    %cst_369 = arith.constant 9.99999974E-6 : f32
    %944 = vector.broadcast %cst_369 : f32 to vector<16x1xf32>
    %945 = arith.addf %941, %944 : vector<16x1xf32>
    %946 = math.rsqrt %945 : vector<16x1xf32>
    %947 = vector.broadcast %946 : vector<16x1xf32> to vector<16x32xf32>
    %948 = arith.mulf %943, %947 : vector<16x32xf32>
    %949 = vector.broadcast %928 : vector<1x32xf32> to vector<16x32xf32>
    %950 = arith.mulf %948, %949 : vector<16x32xf32>
    %951 = vector.broadcast %930 : vector<1x32xf32> to vector<16x32xf32>
    %952 = arith.addf %950, %951 : vector<16x32xf32>
    %953 = arith.truncf %952 : vector<16x32xf32> to vector<16x32xbf16>
    %c1_370 = arith.constant 1 : index
    %c0_371 = arith.constant 0 : index
    %c0_372 = arith.constant 0 : index
    %954 = vector.load %arg19[%c1_370, %c0_371, %c0_372] : memref<2x32x64xbf16, #tpu.memory_space<vmem>>, vector<1x32x64xbf16>
    %955 = vector.shape_cast %954 : vector<1x32x64xbf16> to vector<32x64xbf16>
    %cst_373 = arith.constant dense<0.000000e+00> : vector<16x64xf32>
    %956 = tpu.matmul %953, %955, %cst_373 {dimension_numbers = #tpu.dot_dimension_numbers<[1], [0], [0], [1], [0, 0, 1, 1], [], []>} : vector<16x32xbf16>, vector<32x64xbf16>, vector<16x64xf32> -> vector<16x64xf32>
    %c1_374 = arith.constant 1 : index
    %c0_375 = arith.constant 0 : index
    %c0_376 = arith.constant 0 : index
    %957 = vector.load %arg20[%c1_374, %c0_375, %c0_376] : memref<2x1x64xf32, #tpu.memory_space<vmem>>, vector<1x1x64xf32>
    %958 = vector.shape_cast %957 : vector<1x1x64xf32> to vector<1x64xf32>
    %959 = vector.broadcast %958 : vector<1x64xf32> to vector<16x64xf32>
    %960 = arith.addf %956, %959 : vector<16x64xf32>
    %cst_377 = arith.constant 0.000000e+00 : f32
    %961 = vector.broadcast %cst_377 : f32 to vector<16x64xf32>
    %962 = arith.maximumf %960, %961 : vector<16x64xf32>
    %963 = arith.truncf %962 : vector<16x64xf32> to vector<16x64xbf16>
    %c1_378 = arith.constant 1 : index
    %c0_379 = arith.constant 0 : index
    %c0_380 = arith.constant 0 : index
    %964 = vector.load %arg21[%c1_378, %c0_379, %c0_380] : memref<2x64x32xbf16, #tpu.memory_space<vmem>>, vector<1x64x32xbf16>
    %965 = vector.shape_cast %964 : vector<1x64x32xbf16> to vector<64x32xbf16>
    %cst_381 = arith.constant dense<0.000000e+00> : vector<16x32xf32>
    %966 = tpu.matmul %963, %965, %cst_381 {dimension_numbers = #tpu.dot_dimension_numbers<[1], [0], [0], [1], [0, 0, 1, 1], [], []>} : vector<16x64xbf16>, vector<64x32xbf16>, vector<16x32xf32> -> vector<16x32xf32>
    %c1_382 = arith.constant 1 : index
    %c0_383 = arith.constant 0 : index
    %c0_384 = arith.constant 0 : index
    %967 = vector.load %arg22[%c1_382, %c0_383, %c0_384] : memref<2x1x32xf32, #tpu.memory_space<vmem>>, vector<1x1x32xf32>
    %968 = vector.shape_cast %967 : vector<1x1x32xf32> to vector<1x32xf32>
    %969 = vector.broadcast %968 : vector<1x32xf32> to vector<16x32xf32>
    %970 = arith.addf %966, %969 : vector<16x32xf32>
    %971 = arith.addf %952, %970 : vector<16x32xf32>
    %c1_385 = arith.constant 1 : index
    %c0_386 = arith.constant 0 : index
    %c0_387 = arith.constant 0 : index
    %972 = vector.load %arg17[%c1_385, %c0_386, %c0_387] : memref<2x1x32xf32, #tpu.memory_space<vmem>>, vector<1x1x32xf32>
    %973 = vector.shape_cast %972 : vector<1x1x32xf32> to vector<1x32xf32>
    %c1_388 = arith.constant 1 : index
    %c0_389 = arith.constant 0 : index
    %c0_390 = arith.constant 0 : index
    %974 = vector.load %arg18[%c1_388, %c0_389, %c0_390] : memref<2x1x32xf32, #tpu.memory_space<vmem>>, vector<1x1x32xf32>
    %975 = vector.shape_cast %974 : vector<1x1x32xf32> to vector<1x32xf32>
    %cst_391 = arith.constant dense<0.000000e+00> : vector<16xf32>
    %976 = vector.multi_reduction <add>, %971, %cst_391 [1] : vector<16x32xf32> to vector<16xf32>
    %977 = vector.shape_cast %976 : vector<16xf32> to vector<16x1xf32>
    %cst_392 = arith.constant 3.200000e+01 : f32
    %978 = vector.broadcast %cst_392 : f32 to vector<16x1xf32>
    %979 = arith.divf %977, %978 : vector<16x1xf32>
    %980 = arith.mulf %971, %971 : vector<16x32xf32>
    %cst_393 = arith.constant dense<0.000000e+00> : vector<16xf32>
    %981 = vector.multi_reduction <add>, %980, %cst_393 [1] : vector<16x32xf32> to vector<16xf32>
    %982 = vector.shape_cast %981 : vector<16xf32> to vector<16x1xf32>
    %cst_394 = arith.constant 3.200000e+01 : f32
    %983 = vector.broadcast %cst_394 : f32 to vector<16x1xf32>
    %984 = arith.divf %982, %983 : vector<16x1xf32>
    %985 = arith.mulf %979, %979 : vector<16x1xf32>
    %986 = arith.subf %984, %985 : vector<16x1xf32>
    %987 = vector.broadcast %979 : vector<16x1xf32> to vector<16x32xf32>
    %988 = arith.subf %971, %987 : vector<16x32xf32>
    %cst_395 = arith.constant 9.99999974E-6 : f32
    %989 = vector.broadcast %cst_395 : f32 to vector<16x1xf32>
    %990 = arith.addf %986, %989 : vector<16x1xf32>
    %991 = math.rsqrt %990 : vector<16x1xf32>
    %992 = vector.broadcast %991 : vector<16x1xf32> to vector<16x32xf32>
    %993 = arith.mulf %988, %992 : vector<16x32xf32>
    %994 = vector.broadcast %973 : vector<1x32xf32> to vector<16x32xf32>
    %995 = arith.mulf %993, %994 : vector<16x32xf32>
    %996 = vector.broadcast %975 : vector<1x32xf32> to vector<16x32xf32>
    %997 = arith.addf %995, %996 : vector<16x32xf32>
    %c0_396 = arith.constant 0 : index
    %c0_397 = arith.constant 0 : index
    %998 = vector.load %arg23[%c0_396, %c0_397] : memref<32x128xf32, #tpu.memory_space<vmem>>, vector<32x128xf32>
    %cst_398 = arith.constant dense<0.000000e+00> : vector<16x128xf32>
    %999 = tpu.matmul %997, %998, %cst_398 {dimension_numbers = #tpu.dot_dimension_numbers<[1], [0], [0], [1], [0, 0, 1, 1], [], []>} : vector<16x32xf32>, vector<32x128xf32>, vector<16x128xf32> -> vector<16x128xf32>
    %c0_399 = arith.constant 0 : index
    %c0_400 = arith.constant 0 : index
    %1000 = vector.load %arg24[%c0_399, %c0_400] : memref<1x128xf32, #tpu.memory_space<vmem>>, vector<1x128xf32>
    %1001 = vector.broadcast %1000 : vector<1x128xf32> to vector<16x128xf32>
    %1002 = arith.addf %999, %1001 : vector<16x128xf32>
    %c0_401 = arith.constant 0 : index
    %c0_402 = arith.constant 0 : index
    %1003 = vector.load %arg25[%c0_401, %c0_402] : memref<16x128xf32, #tpu.memory_space<vmem>>, vector<16x128xf32>
    tpu.vector_store %arg25[%c0_401, %c0_402], %1002 {strides = array<i32>} : memref<16x128xf32, #tpu.memory_space<vmem>>, vector<16x128xf32>,
    return
  }
  func.func @transform_0(%arg0: i32) -> (i32, i32) {
    %c0_i32 = arith.constant 0 : i32
    %c0_i32_0 = arith.constant 0 : i32
    return %arg0, %c0_i32 : i32, i32
  }
  func.func @transform_1(%arg0: i32) -> (i32, i32) {
    %c0_i32 = arith.constant 0 : i32
    %c0_i32_0 = arith.constant 0 : i32
    return %arg0, %c0_i32 : i32, i32
  }
  func.func @transform_2(%arg0: i32) -> (i32, i32, i32) {
    %c0_i32 = arith.constant 0 : i32
    %c0_i32_0 = arith.constant 0 : i32
    %c0_i32_1 = arith.constant 0 : i32
    %c0_i32_2 = arith.constant 0 : i32
    return %c0_i32, %c0_i32_0, %c0_i32_1 : i32, i32, i32
  }
  func.func @transform_3(%arg0: i32) -> (i32, i32, i32) {
    %c0_i32 = arith.constant 0 : i32
    %c0_i32_0 = arith.constant 0 : i32
    %c0_i32_1 = arith.constant 0 : i32
    %c0_i32_2 = arith.constant 0 : i32
    return %c0_i32, %c0_i32_0, %c0_i32_1 : i32, i32, i32
  }
  func.func @transform_4(%arg0: i32) -> (i32, i32, i32) {
    %c0_i32 = arith.constant 0 : i32
    %c0_i32_0 = arith.constant 0 : i32
    %c0_i32_1 = arith.constant 0 : i32
    %c0_i32_2 = arith.constant 0 : i32
    return %c0_i32, %c0_i32_0, %c0_i32_1 : i32, i32, i32
  }
  func.func @transform_5(%arg0: i32) -> (i32, i32, i32) {
    %c0_i32 = arith.constant 0 : i32
    %c0_i32_0 = arith.constant 0 : i32
    %c0_i32_1 = arith.constant 0 : i32
    %c0_i32_2 = arith.constant 0 : i32
    return %c0_i32, %c0_i32_0, %c0_i32_1 : i32, i32, i32
  }
  func.func @transform_6(%arg0: i32) -> (i32, i32, i32) {
    %c0_i32 = arith.constant 0 : i32
    %c0_i32_0 = arith.constant 0 : i32
    %c0_i32_1 = arith.constant 0 : i32
    %c0_i32_2 = arith.constant 0 : i32
    return %c0_i32, %c0_i32_0, %c0_i32_1 : i32, i32, i32
  }
  func.func @transform_7(%arg0: i32) -> (i32, i32, i32) {
    %c0_i32 = arith.constant 0 : i32
    %c0_i32_0 = arith.constant 0 : i32
    %c0_i32_1 = arith.constant 0 : i32
    %c0_i32_2 = arith.constant 0 : i32
    return %c0_i32, %c0_i32_0, %c0_i32_1 : i32, i32, i32
  }
  func.func @transform_8(%arg0: i32) -> (i32, i32, i32) {
    %c0_i32 = arith.constant 0 : i32
    %c0_i32_0 = arith.constant 0 : i32
    %c0_i32_1 = arith.constant 0 : i32
    %c0_i32_2 = arith.constant 0 : i32
    return %c0_i32, %c0_i32_0, %c0_i32_1 : i32, i32, i32
  }
  func.func @transform_9(%arg0: i32) -> (i32, i32, i32) {
    %c0_i32 = arith.constant 0 : i32
    %c0_i32_0 = arith.constant 0 : i32
    %c0_i32_1 = arith.constant 0 : i32
    %c0_i32_2 = arith.constant 0 : i32
    return %c0_i32, %c0_i32_0, %c0_i32_1 : i32, i32, i32
  }
  func.func @transform_10(%arg0: i32) -> (i32, i32, i32) {
    %c0_i32 = arith.constant 0 : i32
    %c0_i32_0 = arith.constant 0 : i32
    %c0_i32_1 = arith.constant 0 : i32
    %c0_i32_2 = arith.constant 0 : i32
    return %c0_i32, %c0_i32_0, %c0_i32_1 : i32, i32, i32
  }
  func.func @transform_11(%arg0: i32) -> (i32, i32, i32) {
    %c0_i32 = arith.constant 0 : i32
    %c0_i32_0 = arith.constant 0 : i32
    %c0_i32_1 = arith.constant 0 : i32
    %c0_i32_2 = arith.constant 0 : i32
    return %c0_i32, %c0_i32_0, %c0_i32_1 : i32, i32, i32
  }
  func.func @transform_12(%arg0: i32) -> (i32, i32, i32) {
    %c0_i32 = arith.constant 0 : i32
    %c0_i32_0 = arith.constant 0 : i32
    %c0_i32_1 = arith.constant 0 : i32
    %c0_i32_2 = arith.constant 0 : i32
    return %c0_i32, %c0_i32_0, %c0_i32_1 : i32, i32, i32
  }
  func.func @transform_13(%arg0: i32) -> (i32, i32, i32) {
    %c0_i32 = arith.constant 0 : i32
    %c0_i32_0 = arith.constant 0 : i32
    %c0_i32_1 = arith.constant 0 : i32
    %c0_i32_2 = arith.constant 0 : i32
    return %c0_i32, %c0_i32_0, %c0_i32_1 : i32, i32, i32
  }
  func.func @transform_14(%arg0: i32) -> (i32, i32, i32) {
    %c0_i32 = arith.constant 0 : i32
    %c0_i32_0 = arith.constant 0 : i32
    %c0_i32_1 = arith.constant 0 : i32
    %c0_i32_2 = arith.constant 0 : i32
    return %c0_i32, %c0_i32_0, %c0_i32_1 : i32, i32, i32
  }
  func.func @transform_15(%arg0: i32) -> (i32, i32, i32) {
    %c0_i32 = arith.constant 0 : i32
    %c0_i32_0 = arith.constant 0 : i32
    %c0_i32_1 = arith.constant 0 : i32
    %c0_i32_2 = arith.constant 0 : i32
    return %c0_i32, %c0_i32_0, %c0_i32_1 : i32, i32, i32
  }
  func.func @transform_16(%arg0: i32) -> (i32, i32, i32) {
    %c0_i32 = arith.constant 0 : i32
    %c0_i32_0 = arith.constant 0 : i32
    %c0_i32_1 = arith.constant 0 : i32
    %c0_i32_2 = arith.constant 0 : i32
    return %c0_i32, %c0_i32_0, %c0_i32_1 : i32, i32, i32
  }
  func.func @transform_17(%arg0: i32) -> (i32, i32, i32) {
    %c0_i32 = arith.constant 0 : i32
    %c0_i32_0 = arith.constant 0 : i32
    %c0_i32_1 = arith.constant 0 : i32
    %c0_i32_2 = arith.constant 0 : i32
    return %c0_i32, %c0_i32_0, %c0_i32_1 : i32, i32, i32
  }
  func.func @transform_18(%arg0: i32) -> (i32, i32, i32) {
    %c0_i32 = arith.constant 0 : i32
    %c0_i32_0 = arith.constant 0 : i32
    %c0_i32_1 = arith.constant 0 : i32
    %c0_i32_2 = arith.constant 0 : i32
    return %c0_i32, %c0_i32_0, %c0_i32_1 : i32, i32, i32
  }
  func.func @transform_19(%arg0: i32) -> (i32, i32, i32) {
    %c0_i32 = arith.constant 0 : i32
    %c0_i32_0 = arith.constant 0 : i32
    %c0_i32_1 = arith.constant 0 : i32
    %c0_i32_2 = arith.constant 0 : i32
    return %c0_i32, %c0_i32_0, %c0_i32_1 : i32, i32, i32
  }
  func.func @transform_20(%arg0: i32) -> (i32, i32, i32) {
    %c0_i32 = arith.constant 0 : i32
    %c0_i32_0 = arith.constant 0 : i32
    %c0_i32_1 = arith.constant 0 : i32
    %c0_i32_2 = arith.constant 0 : i32
    return %c0_i32, %c0_i32_0, %c0_i32_1 : i32, i32, i32
  }
  func.func @transform_21(%arg0: i32) -> (i32, i32, i32) {
    %c0_i32 = arith.constant 0 : i32
    %c0_i32_0 = arith.constant 0 : i32
    %c0_i32_1 = arith.constant 0 : i32
    %c0_i32_2 = arith.constant 0 : i32
    return %c0_i32, %c0_i32_0, %c0_i32_1 : i32, i32, i32
  }
  func.func @transform_22(%arg0: i32) -> (i32, i32) {
    %c0_i32 = arith.constant 0 : i32
    %c0_i32_0 = arith.constant 0 : i32
    %c0_i32_1 = arith.constant 0 : i32
    return %c0_i32, %c0_i32_0 : i32, i32
  }
  func.func @transform_23(%arg0: i32) -> (i32, i32) {
    %c0_i32 = arith.constant 0 : i32
    %c0_i32_0 = arith.constant 0 : i32
    %c0_i32_1 = arith.constant 0 : i32
    return %c0_i32, %c0_i32_0 : i32, i32
  }
  func.func @transform_24(%arg0: i32) -> (i32, i32) {
    %c0_i32 = arith.constant 0 : i32
    %c0_i32_0 = arith.constant 0 : i32
    return %arg0, %c0_i32 : i32, i32
  }
}

</mosaic_0001>

<bundles_post_ra>
// kernel: dnri_dynamicvars_decoder_forward.1
= control target key start
LH: loop header
LB: loop body
LE: loop exit
PB: predicated region body
PF: predicated region fallthrough
CT: control target
= control target key end

     0   :  { %v6267_v0 = vmov 0.0   ;;  %vm6268_vm0 = vmmov 0   ;;  %vm106_vm1 = vcmask 261120   ;;  %s7577_s26 = smov 88   ;;  %s7565_s28 = smov 72   ;;  %vm155_vm2 = vcmask 64512   ;;  %s7523_s2 = inlined_call_operand.vmem [shape: bf16[2,32,96], index: 2, kind: input, shape index: {}]   ;;  %s7524_s0 = inlined_call_operand.vmem [shape: f32[16,32], index: 0, kind: input, shape index: {}]   ;;  %s7525_s3 = inlined_call_operand.vmem [shape: f32[2,1,96], index: 3, kind: input, shape index: {}]   ;;  %s7526_s4 = inlined_call_operand.vmem [shape: bf16[2,32,32], index: 4, kind: input, shape index: {}]   ;;  %s7527_s5 = inlined_call_operand.vmem [shape: f32[2,1,32], index: 5, kind: input, shape index: {}]   ;;  %s7528_s8 = inlined_call_operand.vmem [shape: bf16[2,32,64], index: 8, kind: input, shape index: {}]   ;;  %s7529_s1 = inlined_call_operand.vmem [shape: f32[16,32], index: 1, kind: input, shape index: {}]   ;;  %s7530_s6 = inlined_call_operand.vmem [shape: bf16[2,32,32], index: 6, kind: input, shape index: {}]   ;;  %s7531_s12 = inlined_call_operand.vmem [shape: f32[2,1,32], index: 12, kind: input, shape index: {}]   ;;  %s7532_s13 = inlined_call_operand.vmem [shape: f32[2,1,32], index: 13, kind: input, shape index: {}]   ;;  %s7533_s9 = inlined_call_operand.vmem [shape: f32[2,1,64], index: 9, kind: input, shape index: {}]   ;;  %s7534_s7 = inlined_call_operand.vmem [shape: f32[2,1,32], index: 7, kind: input, shape index: {}]   ;;  %s7535_s10 = inlined_call_operand.vmem [shape: bf16[2,32,32], index: 10, kind: input, shape index: {}]   ;;  %s7536_s11 = inlined_call_operand.vmem [shape: f32[2,1,32], index: 11, kind: input, shape index: {}]   ;;  %s7537_s18 = inlined_call_operand.vmem [shape: bf16[2,32,64], index: 18, kind: input, shape index: {}]   ;;  %s7538_s20 = inlined_call_operand.vmem [shape: bf16[2,64,32], index: 20, kind: input, shape index: {}]   ;;  %s7539_s14 = inlined_call_operand.vmem [shape: f32[2,1,32], index: 14, kind: input, shape index: {}]   ;;  %s7540_s15 = inlined_call_operand.vmem [shape: f32[2,1,32], index: 15, kind: input, shape index: {}]   ;;  %s7541_s19 = inlined_call_operand.vmem [shape: f32[2,1,64], index: 19, kind: input, shape index: {}]   ;;  %s7542_s21 = inlined_call_operand.vmem [shape: f32[2,1,32], index: 21, kind: input, shape index: {}]   ;;  %s7543_s16 = inlined_call_operand.vmem [shape: f32[2,1,32], index: 16, kind: input, shape index: {}]   ;;  %s7544_s17 = inlined_call_operand.vmem [shape: f32[2,1,32], index: 17, kind: input, shape index: {}]   ;;  %s7545_s22 = inlined_call_operand.vmem [shape: f32[32,128], index: 22, kind: input, shape index: {}]   ;;  %s7546_s23 = inlined_call_operand.vmem [shape: f32[1,128], index: 23, kind: input, shape index: {}]   ;;  %s7547_s24 = inlined_call_operand.vmem [shape: f32[16,128], index: 24, kind: output, shape index: {}]  }
   0x1   :  { %7593 = sst [smem:[#allocation3_spill]] %s7523_s2  ;;  %5544 = vmatprep.subr.bf16.mxu1 %v6267_v0  ;;  %5548 = vmatprep.mubr.msk.bf16.mxu1 %vm6268_vm0, %v6267_v0  ;;  %s7563_s29 = smov 56   ;;  %vm220_vm3 = vcmask 1043456   ;;  %vm380_vm4 = vcmask 130112   ;;  %vm497_vm5 = vcmask 195712   ;;  %vm614_vm6 = vcmask 261312  }
   0x2   :  { %7594 = sst [smem:[#allocation4_spill]] %s7524_s0  ;;  %s7610_s27 = sld [smem:[#allocation3_spill]]  ;;  %5558 = vmatprep.subr.bf16.mxu0 %v6267_v0  ;;  %5560 = vmatprep.mubr.msk.bf16.mxu0 %vm6268_vm0, %v6267_v0  ;;  %vm2483_vm7 = vcmask 523264  }
   0x3   :  { %7595 = sst [smem:[#allocation5_spill]] %s7525_s3  ;;  %s7611_s2 = sld [smem:[#allocation4_spill]] }
   0x4   :  { %7596 = sst [smem:[#allocation6_spill]] %s7526_s4  ;;  %s7575_s0 = smov 96  }
   0x5   :  { %7597 = sst [smem:[#allocation7_spill]] %s7527_s5  ;;  %s7583_s5 = smov 120  }
   0x6   :  { %7598 = sst [smem:[#allocation8_spill]] %s7528_s8  ;;  %s7567_s8 = smov 80  }
   0x7   :  { %7599 = sst [smem:[#allocation9_spill]] %s7529_s1  ;;  %s7581_s1 = smov 112  }
   0x8   :  { %7600 = sst [smem:[#allocation10_spill]] %s7530_s6  ;;  %v6083_v1 = vld [vmem:[%s7610_s27] sm:$0xff]   ;;  %v6084_v2 = vld [vmem:[%s7610_s27 + $0x8] sm:$0xff]   ;;  %s7579_s3 = smov 104  }
   0x9   :  { %7601 = sst [smem:[#allocation11_spill]] %s7531_s12  ;;  %5545 = vmatpush3.bf16.msra.mxu1 %v6083_v1  ;;  %v6423_v3 = vld [vmem:[%s7611_s2] sm:$0xff]  ;;  %v6428_v4 = vld [vmem:[%s7611_s2 + $0x8] sm:$0xff]  ;;  %s7612_s12 = sld [smem:[#allocation5_spill]] }
   0xa   :  { %7602 = sst [smem:[#allocation12_spill]] %s7532_s13  ;;  %5546 = vmatprep.subr.bf16.mxu1 %v6267_v0  ;;  %v82_v5 = vpack.c.bf16 %v6428_v4, %v6423_v3  ;;  %s7561_s2 = smov 64  }
   0xb   :  { %7603 = sst [smem:[#allocation13_spill]] %s7533_s9  ;;  %s7559_s6 = smov 48  }
   0xc   :  { %7604 = sst [smem:[#allocation14_spill]] %s7534_s7  ;;  %s7557_s30 = smov 40  }
   0xd   :  { %7605 = sst [smem:[#allocation15_spill]] %s7535_s10  ;;  %5547 = vmatpush3.bf16.msra.mxu1 %v6084_v2  ;;  %s7573_s4 = smov 8  }
   0xe   :  { %7606 = sst [smem:[#allocation16_spill]] %s7536_s11  ;;  %5552 = vmatprep.subr.bf16.mxu1 %v6267_v0  ;;  %s7571_s25 = smov 16  }
   0xf   :  { %7607 = sst [smem:[#allocation17_spill]] %s7545_s22  ;;  %v5180_v6 = vld [vmem:[%s7612_s12] ss:$0 sm:$0xff] }
  0x10   :  { %7608 = sst [smem:[#allocation18_spill]] %s7546_s23  ;;  %5549 = vmatmul.mubr.msk.bf16.vlgmr.msra.gmra.mrb[0].mxu1 %vm106_vm1, %v82_v5  ;;  %s7628_s23 = smov 120  }
  0x11   :  { %7609 = sst [smem:[#allocation19_spill]] %s7547_s24  ;;  %5554 = vmatprep.mubr.msk.bf16.mxu1 %vm6268_vm0, %v6267_v0  ;;  %s7627_s24 = smov 24  }
  0xe3   :  { %v144_v7 = vpop.f32.mrb[0].mxu1 }
  0xe4   :  { %v145_v8 = vadd.f32 %v5180_v6, %v144_v7  ;;  %v5550_v9 = vpop.f32.mrb[1].mxu1 }
  0xe5   :  { %v147_v10 = vpop.f32.mrb[2].mxu1 }
  0xe6   :  { %v6440_v11 = vpack.c.bf16 %v145_v8, %v145_v8  ;;  %v5551_v12 = vpop.f32.mrb[3].mxu1  ;;  %v148_v13 = vadd.f32 %v5180_v6, %v147_v10 }
  0xe8   :  { %265 = vrot.lane.b32.xlu1 %v6440_v11, %s7583_s5  ;;  %153 = vrot.lane.b32.xlu0 %v6440_v11, %s7575_s0  ;;  %v6454_v14 = vpack.c.bf16 %v148_v13, %v148_v13 }
  0xec   :  { %384 = vrot.lane.b32.xlu1 %v6440_v11, %s7567_s8  ;;  %267 = vrot.lane.b32.xlu0 %v6440_v11, %s7577_s26 }
  0xf0   :  { %501 = vrot.lane.b32.xlu1 %v6440_v11, %s7565_s28  ;;  %382 = vrot.lane.b32.xlu0 %v6440_v11, %s7581_s1 }
  0xf4   :  { %499 = vrot.lane.b32.xlu0 %v6440_v11, %s7579_s3  ;;  %618 = vrot.lane.b32.xlu1 %v6454_v14, %s7575_s0  ;;  %s7623_s0 = smov 80  }
  0xf8   :  { %730 = vrot.lane.b32.xlu0 %v6454_v14, %s7577_s26  ;;  %728 = vrot.lane.b32.xlu1 %v6454_v14, %s7583_s5  ;;  %s7616_s26 = sld [smem:[#allocation9_spill]] }
  0xfc   :  { %846 = vrot.lane.b32.xlu0 %v6454_v14, %s7567_s8  ;;  %844 = vrot.lane.b32.xlu1 %v6454_v14, %s7581_s1  ;;  %s7620_s8 = smov 104   ;;  %s7625_s1 = smov 8  }
 0x100   :  { %962 = vrot.lane.b32.xlu0 %v6454_v14, %s7565_s28  ;;  %960 = vrot.lane.b32.xlu1 %v6454_v14, %s7579_s3  ;;  %s7615_s28 = sld [smem:[#allocation8_spill]]  ;;  %s7618_s3 = sld [smem:[#allocation11_spill]] }
 0x15a   :  { %v154_v15 = vpop.permute.xlu0 %153  ;;  %v266_v18 = vpop.permute.xlu1 %265 }
 0x15b   :  { %v160_v16 = vsel %vm155_vm2, %v154_v15, 0 }
 0x15c   :  { %5553 = vmatpush3.bf16.xpose.msra.mxu1 %v160_v16 }
 0x15d   :  { %5564 = vmatprep.subr.bf16.mxu1 %v6267_v0 }
 0x15e   :  { %v268_v17 = vpop.permute.xlu0 %267  ;;  %v385_v20 = vpop.permute.xlu1 %384 }
 0x15f   :  { %v273_v19 = vsel %vm155_vm2, %v268_v17, 0  ;;  %v390_v21 = vsel %vm155_vm2, %v385_v20, 0 }
 0x162   :  { %v502_v22 = vpop.permute.xlu1 %501  ;;  %v383_v23 = vpop.permute.xlu0 %382 }
 0x163   :  { %5555 = vmatmul.mubr.msk.bf16.vlgmr.msra.gmra.mrb[4].mxu1 %vm155_vm2, %v6440_v11  ;;  %v507_v24 = vsel %vm155_vm2, %v502_v22, 0 }
 0x164   :  { %5565 = vmatpush3.bf16.xpose.msra.mxu1 %v273_v19  ;;  %5566 = vmatprep.mubr.msk.bf16.mxu1 %vm6268_vm0, %v6267_v0 }
 0x165   :  { %5576 = vmatprep.subr.bf16.mxu1 %v6267_v0 }
 0x166   :  { %v619_v25 = vpop.permute.xlu1 %618  ;;  %v500_v26 = vpop.permute.xlu0 %499 }
 0x167   :  { %v624_v27 = vsel %vm155_vm2, %v619_v25, 0 }
 0x16a   :  { %v731_v28 = vpop.permute.xlu0 %730  ;;  %v729_v31 = vpop.permute.xlu1 %728 }
 0x16b   :  { %5567 = vmatmul.mubr.msk.bf16.vlgmr.msra.gmra.mrb[8].mxu1 %vm155_vm2, %v266_v18  ;;  %v736_v29 = vsel %vm155_vm2, %v731_v28, 0 }
 0x16c   :  { %5577 = vmatpush3.bf16.xpose.msra.mxu1 %v390_v21  ;;  %5578 = vmatprep.mubr.msk.bf16.mxu1 %vm6268_vm0, %v6267_v0 }
 0x16d   :  { %5588 = vmatprep.subr.bf16.mxu1 %v6267_v0 }
 0x16e   :  { %v847_v30 = vpop.permute.xlu0 %846  ;;  %v845_v34 = vpop.permute.xlu1 %844 }
 0x16f   :  { %v852_v32 = vsel %vm155_vm2, %v847_v30, 0 }
 0x172   :  { %v963_v33 = vpop.permute.xlu0 %962  ;;  %v961_v36 = vpop.permute.xlu1 %960 }
 0x173   :  { %5579 = vmatmul.mubr.msk.bf16.vlgmr.msra.gmra.mrb[12].mxu1 %vm155_vm2, %v383_v23  ;;  %v968_v35 = vsel %vm155_vm2, %v963_v33, 0 }
 0x174   :  { %5589 = vmatpush3.bf16.xpose.msra.mxu1 %v507_v24  ;;  %5590 = vmatprep.mubr.msk.bf16.mxu1 %vm6268_vm0, %v6267_v0 }
 0x175   :  { %5600 = vmatprep.subr.bf16.mxu1 %v6267_v0 }
 0x17b   :  { %5591 = vmatmul.mubr.msk.bf16.vlgmr.msra.gmra.mrb[16].mxu1 %vm155_vm2, %v500_v26 }
 0x17c   :  { %5601 = vmatpush3.bf16.xpose.msra.mxu1 %v624_v27  ;;  %5602 = vmatprep.mubr.msk.bf16.mxu1 %vm6268_vm0, %v6267_v0 }
 0x17d   :  { %5612 = vmatprep.subr.bf16.mxu1 %v6267_v0 }
 0x183   :  { %5603 = vmatmul.mubr.msk.bf16.vlgmr.msra.gmra.mrb[20].mxu1 %vm155_vm2, %v6454_v14 }
 0x184   :  { %5613 = vmatpush3.bf16.xpose.msra.mxu1 %v736_v29  ;;  %5614 = vmatprep.mubr.msk.bf16.mxu1 %vm6268_vm0, %v6267_v0 }
 0x185   :  { %5624 = vmatprep.subr.bf16.mxu1 %v6267_v0 }
 0x18b   :  { %5615 = vmatmul.mubr.msk.bf16.vlgmr.msra.gmra.mrb[24].mxu1 %vm155_vm2, %v729_v31 }
 0x18c   :  { %5625 = vmatpush3.bf16.xpose.msra.mxu1 %v852_v32  ;;  %5626 = vmatprep.mubr.msk.bf16.mxu1 %vm6268_vm0, %v6267_v0 }
 0x18d   :  { %5636 = vmatprep.subr.bf16.mxu1 %v6267_v0 }
 0x193   :  { %5627 = vmatmul.mubr.msk.bf16.vlgmr.msra.gmra.mrb[28].mxu1 %vm155_vm2, %v845_v34 }
 0x194   :  { %5637 = vmatpush3.bf16.xpose.msra.mxu1 %v968_v35  ;;  %5638 = vmatprep.mubr.msk.bf16.mxu1 %vm6268_vm0, %v6267_v0 }
 0x195   :  { %5648 = vmatprep.subr.bf16.mxu1 %v6267_v0 }
 0x19b   :  { %5639 = vmatmul.mubr.msk.bf16.vlgmr.msra.gmra.mrb[32].mxu1 %vm155_vm2, %v961_v36 }
 0x19c   :  { %5652 = vmatprep.mubr.msk.bf16.mxu1 %vm6268_vm0, %v6267_v0 }
 0x236   :  { %v196_v37 = vpop.f32.mrb[4].mxu1 }
 0x237   :  { %v202_v38 = vmul.f32 0.35355338, %v196_v37  ;;  %v5556_v39 = vpop.f32.mrb[5].mxu1 }
 0x238   :  { %v199_v40 = vpop.f32.mrb[6].mxu1 }
 0x239   :  { %v5557_v41 = vpop.f32.mrb[7].mxu1  ;;  %v203_v42 = vsel %vm155_vm2, %v202_v38, -inf }
 0x23a   :  { %204 = vmax.xlane.f32.xlu0 %v203_v42 }
 0x23e   :  { %v309_v43 = vpop.f32.mrb[8].mxu1 }
 0x23f   :  { %v315_v44 = vmul.f32 0.35355338, %v309_v43  ;;  %v5568_v45 = vpop.f32.mrb[9].mxu1 }
 0x240   :  { %v312_v46 = vpop.f32.mrb[10].mxu1 }
 0x241   :  { %v5569_v47 = vpop.f32.mrb[11].mxu1  ;;  %v316_v48 = vsel %vm155_vm2, %v315_v44, -inf }
 0x242   :  { %317 = vmax.xlane.f32.xlu1 %v316_v48 }
 0x246   :  { %v426_v49 = vpop.f32.mrb[12].mxu1 }
 0x247   :  { %v432_v50 = vmul.f32 0.35355338, %v426_v49  ;;  %v5580_v51 = vpop.f32.mrb[13].mxu1 }
 0x248   :  { %v429_v52 = vpop.f32.mrb[14].mxu1 }
 0x249   :  { %v5581_v53 = vpop.f32.mrb[15].mxu1  ;;  %v433_v54 = vsel %vm155_vm2, %v432_v50, -inf }
 0x24a   :  { %434 = vmax.xlane.f32.xlu0 %v433_v54 }
 0x24e   :  { %v543_v55 = vpop.f32.mrb[16].mxu1 }
 0x24f   :  { %v6517_v56 = vmul.f32 0.35355338, %v543_v55  ;;  %v5592_v57 = vpop.f32.mrb[17].mxu1 }
 0x250   :  { %v546_v58 = vpop.f32.mrb[18].mxu1 }
 0x251   :  { %v5593_v59 = vpop.f32.mrb[19].mxu1  ;;  %v550_v60 = vsel %vm155_vm2, %v6517_v56, -inf }
 0x252   :  { %551 = vmax.xlane.f32.xlu0 %v550_v60 }
 0x256   :  { %v660_v61 = vpop.f32.mrb[20].mxu1 }
 0x257   :  { %v6521_v62 = vmul.f32 0.35355338, %v660_v61  ;;  %v5604_v63 = vpop.f32.mrb[21].mxu1 }
 0x258   :  { %v663_v1 = vpop.f32.mrb[22].mxu1 }
 0x259   :  { %v5605_v2 = vpop.f32.mrb[23].mxu1  ;;  %v667_v5 = vsel %vm155_vm2, %v6521_v62, -inf }
 0x25a   :  { %668 = vmax.xlane.f32.xlu1 %v667_v5 }
 0x25e   :  { %v772_v6 = vpop.f32.mrb[24].mxu1 }
 0x25f   :  { %v6525_v7 = vmul.f32 0.35355338, %v772_v6  ;;  %v5616_v8 = vpop.f32.mrb[25].mxu1 }
 0x260   :  { %v775_v9 = vpop.f32.mrb[26].mxu1 }
 0x261   :  { %v5617_v10 = vpop.f32.mrb[27].mxu1  ;;  %v779_v12 = vsel %vm155_vm2, %v6525_v7, -inf }
 0x262   :  { %780 = vmax.xlane.f32.xlu0 %v779_v12 }
 0x266   :  { %v888_v13 = vpop.f32.mrb[28].mxu1 }
 0x267   :  { %v894_v15 = vmul.f32 0.35355338, %v888_v13  ;;  %v5628_v16 = vpop.f32.mrb[29].mxu1 }
 0x268   :  { %v891_v17 = vpop.f32.mrb[30].mxu1 }
 0x269   :  { %v5629_v18 = vpop.f32.mrb[31].mxu1  ;;  %v895_v19 = vsel %vm155_vm2, %v894_v15, -inf }
 0x26a   :  { %896 = vmax.xlane.f32.xlu1 %v895_v19 }
 0x26e   :  { %v1004_v20 = vpop.f32.mrb[32].mxu1 }
 0x26f   :  { %v5640_v21 = vpop.f32.mrb[33].mxu1  ;;  %v6534_v24 = vmul.f32 0.35355338, %v1004_v20 }
 0x270   :  { %v1007_v22 = vpop.f32.mrb[34].mxu1 }
 0x271   :  { %v5641_v23 = vpop.f32.mrb[35].mxu1  ;;  %v1011_v25 = vsel %vm155_vm2, %v6534_v24, -inf }
 0x278   :  { %328 = vrot.lane.b32.xlu0 %v6440_v11, %s7563_s29 }
 0x27b   :  { %215 = vrot.lane.b32.xlu1 %v6440_v11, %s7561_s2 }
 0x297   :  { %1012 = vmax.xlane.f32.xlu0 %v1011_v25 }
 0x2c7   :  { %v205_v26 = vpop.xlane.xlu0 %204 }
 0x2c8   :  { %v206_v27 = vsub.f32 %v202_v38, %v205_v26 }
 0x2ca   :  { %v207_v28 = vmul.f32 1.442695, %v206_v27 }
 0x2cc   :  { %6115 = vpow2.f32 %v207_v28 }
 0x2cf   :  { %v318_v29 = vpop.xlane.xlu1 %317 }
 0x2d0   :  { %v319_v30 = vsub.f32 %v315_v44, %v318_v29 }
 0x2d2   :  { %v320_v31 = vmul.f32 1.442695, %v319_v30 }
 0x2d4   :  { %6117 = vpow2.f32 %v320_v31 }
 0x2d6   :  { %v6538_v32 = vpop.eup %6115 }
 0x2d7   :  { %v435_v33 = vpop.xlane.xlu0 %434  ;;  %v209_v34 = vsel %vm155_vm2, %v6538_v32, 0.0 }
 0x2d8   :  { %v436_v35 = vsub.f32 %v432_v50, %v435_v33  ;;  %210 = vadd.xlane.f32.xlu1 %v209_v34 }
 0x2da   :  { %v437_v36 = vmul.f32 1.442695, %v436_v35 }
 0x2dc   :  { %6119 = vpow2.f32 %v437_v36 }
 0x2de   :  { %v6542_v37 = vpop.eup %6117 }
 0x2df   :  { %v322_v38 = vsel %vm155_vm2, %v6542_v37, 0.0  ;;  %v552_v44 = vpop.xlane.xlu0 %551 }
 0x2e0   :  { %323 = vadd.xlane.f32.xlu0 %v322_v38  ;;  %v553_v46 = vsub.f32 %v6517_v56, %v552_v44 }
 0x2e2   :  { %v554_v47 = vmul.f32 1.442695, %v553_v46 }
 0x2e4   :  { %6121 = vpow2.f32 %v554_v47 }
 0x2e6   :  { %v6546_v39 = vpop.eup %6119 }
 0x2e7   :  { %v439_v40 = vsel %vm155_vm2, %v6546_v39, 0.0  ;;  %v669_v41 = vpop.xlane.xlu1 %668 }
 0x2e8   :  { %440 = vadd.xlane.f32.xlu1 %v439_v40  ;;  %v670_v48 = vsub.f32 %v6521_v62, %v669_v41 }
 0x2ea   :  { %v671_v51 = vmul.f32 1.442695, %v670_v48 }
 0x2ec   :  { %6123 = vpow2.f32 %v671_v51 }
 0x2ee   :  { %v6122_v54 = vpop.eup %6121 }
 0x2ef   :  { %v781_v49 = vpop.xlane.xlu0 %780  ;;  %v556_v55 = vsel %vm155_vm2, %v6122_v54, 0.0 }
 0x2f0   :  { %v782_v50 = vsub.f32 %v6525_v7, %v781_v49 }
 0x2f3   :  { %v329_v62 = vpop.permute.xlu0 %328 }
 0x2f4   :  { %v334_v13 = vsel %vm220_vm3, %v329_v62, 0 }
 0x2f6   :  { %445 = vrot.lane.b32.xlu0 %v6440_v11, %s7559_s6  ;;  %v6560_v57 = vpop.eup %6123 }
 0x2f7   :  { %v897_v42 = vpop.xlane.xlu1 %896  ;;  %v673_v58 = vsel %vm155_vm2, %v6560_v57, 0.0 }
 0x2f8   :  { %v898_v52 = vsub.f32 %v894_v15, %v897_v42 }
 0x2f9   :  { %562 = vrot.lane.b32.xlu1 %v6440_v11, %s7557_s30  ;;  %v783_v11 = vmul.f32 1.442695, %v782_v50 }
 0x2fa   :  { %v899_v53 = vmul.f32 1.442695, %v898_v52 }
 0x2fb   :  { %v216_v43 = vpop.permute.xlu1 %215  ;;  %6125 = vpow2.f32 %v783_v11 }
 0x2fc   :  { %v222_v45 = vsel %vm220_vm3, %v216_v43, 0  ;;  %6127 = vpow2.f32 %v899_v53 }
 0x2fd   :  { %5559 = vmatpush3.bf16.msra.mxu0 %v222_v45 }
 0x2fe   :  { %5570 = vmatprep.subr.bf16.mxu0 %v6267_v0 }
 0x305   :  { %v6562_v56 = vpop.eup %6125 }
 0x306   :  { %v6566_v59 = vpop.eup %6127  ;;  %v785_v60 = vsel %vm155_vm2, %v6562_v56, 0.0 }
 0x307   :  { %v901_v61 = vsel %vm155_vm2, %v6566_v59, 0.0 }
 0x315   :  { %557 = vadd.xlane.f32.xlu0 %v556_v55 }
 0x319   :  { %674 = vadd.xlane.f32.xlu0 %v673_v58 }
 0x31d   :  { %786 = vadd.xlane.f32.xlu1 %v785_v60  ;;  %902 = vadd.xlane.f32.xlu0 %v901_v61 }
 0x324   :  { %v1013_v63 = vpop.xlane.xlu0 %1012 }
 0x325   :  { %v1014_v1 = vsub.f32 %v6534_v24, %v1013_v63 }
 0x327   :  { %v1015_v2 = vmul.f32 1.442695, %v1014_v1 }
 0x329   :  { %6129 = vpow2.f32 %v1015_v2 }
 0x32e   :  { %791 = vrot.lane.b32.xlu1 %v6454_v14, %s7563_s29  ;;  %s7613_s29 = sld [smem:[#allocation6_spill]] }
 0x332   :  { %907 = vrot.lane.b32.xlu1 %v6454_v14, %s7559_s6  ;;  %s7617_s6 = sld [smem:[#allocation10_spill]] }
 0x333   :  { %v6577_v5 = vpop.eup %6129 }
 0x334   :  { %v1017_v6 = vsel %vm155_vm2, %v6577_v5, 0.0 }
 0x335   :  { %1018 = vadd.xlane.f32.xlu0 %v1017_v6 }
 0x336   :  { %1023 = vrot.lane.b32.xlu1 %v6454_v14, %s7557_s30  ;;  %s7569_s30 = smov 24  }
 0x34b   :  { %679 = vrot.lane.b32.xlu0 %v6454_v14, %s7561_s2  ;;  %s7614_s2 = sld [smem:[#allocation7_spill]] }
 0x365   :  { %v211_v7 = vpop.xlane.xlu1 %210 }
 0x366   :  { %6131 = vrcp.f32 %v211_v7 }
 0x36d   :  { %v324_v8 = vpop.xlane.xlu0 %323 }
 0x36e   :  { %6133 = vrcp.f32 %v324_v8 }
 0x370   :  { %v6132_v9 = vpop.eup %6131 }
 0x371   :  { %v213_v10 = vmul.f32 %v6132_v9, %v6538_v32  ;;  %v446_v17 = vpop.permute.xlu0 %445 }
 0x372   :  { %v451_v19 = vsel %vm220_vm3, %v446_v17, 0  ;;  %v6086_v17 = vld [vmem:[%s7613_s29 + $0x8] sm:$0xff]  }
 0x373   :  { %v214_v12 = vpack.c.bf16 %v213_v10, %v213_v10 }
 0x375   :  { %5561 = vmatmul.mubr.msk.bf16.vlgmr.msra.gmra.mrb[0].mxu0 %vm155_vm2, %v214_v12  ;;  %v441_v15 = vpop.xlane.xlu1 %440 }
 0x376   :  { %5571 = vmatpush3.bf16.msra.mxu0 %v334_v13  ;;  %6135 = vrcp.f32 %v441_v15  ;;  %5572 = vmatprep.mubr.msk.bf16.mxu0 %vm6268_vm0, %v6267_v0 }
 0x377   :  { %5582 = vmatprep.subr.bf16.mxu0 %v6267_v0 }
 0x378   :  { %v6134_v14 = vpop.eup %6133 }
 0x379   :  { %v326_v16 = vmul.f32 %v6134_v14, %v6542_v37  ;;  %v563_v22 = vpop.permute.xlu1 %562 }
 0x37a   :  { %v568_v24 = vsel %vm220_vm3, %v563_v22, 0 }
 0x37b   :  { %v327_v18 = vpack.c.bf16 %v326_v16, %v326_v16  ;;  %v6085_v16 = vld [vmem:[%s7613_s29] sm:$0xff]  }
 0x37c   :  { %5649 = vmatpush3.bf16.msra.mxu1 %v6085_v16  ;;  %v5205_v16 = vld [vmem:[%s7532_s13] ss:$0 sm:$0xff] }
 0x37d   :  { %5573 = vmatmul.mubr.msk.bf16.vlgmr.msra.gmra.mrb[4].mxu0 %vm155_vm2, %v327_v18  ;;  %5650 = vmatprep.subr.bf16.mxu1 %v6267_v0 }
 0x37e   :  { %5583 = vmatpush3.bf16.msra.mxu0 %v451_v19  ;;  %5584 = vmatprep.mubr.msk.bf16.mxu0 %vm6268_vm0, %v6267_v0 }
 0x37f   :  { %5594 = vmatprep.subr.bf16.mxu0 %v6267_v0 }
 0x380   :  { %v6136_v20 = vpop.eup %6135  ;;  %5651 = vmatpush3.bf16.msra.mxu1 %v6086_v17 }
 0x381   :  { %v443_v21 = vmul.f32 %v6136_v20, %v6546_v39  ;;  %5664 = vmatprep.subr.bf16.mxu1 %v6267_v0 }
 0x383   :  { %v444_v23 = vpack.c.bf16 %v443_v21, %v443_v21 }
 0x385   :  { %5585 = vmatmul.mubr.msk.bf16.vlgmr.msra.gmra.mrb[8].mxu0 %vm155_vm2, %v444_v23 }
 0x386   :  { %5595 = vmatpush3.bf16.msra.mxu0 %v568_v24  ;;  %5596 = vmatprep.mubr.msk.bf16.mxu0 %vm6268_vm0, %v6267_v0 }
 0x387   :  { %5606 = vmatprep.subr.bf16.mxu0 %v6267_v0 }
 0x3a2   :  { %v558_v25 = vpop.xlane.xlu0 %557 }
 0x3a3   :  { %6137 = vrcp.f32 %v558_v25 }
 0x3a6   :  { %v675_v29 = vpop.xlane.xlu0 %674 }
 0x3a7   :  { %6139 = vrcp.f32 %v675_v29 }
 0x3aa   :  { %v787_v30 = vpop.xlane.xlu1 %786  ;;  %v903_v31 = vpop.xlane.xlu0 %902 }
 0x3ab   :  { %6141 = vrcp.f32 %v787_v30 }
 0x3ac   :  { %6143 = vrcp.f32 %v903_v31 }
 0x3ad   :  { %v6138_v26 = vpop.eup %6137 }
 0x3ae   :  { %v560_v27 = vmul.f32 %v6138_v26, %v6122_v54  ;;  %v792_v37 = vpop.permute.xlu1 %791 }
 0x3af   :  { %v797_v40 = vsel %vm220_vm3, %v792_v37, 0 }
 0x3b0   :  { %v561_v28 = vpack.c.bf16 %v560_v27, %v560_v27 }
 0x3b1   :  { %v6140_v32 = vpop.eup %6139 }
 0x3b2   :  { %5597 = vmatmul.mubr.msk.bf16.vlgmr.msra.gmra.mrb[12].mxu0 %vm155_vm2, %v561_v28  ;;  %v677_v34 = vmul.f32 %v6140_v32, %v6560_v57  ;;  %v908_v42 = vpop.permute.xlu1 %907 }
 0x3b3   :  { %5608 = vmatprep.mubr.msk.bf16.mxu0 %vm6268_vm0, %v6267_v0  ;;  %v913_v45 = vsel %vm220_vm3, %v908_v42, 0 }
 0x3b4   :  { %v678_v38 = vpack.c.bf16 %v677_v34, %v677_v34 }
 0x3b5   :  { %v6142_v39 = vpop.eup %6141 }
 0x3b6   :  { %v789_v41 = vmul.f32 %v6142_v39, %v6562_v56  ;;  %v6144_v44 = vpop.eup %6143  ;;  %v1024_v47 = vpop.permute.xlu1 %1023 }
 0x3b7   :  { %v905_v46 = vmul.f32 %v6144_v44, %v6566_v59  ;;  %v1029_v50 = vsel %vm220_vm3, %v1024_v47, 0 }
 0x3b8   :  { %v790_v43 = vpack.c.bf16 %v789_v41, %v789_v41 }
 0x3b9   :  { %v906_v48 = vpack.c.bf16 %v905_v46, %v905_v46 }
 0x3c2   :  { %v1019_v33 = vpop.xlane.xlu0 %1018 }
 0x3c3   :  { %6145 = vrcp.f32 %v1019_v33 }
 0x3c6   :  { %v680_v35 = vpop.permute.xlu0 %679 }
 0x3c7   :  { %v685_v36 = vsel %vm220_vm3, %v680_v35, 0  ;;  %v5200_v35 = vld [vmem:[%s7614_s2] ss:$0 sm:$0xff] }
 0x3c8   :  { %5607 = vmatpush3.bf16.msra.mxu0 %v685_v36 }
 0x3c9   :  { %5618 = vmatprep.subr.bf16.mxu0 %v6267_v0 }
 0x3cb   :  { %5609 = vmatmul.mubr.msk.bf16.vlgmr.msra.gmra.mrb[16].mxu0 %vm155_vm2, %v678_v38 }
 0x3cc   :  { %5619 = vmatpush3.bf16.msra.mxu0 %v797_v40  ;;  %5620 = vmatprep.mubr.msk.bf16.mxu0 %vm6268_vm0, %v6267_v0 }
 0x3cd   :  { %5630 = vmatprep.subr.bf16.mxu0 %v6267_v0  ;;  %v6146_v49 = vpop.eup %6145 }
 0x3ce   :  { %v1021_v51 = vmul.f32 %v6146_v49, %v6577_v5 }
 0x3d0   :  { %v1022_v52 = vpack.c.bf16 %v1021_v51, %v1021_v51  ;;  %v81_v51 = vld [vmem:[%s7616_s26 + $0x8] sm:$0xff] }
 0x3d3   :  { %5621 = vmatmul.mubr.msk.bf16.vlgmr.msra.gmra.mrb[20].mxu0 %vm155_vm2, %v790_v43 }
 0x3d4   :  { %5631 = vmatpush3.bf16.msra.mxu0 %v913_v45  ;;  %5632 = vmatprep.mubr.msk.bf16.mxu0 %vm6268_vm0, %v6267_v0 }
 0x3d5   :  { %5642 = vmatprep.subr.bf16.mxu0 %v6267_v0 }
 0x3db   :  { %5633 = vmatmul.mubr.msk.bf16.vlgmr.msra.gmra.mrb[24].mxu0 %vm155_vm2, %v906_v48 }
 0x3dc   :  { %5643 = vmatpush3.bf16.msra.mxu0 %v1029_v50  ;;  %5644 = vmatprep.mubr.msk.bf16.mxu0 %vm6268_vm0, %v6267_v0  ;;  %v80_v50 = vld [vmem:[%s7616_s26] sm:$0xff]  ;;  %s7624_s26 = smov 72  }
 0x3dd   :  { %5656 = vmatprep.subr.bf16.mxu0 %v6267_v0 }
 0x3e3   :  { %5645 = vmatmul.mubr.msk.bf16.vlgmr.msra.gmra.mrb[28].mxu0 %vm155_vm2, %v1022_v52  ;;  %v6677_v52 = vpack.c.bf16 %v81_v51, %v80_v50 }
 0x3e4   :  { %5660 = vmatprep.mubr.msk.bf16.mxu0 %vm6268_vm0, %v6267_v0 }
 0x448   :  { %v258_v11 = vpop.f32.mrb[0].mxu0 }
 0x449   :  { %264 = vst.msk [vmem:[#allocation2] sm:$0xff] %vm155_vm2, %v258_v11  ;;  %v5562_v53 = vpop.f32.mrb[1].mxu0  ;;  %v6089_v11 = vld [vmem:[%s7617_s6] sm:$0xff]  }
 0x44a   :  { %v261_v54 = vpop.f32.mrb[2].mxu0  ;;  %5657 = vmatpush3.bf16.msra.mxu0 %v6089_v11  ;;  %v6090_v53 = vld [vmem:[%s7617_s6 + $0x8] sm:$0xff]  }
 0x44b   :  { %v5563_v55 = vpop.f32.mrb[3].mxu0  ;;  %5658 = vmatprep.subr.bf16.mxu0 %v6267_v0 }
 0x44e   :  { %5659 = vmatpush3.bf16.msra.mxu0 %v6090_v53 }
 0x44f   :  { %5672 = vmatprep.subr.bf16.mxu0 %v6267_v0 }
 0x450   :  { %v370_v57 = vpop.f32.mrb[4].mxu0 }
 0x451   :  { %377 = vrot.lane.b32.xlu1 %v370_v57, %s7573_s4  ;;  %v5574_v56 = vpop.f32.mrb[5].mxu0 }
 0x452   :  { %v373_v58 = vpop.f32.mrb[6].mxu0 }
 0x453   :  { %v5575_v59 = vpop.f32.mrb[7].mxu0 }
 0x458   :  { %v487_v60 = vpop.f32.mrb[8].mxu0 }
 0x459   :  { %494 = vrot.lane.b32.xlu0 %v487_v60, %s7571_s25  ;;  %v5586_v61 = vpop.f32.mrb[9].mxu0 }
 0x45a   :  { %v490_v62 = vpop.f32.mrb[10].mxu0 }
 0x45b   :  { %v5587_v63 = vpop.f32.mrb[11].mxu0 }
 0x485   :  { %v604_v1 = vpop.f32.mrb[12].mxu0 }
 0x486   :  { %611 = vrot.lane.b32.xlu0 %v604_v1, %s7569_s30  ;;  %v5598_v2 = vpop.f32.mrb[13].mxu0 }
 0x487   :  { %v607_v5 = vpop.f32.mrb[14].mxu0 }
 0x488   :  { %v5599_v6 = vpop.f32.mrb[15].mxu0 }
 0x49e   :  { %v721_v7 = vpop.f32.mrb[16].mxu0 }
 0x49f   :  { %727 = vst.msk [vmem:[#allocation2 + $0x8] sm:$0xff] %vm155_vm2, %v721_v7  ;;  %v5610_v8 = vpop.f32.mrb[17].mxu0 }
 0x4a0   :  { %v724_v9 = vpop.f32.mrb[18].mxu0 }
 0x4a1   :  { %v5611_v10 = vpop.f32.mrb[19].mxu0 }
 0x4a2   :  { %v5204_v10 = vld [vmem:[%s7618_s3] ss:$0 sm:$0xff]  ;;  %s7633_s3 = sld [smem:[#allocation11_spill]] }
 0x4a6   :  { %v833_v12 = vpop.f32.mrb[20].mxu0 }
 0x4a7   :  { %840 = vrot.lane.b32.xlu1 %v833_v12, %s7573_s4  ;;  %v5622_v13 = vpop.f32.mrb[21].mxu0  ;;  %s7619_s4 = smov 112  }
 0x4a8   :  { %v836_v15 = vpop.f32.mrb[22].mxu0 }
 0x4a9   :  { %v5623_v14 = vpop.f32.mrb[23].mxu0 }
 0x4ae   :  { %v949_v18 = vpop.f32.mrb[24].mxu0 }
 0x4af   :  { %956 = vrot.lane.b32.xlu1 %v949_v18, %s7571_s25  ;;  %v5634_v19 = vpop.f32.mrb[25].mxu0  ;;  %s7622_s25 = smov 96  }
 0x4b0   :  { %v952_v20 = vpop.f32.mrb[26].mxu0 }
 0x4b1   :  { %v5635_v21 = vpop.f32.mrb[27].mxu0 }
 0x4b2   :  { %v5210_v21 = vld [vmem:[%s7533_s9] ss:$0 sm:$0xff]  ;;  %s7631_s9 = smov 48  }
 0x4b6   :  { %v1065_v22 = vpop.f32.mrb[28].mxu0 }
 0x4b7   :  { %1072 = vrot.lane.b32.xlu1 %v1065_v22, %s7569_s30  ;;  %v5646_v23 = vpop.f32.mrb[29].mxu0  ;;  %s7621_s30 = smov 88  }
 0x4b8   :  { %v1068_v24 = vpop.f32.mrb[30].mxu0 }
 0x4b9   :  { %v5647_v25 = vpop.f32.mrb[31].mxu0 }
 0x4c3   :  { %v378_v26 = vpop.permute.xlu1 %377 }
 0x4c4   :  { %381 = vst.msk [vmem:[#allocation2] sm:$0xff] %vm380_vm4, %v378_v26 }
 0x4cb   :  { %v495_v27 = vpop.permute.xlu0 %494 }
 0x4cc   :  { %498 = vst.msk [vmem:[#allocation2] sm:$0xff] %vm497_vm5, %v495_v27 }
 0x4f8   :  { %v612_v28 = vpop.permute.xlu0 %611 }
 0x4f9   :  { %615 = vst.msk [vmem:[#allocation2] sm:$0xff] %vm614_vm6, %v612_v28 }
 0x500   :  { %v1076_v32 = vld [vmem:[#allocation2] sm:$0xff] }
 0x519   :  { %v841_v29 = vpop.permute.xlu1 %840 }
 0x51a   :  { %843 = vst.msk [vmem:[#allocation2 + $0x8] sm:$0xff] %vm380_vm4, %v841_v29 }
 0x521   :  { %v957_v30 = vpop.permute.xlu1 %956 }
 0x522   :  { %959 = vst.msk [vmem:[#allocation2 + $0x8] sm:$0xff] %vm497_vm5, %v957_v30  ;;  %v5206_v30 = vld [vmem:[%s7534_s7] ss:$0 sm:$0xff]  ;;  %s7630_s7 = smov 64  }
 0x529   :  { %v1073_v31 = vpop.permute.xlu1 %1072 }
 0x52a   :  { %1075 = vst.msk [vmem:[#allocation2 + $0x8] sm:$0xff] %vm614_vm6, %v1073_v31 }
 0x531   :  { %v1077_v33 = vld [vmem:[#allocation2 + $0x8] sm:$0xff] }
 0x532   :  { %v1078_v34 = vpack.c.bf16 %v1077_v33, %v1076_v32 }
 0x534   :  { %5653 = vmatmul.mubr.msk.bf16.vlgmr.msra.gmra.mrb[36].mxu1 %vm106_vm1, %v1078_v34 }
 0x535   :  { %5668 = vmatprep.mubr.msk.bf16.mxu1 %vm6268_vm0, %v6267_v0 }
 0x607   :  { %v1139_v36 = vpop.f32.mrb[36].mxu1 }
 0x608   :  { %v1140_v37 = vadd.f32 %v5200_v35, %v1139_v36  ;;  %v5654_v38 = vpop.f32.mrb[37].mxu1 }
 0x609   :  { %v1142_v39 = vpop.f32.mrb[38].mxu1 }
 0x60a   :  { %v1146_v40 = vadd.f32 %v1140_v37, %v6423_v3  ;;  %v1143_v41 = vadd.f32 %v5200_v35, %v1142_v39  ;;  %v5655_v42 = vpop.f32.mrb[39].mxu1  ;;  %v6087_v3 = vld [vmem:[%s7615_s28] sm:$0xff]  }
 0x60b   :  { %5665 = vmatpush3.bf16.msra.mxu1 %v6087_v3 }
 0x60c   :  { %v1147_v43 = vadd.f32 %v1143_v41, %v6428_v4  ;;  %v1150_v44 = vsel %vm106_vm1, %v1146_v40, 0.0  ;;  %v1159_v45 = vmul.f32 %v1146_v40, %v1146_v40  ;;  %5666 = vmatprep.subr.bf16.mxu1 %v6267_v0  ;;  %v6088_v4 = vld [vmem:[%s7615_s28 + $0x8] sm:$0xff]  }
 0x60d   :  { %1151 = vadd.xlane.f32.xlu0 %v1150_v44 }
 0x60e   :  { %v1153_v46 = vsel %vm106_vm1, %v1147_v43, 0.0  ;;  %v1161_v47 = vsel %vm106_vm1, %v1159_v45, 0.0  ;;  %v1160_v48 = vmul.f32 %v1147_v43, %v1147_v43 }
 0x60f   :  { %1154 = vadd.xlane.f32.xlu1 %v1153_v46  ;;  %5667 = vmatpush3.bf16.msra.mxu1 %v6088_v4 }
 0x610   :  { %v1164_v49 = vsel %vm106_vm1, %v1160_v48, 0.0  ;;  %5678 = vmatprep.subr.bf16.mxu1 %v6267_v0 }
 0x611   :  { %1162 = vadd.xlane.f32.xlu0 %v1161_v47 }
 0x612   :  { %5669 = vmatmul.mubr.msk.bf16.vlgmr.msra.gmra.mrb[40].mxu1 %vm106_vm1, %v6677_v52 }
 0x613   :  { %5680 = vmatprep.mubr.msk.bf16.mxu1 %vm6268_vm0, %v6267_v0 }
 0x615   :  { %1165 = vadd.xlane.f32.xlu0 %v1164_v49 }
 0x69a   :  { %v1152_v54 = vpop.xlane.xlu0 %1151 }
 0x69b   :  { %v1157_v55 = vmul.f32 0.03125, %v1152_v54 }
 0x69c   :  { %v1155_v57 = vpop.xlane.xlu1 %1154 }
 0x69d   :  { %v1169_v58 = vmul.f32 %v1157_v55, %v1157_v55  ;;  %v1158_v59 = vmul.f32 0.03125, %v1155_v57  ;;  %v1173_v7 = vsub.f32 %v1146_v40, %v1157_v55 }
 0x69e   :  { %v1163_v56 = vpop.xlane.xlu0 %1162 }
 0x69f   :  { %v1167_v60 = vmul.f32 0.03125, %v1163_v56  ;;  %v1170_v63 = vmul.f32 %v1158_v59, %v1158_v59  ;;  %v1174_v12 = vsub.f32 %v1147_v43, %v1158_v59 }
 0x6a1   :  { %v1171_v61 = vsub.f32 %v1167_v60, %v1169_v58 }
 0x6a2   :  { %v1166_v62 = vpop.xlane.xlu0 %1165 }
 0x6a3   :  { %v1175_v1 = vadd.f32 1e-05, %v1171_v61  ;;  %v1168_v2 = vmul.f32 0.03125, %v1166_v62 }
 0x6a5   :  { %6147 = vrsqrt.f32 %v1175_v1  ;;  %v1172_v5 = vsub.f32 %v1168_v2, %v1170_v63 }
 0x6a7   :  { %v1176_v6 = vadd.f32 1e-05, %v1172_v5 }
 0x6a9   :  { %6149 = vrsqrt.f32 %v1176_v6 }
 0x6af   :  { %v6148_v8 = vpop.eup %6147 }
 0x6b0   :  { %v1179_v9 = vmul.f32 %v6148_v8, %v1173_v7 }
 0x6b2   :  { %v1187_v14 = vmul.f32 %v5204_v10, %v1179_v9 }
 0x6b3   :  { %v6150_v13 = vpop.eup %6149 }
 0x6b4   :  { %v1180_v15 = vmul.f32 %v6150_v13, %v1174_v12  ;;  %v6698_v18 = vadd.f32 %v5205_v16, %v1187_v14 }
 0x6b6   :  { %v1188_v17 = vmul.f32 %v5204_v10, %v1180_v15 }
 0x6b8   :  { %v6700_v19 = vadd.f32 %v5205_v16, %v1188_v17 }
 0x6ba   :  { %v1197_v20 = vpack.c.bf16 %v6700_v19, %v6698_v18 }
 0x6bc   :  { %5661 = vmatmul.mubr.msk.bf16.vlgmr.msra.gmra.mrb[32].mxu0 %vm106_vm1, %v1197_v20 }
 0x6bd   :  { %5674 = vmatprep.mubr.msk.bf16.mxu0 %vm6268_vm0, %v6267_v0 }
 0x6e5   :  { %v1326_v22 = vpop.f32.mrb[40].mxu1 }
 0x6e6   :  { %v1327_v23 = vadd.f32 %v5210_v21, %v1326_v22  ;;  %v5670_v24 = vpop.f32.mrb[41].mxu1 }
 0x6e7   :  { %v1329_v25 = vpop.f32.mrb[42].mxu1 }
 0x6e8   :  { %v6710_v26 = vpack.c.bf16 %v1327_v23, %v1327_v23  ;;  %v1330_v27 = vadd.f32 %v5210_v21, %v1329_v25  ;;  %v5671_v28 = vpop.f32.mrb[43].mxu1 }
 0x6ea   :  { %1447 = vrot.lane.b32.xlu1 %v6710_v26, %s7583_s5  ;;  %v1339_v29 = vsel %vm155_vm2, %v6710_v26, 0  ;;  %v6732_v40 = vpack.c.bf16 %v1330_v27, %v1330_v27 }
 0x6eb   :  { %5673 = vmatpush3.bf16.xpose.msra.mxu0 %v1339_v29 }
 0x6ec   :  { %5684 = vmatprep.subr.bf16.mxu0 %v6267_v0  ;;  %v1799_v49 = vsel %vm155_vm2, %v6732_v40, 0 }
 0x6ee   :  { %1563 = vrot.lane.b32.xlu1 %v6710_v26, %s7619_s4 }
 0x75c   :  { %v1448_v37 = vpop.permute.xlu1 %1447 }
 0x75d   :  { %v1453_v38 = vsel %vm155_vm2, %v1448_v37, 0 }
 0x760   :  { %v1564_v42 = vpop.permute.xlu1 %1563 }
 0x761   :  { %v1569_v44 = vsel %vm155_vm2, %v1564_v42, 0 }
 0x78f   :  { %v1258_v31 = vpop.f32.mrb[32].mxu0 }
 0x790   :  { %v1259_v32 = vadd.f32 %v5206_v30, %v1258_v31  ;;  %v5662_v33 = vpop.f32.mrb[33].mxu0 }
 0x791   :  { %v1261_v34 = vpop.f32.mrb[34].mxu0 }
 0x792   :  { %v1333_v35 = vpack.c.bf16 %v1259_v32, %v1259_v32  ;;  %v5663_v36 = vpop.f32.mrb[35].mxu0  ;;  %v1262_v39 = vadd.f32 %v5206_v30, %v1261_v34 }
 0x794   :  { %1445 = vrot.lane.b32.xlu0 %v1333_v35, %s7583_s5  ;;  %1561 = vrot.lane.b32.xlu1 %v1333_v35, %s7619_s4  ;;  %v1793_v41 = vpack.c.bf16 %v1262_v39, %v1262_v39 }
 0x795   :  { %5675 = vmatmul.mubr.msk.bf16.vlgmr.msra.gmra.mrb[36].mxu0 %vm155_vm2, %v1333_v35 }
 0x796   :  { %5685 = vmatpush3.bf16.xpose.msra.mxu0 %v1453_v38  ;;  %5686 = vmatprep.mubr.msk.bf16.mxu0 %vm6268_vm0, %v6267_v0 }
 0x797   :  { %5696 = vmatprep.subr.bf16.mxu0 %v6267_v0 }
 0x798   :  { %1679 = vrot.lane.b32.xlu0 %v6710_v26, %s7620_s8  ;;  %1677 = vrot.lane.b32.xlu1 %v1333_v35, %s7620_s8 }
 0x79c   :  { %1905 = vrot.lane.b32.xlu1 %v1793_v41, %s7583_s5  ;;  %1907 = vrot.lane.b32.xlu0 %v6732_v40, %s7583_s5  ;;  %s7626_s5 = smov 16  }
 0x7a0   :  { %2021 = vrot.lane.b32.xlu1 %v1793_v41, %s7619_s4  ;;  %2023 = vrot.lane.b32.xlu0 %v6732_v40, %s7619_s4 }
 0x7a4   :  { %2137 = vrot.lane.b32.xlu1 %v1793_v41, %s7620_s8  ;;  %2139 = vrot.lane.b32.xlu0 %v6732_v40, %s7620_s8 }
 0x806   :  { %v1446_v43 = vpop.permute.xlu0 %1445  ;;  %v1562_v46 = vpop.permute.xlu1 %1561 }
 0x807   :  { %5687 = vmatmul.mubr.msk.bf16.vlgmr.msra.gmra.mrb[40].mxu0 %vm155_vm2, %v1446_v43 }
 0x808   :  { %5697 = vmatpush3.bf16.xpose.msra.mxu0 %v1569_v44  ;;  %5698 = vmatprep.mubr.msk.bf16.mxu0 %vm6268_vm0, %v6267_v0 }
 0x809   :  { %5708 = vmatprep.subr.bf16.mxu0 %v6267_v0 }
 0x80a   :  { %v1680_v45 = vpop.permute.xlu0 %1679  ;;  %v1678_v48 = vpop.permute.xlu1 %1677 }
 0x80b   :  { %v1685_v47 = vsel %vm155_vm2, %v1680_v45, 0 }
 0x80e   :  { %v1908_v3 = vpop.permute.xlu0 %1907  ;;  %v1906_v51 = vpop.permute.xlu1 %1905 }
 0x80f   :  { %5699 = vmatmul.mubr.msk.bf16.vlgmr.msra.gmra.mrb[44].mxu0 %vm155_vm2, %v1562_v46  ;;  %v1913_v4 = vsel %vm155_vm2, %v1908_v3, 0 }
 0x810   :  { %5709 = vmatpush3.bf16.xpose.msra.mxu0 %v1685_v47  ;;  %5710 = vmatprep.mubr.msk.bf16.mxu0 %vm6268_vm0, %v6267_v0 }
 0x811   :  { %5720 = vmatprep.subr.bf16.mxu0 %v6267_v0 }
 0x812   :  { %v2024_v50 = vpop.permute.xlu0 %2023  ;;  %v2022_v54 = vpop.permute.xlu1 %2021 }
 0x813   :  { %v2029_v11 = vsel %vm155_vm2, %v2024_v50, 0 }
 0x816   :  { %v2140_v53 = vpop.permute.xlu0 %2139  ;;  %v2138_v57 = vpop.permute.xlu1 %2137 }
 0x817   :  { %5711 = vmatmul.mubr.msk.bf16.vlgmr.msra.gmra.mrb[48].mxu0 %vm155_vm2, %v1678_v48  ;;  %v2145_v55 = vsel %vm155_vm2, %v2140_v53, 0 }
 0x818   :  { %5721 = vmatpush3.bf16.xpose.msra.mxu0 %v1799_v49  ;;  %5722 = vmatprep.mubr.msk.bf16.mxu0 %vm6268_vm0, %v6267_v0 }
 0x819   :  { %5732 = vmatprep.subr.bf16.mxu0 %v6267_v0 }
 0x81f   :  { %5723 = vmatmul.mubr.msk.bf16.vlgmr.msra.gmra.mrb[52].mxu0 %vm155_vm2, %v1793_v41 }
 0x820   :  { %5733 = vmatpush3.bf16.xpose.msra.mxu0 %v1913_v4  ;;  %5734 = vmatprep.mubr.msk.bf16.mxu0 %vm6268_vm0, %v6267_v0 }
 0x821   :  { %5744 = vmatprep.subr.bf16.mxu0 %v6267_v0 }
 0x827   :  { %5735 = vmatmul.mubr.msk.bf16.vlgmr.msra.gmra.mrb[56].mxu0 %vm155_vm2, %v1906_v51 }
 0x828   :  { %5745 = vmatpush3.bf16.xpose.msra.mxu0 %v2029_v11  ;;  %5746 = vmatprep.mubr.msk.bf16.mxu0 %vm6268_vm0, %v6267_v0 }
 0x829   :  { %5756 = vmatprep.subr.bf16.mxu0 %v6267_v0 }
 0x82f   :  { %5747 = vmatmul.mubr.msk.bf16.vlgmr.msra.gmra.mrb[60].mxu0 %vm155_vm2, %v2022_v54 }
 0x830   :  { %5757 = vmatpush3.bf16.xpose.msra.mxu0 %v2145_v55  ;;  %5758 = vmatprep.mubr.msk.bf16.mxu0 %vm6268_vm0, %v6267_v0 }
 0x831   :  { %5768 = vmatprep.subr.bf16.mxu0 %v6267_v0 }
 0x837   :  { %5759 = vmatmul.mubr.msk.bf16.vlgmr.msra.gmra.mrb[64].mxu0 %vm155_vm2, %v2138_v57 }
 0x838   :  { %5772 = vmatprep.mubr.msk.bf16.mxu0 %vm6268_vm0, %v6267_v0 }
 0x868   :  { %v1375_v56 = vpop.f32.mrb[36].mxu0 }
 0x869   :  { %v1381_v58 = vmul.f32 0.35355338, %v1375_v56  ;;  %v5676_v59 = vpop.f32.mrb[37].mxu0 }
 0x86a   :  { %v1378_v60 = vpop.f32.mrb[38].mxu0 }
 0x86b   :  { %v5677_v61 = vpop.f32.mrb[39].mxu0  ;;  %v1382_v62 = vsel %vm155_vm2, %v1381_v58, -inf }
 0x86c   :  { %1383 = vmax.xlane.f32.xlu0 %v1382_v62 }
 0x8da   :  { %v1489_v63 = vpop.f32.mrb[40].mxu0 }
 0x8db   :  { %v1495_v1 = vmul.f32 0.35355338, %v1489_v63  ;;  %v5688_v2 = vpop.f32.mrb[41].mxu0 }
 0x8dc   :  { %v1492_v5 = vpop.f32.mrb[42].mxu0 }
 0x8dd   :  { %v5689_v6 = vpop.f32.mrb[43].mxu0  ;;  %v1496_v7 = vsel %vm155_vm2, %v1495_v1, -inf }
 0x8de   :  { %1497 = vmax.xlane.f32.xlu1 %v1496_v7 }
 0x8e2   :  { %v1605_v8 = vpop.f32.mrb[44].mxu0 }
 0x8e3   :  { %v1611_v9 = vmul.f32 0.35355338, %v1605_v8  ;;  %v5700_v10 = vpop.f32.mrb[45].mxu0 }
 0x8e4   :  { %v1608_v12 = vpop.f32.mrb[46].mxu0 }
 0x8e5   :  { %v5701_v13 = vpop.f32.mrb[47].mxu0  ;;  %v1612_v15 = vsel %vm155_vm2, %v1611_v9, -inf }
 0x8e6   :  { %1613 = vmax.xlane.f32.xlu0 %v1612_v15 }
 0x8ea   :  { %v1721_v14 = vpop.f32.mrb[48].mxu0 }
 0x8eb   :  { %v6780_v16 = vmul.f32 0.35355338, %v1721_v14  ;;  %v5712_v17 = vpop.f32.mrb[49].mxu0 }
 0x8ec   :  { %v1724_v20 = vpop.f32.mrb[50].mxu0 }
 0x8ed   :  { %v5713_v21 = vpop.f32.mrb[51].mxu0  ;;  %v1728_v22 = vsel %vm155_vm2, %v6780_v16, -inf }
 0x8ee   :  { %1729 = vmax.xlane.f32.xlu0 %v1728_v22 }
 0x8f2   :  { %v1835_v23 = vpop.f32.mrb[52].mxu0 }
 0x8f3   :  { %v6784_v24 = vmul.f32 0.35355338, %v1835_v23  ;;  %v5724_v25 = vpop.f32.mrb[53].mxu0 }
 0x8f4   :  { %v1838_v27 = vpop.f32.mrb[54].mxu0 }
 0x8f5   :  { %v5725_v28 = vpop.f32.mrb[55].mxu0  ;;  %v1842_v29 = vsel %vm155_vm2, %v6784_v24, -inf }
 0x8f6   :  { %1843 = vmax.xlane.f32.xlu1 %v1842_v29 }
 0x8f9   :  { %v1384_v47 = vpop.xlane.xlu0 %1383 }
 0x8fa   :  { %v1949_v30 = vpop.f32.mrb[56].mxu0  ;;  %v1385_v48 = vsub.f32 %v1381_v58, %v1384_v47 }
 0x8fb   :  { %v1955_v31 = vmul.f32 0.35355338, %v1949_v30  ;;  %v5736_v32 = vpop.f32.mrb[57].mxu0 }
 0x8fc   :  { %v1952_v33 = vpop.f32.mrb[58].mxu0  ;;  %v1386_v49 = vmul.f32 1.442695, %v1385_v48 }
 0x8fd   :  { %v5737_v34 = vpop.f32.mrb[59].mxu0  ;;  %v1956_v35 = vsel %vm155_vm2, %v1955_v31, -inf }
 0x8fe   :  { %1957 = vmax.xlane.f32.xlu0 %v1956_v35  ;;  %6151 = vpow2.f32 %v1386_v49 }
 0x902   :  { %v2065_v36 = vpop.f32.mrb[60].mxu0 }
 0x903   :  { %v2071_v37 = vmul.f32 0.35355338, %v2065_v36  ;;  %v5748_v38 = vpop.f32.mrb[61].mxu0 }
 0x904   :  { %v2068_v39 = vpop.f32.mrb[62].mxu0 }
 0x905   :  { %v5749_v41 = vpop.f32.mrb[63].mxu0  ;;  %v2072_v42 = vsel %vm155_vm2, %v2071_v37, -inf }
 0x906   :  { %2073 = vmax.xlane.f32.xlu1 %v2072_v42 }
 0x908   :  { %v6795_v50 = vpop.eup %6151 }
 0x909   :  { %v1388_v51 = vsel %vm155_vm2, %v6795_v50, 0.0 }
 0x90a   :  { %v2181_v43 = vpop.f32.mrb[64].mxu0 }
 0x90b   :  { %v5760_v44 = vpop.f32.mrb[65].mxu0  ;;  %v2187_v3 = vmul.f32 0.35355338, %v2181_v43 }
 0x90c   :  { %v2184_v45 = vpop.f32.mrb[66].mxu0 }
 0x90d   :  { %v5761_v46 = vpop.f32.mrb[67].mxu0  ;;  %v2188_v4 = vsel %vm155_vm2, %v2187_v3, -inf }
 0x914   :  { %1508 = vrot.lane.b32.xlu0 %v6710_v26, %s7621_s30 }
 0x917   :  { %1395 = vrot.lane.b32.xlu1 %v6710_v26, %s7622_s25 }
 0x933   :  { %2189 = vmax.xlane.f32.xlu0 %v2188_v4 }
 0x93b   :  { %1389 = vadd.xlane.f32.xlu1 %v1388_v51 }
 0x96b   :  { %v1498_v11 = vpop.xlane.xlu1 %1497 }
 0x96c   :  { %v1499_v53 = vsub.f32 %v1495_v1, %v1498_v11 }
 0x96e   :  { %v1500_v54 = vmul.f32 1.442695, %v1499_v53 }
 0x970   :  { %6153 = vpow2.f32 %v1500_v54 }
 0x973   :  { %v1614_v55 = vpop.xlane.xlu0 %1613 }
 0x974   :  { %v1615_v57 = vsub.f32 %v1611_v9, %v1614_v55 }
 0x976   :  { %v1616_v56 = vmul.f32 1.442695, %v1615_v57 }
 0x978   :  { %6155 = vpow2.f32 %v1616_v56 }
 0x97a   :  { %v6799_v58 = vpop.eup %6153 }
 0x97b   :  { %v1502_v59 = vsel %vm155_vm2, %v6799_v58, 0.0  ;;  %v1730_v2 = vpop.xlane.xlu0 %1729 }
 0x97c   :  { %1503 = vadd.xlane.f32.xlu0 %v1502_v59  ;;  %v1731_v6 = vsub.f32 %v6780_v16, %v1730_v2 }
 0x97e   :  { %v1732_v7 = vmul.f32 1.442695, %v1731_v6 }
 0x980   :  { %6157 = vpow2.f32 %v1732_v7 }
 0x982   :  { %v6803_v60 = vpop.eup %6155 }
 0x983   :  { %v1618_v61 = vsel %vm155_vm2, %v6803_v60, 0.0  ;;  %v1844_v62 = vpop.xlane.xlu1 %1843 }
 0x984   :  { %1619 = vadd.xlane.f32.xlu1 %v1618_v61  ;;  %v1845_v8 = vsub.f32 %v6784_v24, %v1844_v62 }
 0x986   :  { %v1846_v12 = vmul.f32 1.442695, %v1845_v8 }
 0x988   :  { %6159 = vpow2.f32 %v1846_v12 }
 0x98a   :  { %v6158_v14 = vpop.eup %6157 }
 0x98b   :  { %v1958_v9 = vpop.xlane.xlu0 %1957  ;;  %v1734_v17 = vsel %vm155_vm2, %v6158_v14, 0.0 }
 0x98c   :  { %v1959_v10 = vsub.f32 %v1955_v31, %v1958_v9 }
 0x98e   :  { %v1960_v15 = vmul.f32 1.442695, %v1959_v10 }
 0x98f   :  { %v1509_v25 = vpop.permute.xlu0 %1508 }
 0x990   :  { %6161 = vpow2.f32 %v1960_v15  ;;  %v1514_v36 = vsel %vm220_vm3, %v1509_v25, 0 }
 0x992   :  { %1624 = vrot.lane.b32.xlu0 %v6710_v26, %s7623_s0  ;;  %v6816_v20 = vpop.eup %6159 }
 0x993   :  { %v2074_v63 = vpop.xlane.xlu1 %2073  ;;  %v1848_v21 = vsel %vm155_vm2, %v6816_v20, 0.0 }
 0x994   :  { %v2075_v13 = vsub.f32 %v2071_v37, %v2074_v63 }
 0x995   :  { %1740 = vrot.lane.b32.xlu1 %v6710_v26, %s7624_s26 }
 0x996   :  { %v2076_v26 = vmul.f32 1.442695, %v2075_v13 }
 0x997   :  { %v1396_v1 = vpop.permute.xlu1 %1395 }
 0x998   :  { %v1401_v5 = vsel %vm220_vm3, %v1396_v1, 0  ;;  %6163 = vpow2.f32 %v2076_v26 }
 0x999   :  { %5679 = vmatpush3.bf16.msra.mxu1 %v1401_v5 }
 0x99a   :  { %5690 = vmatprep.subr.bf16.mxu1 %v6267_v0  ;;  %v6818_v16 = vpop.eup %6161 }
 0x99b   :  { %v1962_v23 = vsel %vm155_vm2, %v6818_v16, 0.0 }
 0x9a2   :  { %v6822_v22 = vpop.eup %6163 }
 0x9a3   :  { %v2078_v24 = vsel %vm155_vm2, %v6822_v22, 0.0 }
 0x9b1   :  { %1735 = vadd.xlane.f32.xlu0 %v1734_v17 }
 0x9b5   :  { %1849 = vadd.xlane.f32.xlu0 %v1848_v21 }
 0x9b9   :  { %1963 = vadd.xlane.f32.xlu1 %v1962_v23  ;;  %2079 = vadd.xlane.f32.xlu0 %v2078_v24 }
 0x9c0   :  { %v2190_v27 = vpop.xlane.xlu0 %2189 }
 0x9c1   :  { %v2191_v28 = vsub.f32 %v2187_v3, %v2190_v27 }
 0x9c3   :  { %v2192_v29 = vmul.f32 1.442695, %v2191_v28 }
 0x9c5   :  { %6165 = vpow2.f32 %v2192_v29 }
 0x9c8   :  { %v1390_v30 = vpop.xlane.xlu1 %1389 }
 0x9c9   :  { %6167 = vrcp.f32 %v1390_v30 }
 0x9ca   :  { %1968 = vrot.lane.b32.xlu1 %v6732_v40, %s7621_s30 }
 0x9ce   :  { %2084 = vrot.lane.b32.xlu1 %v6732_v40, %s7623_s0 }
 0x9cf   :  { %v6832_v31 = vpop.eup %6165 }
 0x9d0   :  { %v2194_v32 = vsel %vm155_vm2, %v6832_v31, 0.0 }
 0x9d1   :  { %2195 = vadd.xlane.f32.xlu0 %v2194_v32 }
 0x9d2   :  { %2200 = vrot.lane.b32.xlu1 %v6732_v40, %s7624_s26 }
 0x9d3   :  { %v6168_v33 = vpop.eup %6167 }
 0x9d4   :  { %v1392_v34 = vmul.f32 %v6168_v33, %v6795_v50 }
 0x9d6   :  { %v1393_v35 = vpack.c.bf16 %v1392_v34, %v1392_v34 }
 0x9d8   :  { %5681 = vmatmul.mubr.msk.bf16.vlgmr.msra.gmra.mrb[44].mxu1 %vm155_vm2, %v1393_v35 }
 0x9d9   :  { %5691 = vmatpush3.bf16.msra.mxu1 %v1514_v36  ;;  %5692 = vmatprep.mubr.msk.bf16.mxu1 %vm6268_vm0, %v6267_v0 }
 0x9da   :  { %5702 = vmatprep.subr.bf16.mxu1 %v6267_v0 }
 0x9e7   :  { %1855 = vrot.lane.b32.xlu0 %v6732_v40, %s7622_s25 }
 0xa09   :  { %v1504_v37 = vpop.xlane.xlu0 %1503 }
 0xa0a   :  { %6169 = vrcp.f32 %v1504_v37 }
 0xa0d   :  { %v1625_v42 = vpop.permute.xlu0 %1624 }
 0xa0e   :  { %v1630_v44 = vsel %vm220_vm3, %v1625_v42, 0  ;;  %v6091_v42 = vld [vmem:[%s7535_s10] sm:$0xff]  }
 0xa0f   :  { %5769 = vmatpush3.bf16.msra.mxu0 %v6091_v42 }
 0xa10   :  { %5770 = vmatprep.subr.bf16.mxu0 %v6267_v0 }
 0xa11   :  { %v1620_v38 = vpop.xlane.xlu1 %1619 }
 0xa12   :  { %6171 = vrcp.f32 %v1620_v38 }
 0xa14   :  { %v6170_v39 = vpop.eup %6169 }
 0xa15   :  { %v1506_v41 = vmul.f32 %v6170_v39, %v6799_v58  ;;  %v1741_v46 = vpop.permute.xlu1 %1740 }
 0xa16   :  { %v1746_v48 = vsel %vm220_vm3, %v1741_v46, 0 }
 0xa17   :  { %v1507_v43 = vpack.c.bf16 %v1506_v41, %v1506_v41 }
 0xa19   :  { %5693 = vmatmul.mubr.msk.bf16.vlgmr.msra.gmra.mrb[48].mxu1 %vm155_vm2, %v1507_v43  ;;  %v6092_v43 = vld [vmem:[%s7535_s10 + $0x8] sm:$0xff]  }
 0xa1a   :  { %5703 = vmatpush3.bf16.msra.mxu1 %v1630_v44  ;;  %5704 = vmatprep.mubr.msk.bf16.mxu1 %vm6268_vm0, %v6267_v0 }
 0xa1b   :  { %5714 = vmatprep.subr.bf16.mxu1 %v6267_v0  ;;  %5771 = vmatpush3.bf16.msra.mxu0 %v6092_v43 }
 0xa1c   :  { %v6172_v40 = vpop.eup %6171  ;;  %5784 = vmatprep.subr.bf16.mxu0 %v6267_v0 }
 0xa1d   :  { %v1622_v45 = vmul.f32 %v6172_v40, %v6803_v60 }
 0xa1f   :  { %v1623_v47 = vpack.c.bf16 %v1622_v45, %v1622_v45 }
 0xa21   :  { %5705 = vmatmul.mubr.msk.bf16.vlgmr.msra.gmra.mrb[52].mxu1 %vm155_vm2, %v1623_v47 }
 0xa22   :  { %5715 = vmatpush3.bf16.msra.mxu1 %v1746_v48  ;;  %5716 = vmatprep.mubr.msk.bf16.mxu1 %vm6268_vm0, %v6267_v0 }
 0xa23   :  { %5726 = vmatprep.subr.bf16.mxu1 %v6267_v0 }
 0xa3e   :  { %v1736_v49 = vpop.xlane.xlu0 %1735 }
 0xa3f   :  { %6173 = vrcp.f32 %v1736_v49 }
 0xa42   :  { %v1850_v51 = vpop.xlane.xlu0 %1849 }
 0xa43   :  { %6175 = vrcp.f32 %v1850_v51 }
 0xa46   :  { %v1964_v11 = vpop.xlane.xlu1 %1963  ;;  %v2080_v53 = vpop.xlane.xlu0 %2079 }
 0xa47   :  { %6177 = vrcp.f32 %v1964_v11 }
 0xa48   :  { %6179 = vrcp.f32 %v2080_v53 }
 0xa49   :  { %v6174_v3 = vpop.eup %6173 }
 0xa4a   :  { %v1738_v4 = vmul.f32 %v6174_v3, %v6158_v14  ;;  %v1969_v59 = vpop.permute.xlu1 %1968 }
 0xa4b   :  { %v1974_v62 = vsel %vm220_vm3, %v1969_v59, 0 }
 0xa4c   :  { %v1739_v50 = vpack.c.bf16 %v1738_v4, %v1738_v4 }
 0xa4d   :  { %v6176_v54 = vpop.eup %6175 }
 0xa4e   :  { %5717 = vmatmul.mubr.msk.bf16.vlgmr.msra.gmra.mrb[56].mxu1 %vm155_vm2, %v1739_v50  ;;  %v1852_v57 = vmul.f32 %v6176_v54, %v6816_v20  ;;  %v2085_v1 = vpop.permute.xlu1 %2084 }
 0xa4f   :  { %5728 = vmatprep.mubr.msk.bf16.mxu1 %vm6268_vm0, %v6267_v0  ;;  %v2090_v6 = vsel %vm220_vm3, %v2085_v1, 0 }
 0xa50   :  { %v1853_v60 = vpack.c.bf16 %v1852_v57, %v1852_v57 }
 0xa51   :  { %v6178_v61 = vpop.eup %6177 }
 0xa52   :  { %v1966_v63 = vmul.f32 %v6178_v61, %v6818_v16  ;;  %v6180_v5 = vpop.eup %6179  ;;  %v2201_v8 = vpop.permute.xlu1 %2200 }
 0xa53   :  { %v2082_v7 = vmul.f32 %v6180_v5, %v6822_v22  ;;  %v2206_v12 = vsel %vm220_vm3, %v2201_v8, 0 }
 0xa54   :  { %v1967_v2 = vpack.c.bf16 %v1966_v63, %v1966_v63 }
 0xa55   :  { %v2083_v9 = vpack.c.bf16 %v2082_v7, %v2082_v7 }
 0xa5e   :  { %v2196_v55 = vpop.xlane.xlu0 %2195 }
 0xa5f   :  { %6181 = vrcp.f32 %v2196_v55 }
 0xa62   :  { %v1856_v56 = vpop.permute.xlu0 %1855 }
 0xa63   :  { %v1861_v58 = vsel %vm220_vm3, %v1856_v56, 0 }
 0xa64   :  { %5727 = vmatpush3.bf16.msra.mxu1 %v1861_v58  ;;  %v5230_v58 = vld [vmem:[%s7536_s11] ss:$0 sm:$0xff]  ;;  %s7636_s11 = sld [smem:[#allocation14_spill]] }
 0xa65   :  { %5738 = vmatprep.subr.bf16.mxu1 %v6267_v0 }
 0xa67   :  { %5729 = vmatmul.mubr.msk.bf16.vlgmr.msra.gmra.mrb[60].mxu1 %vm155_vm2, %v1853_v60 }
 0xa68   :  { %5739 = vmatpush3.bf16.msra.mxu1 %v1974_v62  ;;  %5740 = vmatprep.mubr.msk.bf16.mxu1 %vm6268_vm0, %v6267_v0 }
 0xa69   :  { %5750 = vmatprep.subr.bf16.mxu1 %v6267_v0  ;;  %v6182_v10 = vpop.eup %6181 }
 0xa6a   :  { %v2198_v13 = vmul.f32 %v6182_v10, %v6832_v31 }
 0xa6c   :  { %v2199_v15 = vpack.c.bf16 %v2198_v13, %v2198_v13  ;;  %v6095_v13 = vld [vmem:[%s7538_s20] sm:$0xff]  }
 0xa6f   :  { %5741 = vmatmul.mubr.msk.bf16.vlgmr.msra.gmra.mrb[64].mxu1 %vm155_vm2, %v1967_v2 }
 0xa70   :  { %5751 = vmatpush3.bf16.msra.mxu1 %v2090_v6  ;;  %5752 = vmatprep.mubr.msk.bf16.mxu1 %vm6268_vm0, %v6267_v0 }
 0xa71   :  { %5762 = vmatprep.subr.bf16.mxu1 %v6267_v0 }
 0xa77   :  { %5753 = vmatmul.mubr.msk.bf16.vlgmr.msra.gmra.mrb[68].mxu1 %vm155_vm2, %v2083_v9 }
 0xa78   :  { %5763 = vmatpush3.bf16.msra.mxu1 %v2206_v12  ;;  %5764 = vmatprep.mubr.msk.bf16.mxu1 %vm6268_vm0, %v6267_v0 }
 0xa79   :  { %5776 = vmatprep.subr.bf16.mxu1 %v6267_v0 }
 0xa7f   :  { %5765 = vmatmul.mubr.msk.bf16.vlgmr.msra.gmra.mrb[72].mxu1 %vm155_vm2, %v2199_v15  ;;  %v6096_v15 = vld [vmem:[%s7538_s20 + $0x8] sm:$0xff]  }
 0xa80   :  { %5780 = vmatprep.mubr.msk.bf16.mxu1 %vm6268_vm0, %v6267_v0 }
 0xaab   :  { %v1437_v26 = vpop.f32.mrb[44].mxu1 }
 0xaac   :  { %1443 = vst.msk [vmem:[#allocation2] sm:$0xff] %vm155_vm2, %v1437_v26  ;;  %v5682_v14 = vpop.f32.mrb[45].mxu1 }
 0xaad   :  { %v1440_v17 = vpop.f32.mrb[46].mxu1 }
 0xaae   :  { %v5683_v20 = vpop.f32.mrb[47].mxu1 }
 0xaec   :  { %v1550_v16 = vpop.f32.mrb[48].mxu1 }
 0xaed   :  { %1557 = vrot.lane.b32.xlu1 %v1550_v16, %s7625_s1  ;;  %v5694_v21 = vpop.f32.mrb[49].mxu1 }
 0xaee   :  { %v1553_v22 = vpop.f32.mrb[50].mxu1 }
 0xaef   :  { %v5695_v23 = vpop.f32.mrb[51].mxu1 }
 0xaf4   :  { %v1666_v24 = vpop.f32.mrb[52].mxu1 }
 0xaf5   :  { %1673 = vrot.lane.b32.xlu0 %v1666_v24, %s7626_s5  ;;  %v5706_v25 = vpop.f32.mrb[53].mxu1 }
 0xaf6   :  { %v1669_v27 = vpop.f32.mrb[54].mxu1 }
 0xaf7   :  { %v5707_v28 = vpop.f32.mrb[55].mxu1 }
 0xb21   :  { %v1782_v29 = vpop.f32.mrb[56].mxu1 }
 0xb22   :  { %1789 = vrot.lane.b32.xlu0 %v1782_v29, %s7627_s24  ;;  %v5718_v30 = vpop.f32.mrb[57].mxu1 }
 0xb23   :  { %v1785_v31 = vpop.f32.mrb[58].mxu1 }
 0xb24   :  { %v5719_v32 = vpop.f32.mrb[59].mxu1 }
 0xb3a   :  { %v1897_v33 = vpop.f32.mrb[60].mxu1 }
 0xb3b   :  { %1903 = vst.msk [vmem:[#allocation2 + $0x8] sm:$0xff] %vm155_vm2, %v1897_v33  ;;  %v5730_v34 = vpop.f32.mrb[61].mxu1 }
 0xb3c   :  { %v1900_v35 = vpop.f32.mrb[62].mxu1  ;;  %v5234_v34 = vld [vmem:[%s7539_s14] ss:$0 sm:$0xff] }
 0xb3d   :  { %v5731_v36 = vpop.f32.mrb[63].mxu1 }
 0xb42   :  { %v2010_v37 = vpop.f32.mrb[64].mxu1 }
 0xb43   :  { %2017 = vrot.lane.b32.xlu1 %v2010_v37, %s7625_s1  ;;  %v5742_v38 = vpop.f32.mrb[65].mxu1 }
 0xb44   :  { %v2013_v39 = vpop.f32.mrb[66].mxu1 }
 0xb45   :  { %v5743_v41 = vpop.f32.mrb[67].mxu1  ;;  %v5235_v39 = vld [vmem:[%s7540_s15] ss:$0 sm:$0xff] }
 0xb4a   :  { %v2126_v44 = vpop.f32.mrb[68].mxu1 }
 0xb4b   :  { %2133 = vrot.lane.b32.xlu1 %v2126_v44, %s7626_s5  ;;  %v5754_v40 = vpop.f32.mrb[69].mxu1 }
 0xb4c   :  { %v2129_v45 = vpop.f32.mrb[70].mxu1  ;;  %v6097_v40 = vld [vmem:[%s7538_s20 + $0x10] sm:$0xff]  }
 0xb4d   :  { %v5755_v46 = vpop.f32.mrb[71].mxu1  ;;  %v6098_v45 = vld [vmem:[%s7538_s20 + $0x18] sm:$0xff]  }
 0xb4e   :  { %v5236_v46 = vld [vmem:[%s7541_s19] ss:$0 sm:$0xff] }
 0xb52   :  { %v2242_v47 = vpop.f32.mrb[72].mxu1 }
 0xb53   :  { %2249 = vrot.lane.b32.xlu1 %v2242_v47, %s7627_s24  ;;  %v5766_v48 = vpop.f32.mrb[73].mxu1 }
 0xb54   :  { %v2245_v49 = vpop.f32.mrb[74].mxu1 }
 0xb55   :  { %v5767_v3 = vpop.f32.mrb[75].mxu1 }
 0xb5f   :  { %v1558_v4 = vpop.permute.xlu1 %1557 }
 0xb60   :  { %1560 = vst.msk [vmem:[#allocation2] sm:$0xff] %vm380_vm4, %v1558_v4 }
 0xb67   :  { %v1674_v50 = vpop.permute.xlu0 %1673 }
 0xb68   :  { %1676 = vst.msk [vmem:[#allocation2] sm:$0xff] %vm497_vm5, %v1674_v50 }
 0xb94   :  { %v1790_v51 = vpop.permute.xlu0 %1789 }
 0xb95   :  { %1792 = vst.msk [vmem:[#allocation2] sm:$0xff] %vm614_vm6, %v1790_v51 }
 0xb9c   :  { %v2253_v55 = vld [vmem:[#allocation2] sm:$0xff] }
 0xbb5   :  { %v2018_v11 = vpop.permute.xlu1 %2017 }
 0xbb6   :  { %2020 = vst.msk [vmem:[#allocation2 + $0x8] sm:$0xff] %vm380_vm4, %v2018_v11 }
 0xbbd   :  { %v2134_v53 = vpop.permute.xlu1 %2133 }
 0xbbe   :  { %2136 = vst.msk [vmem:[#allocation2 + $0x8] sm:$0xff] %vm497_vm5, %v2134_v53 }
 0xbc5   :  { %v2250_v54 = vpop.permute.xlu1 %2249 }
 0xbc6   :  { %2252 = vst.msk [vmem:[#allocation2 + $0x8] sm:$0xff] %vm614_vm6, %v2250_v54  ;;  %v5240_v54 = vld [vmem:[%s7542_s21] ss:$0 sm:$0xff] }
 0xbcd   :  { %v2254_v57 = vld [vmem:[#allocation2 + $0x8] sm:$0xff] }
 0xbce   :  { %v2255_v56 = vpack.c.bf16 %v2254_v57, %v2253_v55 }
 0xbd0   :  { %5773 = vmatmul.mubr.msk.bf16.vlgmr.msra.gmra.mrb[68].mxu0 %vm106_vm1, %v2255_v56 }
 0xbd1   :  { %5792 = vmatprep.mubr.msk.bf16.mxu0 %vm6268_vm0, %v6267_v0  ;;  %5785 = vmatpush3.bf16.msra.mxu0 %v6095_v13 }
 0xbd2   :  { %5786 = vmatprep.subr.bf16.mxu0 %v6267_v0 }
 0xbd5   :  { %5787 = vmatpush3.bf16.msra.mxu0 %v6096_v15 }
 0xbd6   :  { %5788 = vmatprep.subr.bf16.mxu0 %v6267_v0 }
 0xbd9   :  { %5789 = vmatpush3.bf16.msra.mxu0 %v6097_v40 }
 0xbda   :  { %5790 = vmatprep.subr.bf16.mxu0 %v6267_v0 }
 0xbdd   :  { %5791 = vmatpush3.bf16.msra.mxu0 %v6098_v45 }
 0xbde   :  { %5810 = vmatprep.subr.bf16.mxu0 %v6267_v0 }
 0xca3   :  { %v2316_v59 = vpop.f32.mrb[68].mxu0 }
 0xca4   :  { %v2317_v60 = vadd.f32 %v5230_v58, %v2316_v59  ;;  %v5774_v61 = vpop.f32.mrb[69].mxu0 }
 0xca5   :  { %v2319_v62 = vpop.f32.mrb[70].mxu0 }
 0xca6   :  { %v2323_v63 = vadd.f32 %v2317_v60, %v6698_v18  ;;  %v2320_v1 = vadd.f32 %v5230_v58, %v2319_v62  ;;  %v5775_v2 = vpop.f32.mrb[71].mxu0  ;;  %v6093_v18 = vld [vmem:[%s7537_s18] sm:$0xff]  }
 0xca7   :  { %5777 = vmatpush3.bf16.msra.mxu1 %v6093_v18 }
 0xca8   :  { %v2324_v5 = vadd.f32 %v2320_v1, %v6700_v19  ;;  %v2327_v6 = vsel %vm106_vm1, %v2323_v63, 0.0  ;;  %v2335_v7 = vmul.f32 %v2323_v63, %v2323_v63  ;;  %v6094_v19 = vld [vmem:[%s7537_s18 + $0x8] sm:$0xff]   ;;  %5778 = vmatprep.subr.bf16.mxu1 %v6267_v0 }
 0xca9   :  { %2328 = vadd.xlane.f32.xlu0 %v2327_v6 }
 0xcaa   :  { %v2330_v8 = vsel %vm106_vm1, %v2324_v5, 0.0  ;;  %v2337_v9 = vsel %vm106_vm1, %v2335_v7, 0.0  ;;  %v2336_v10 = vmul.f32 %v2324_v5, %v2324_v5 }
 0xcab   :  { %2331 = vadd.xlane.f32.xlu1 %v2330_v8  ;;  %5779 = vmatpush3.bf16.msra.mxu1 %v6094_v19  ;;  %v6099_v8 = vld [vmem:[%s7610_s27 + $0x10] sm:$0xff]  }
 0xcac   :  { %v2340_v12 = vsel %vm106_vm1, %v2336_v10, 0.0  ;;  %5796 = vmatprep.subr.bf16.mxu1 %v6267_v0 }
 0xcad   :  { %2338 = vadd.xlane.f32.xlu0 %v2337_v9  ;;  %v6100_v9 = vld [vmem:[%s7610_s27 + $0x18] sm:$0xff]   ;;  %s7632_s27 = smov 40  }
 0xcb1   :  { %2341 = vadd.xlane.f32.xlu0 %v2340_v12 }
 0xd36   :  { %v2329_v26 = vpop.xlane.xlu0 %2328 }
 0xd37   :  { %v2333_v14 = vmul.f32 0.03125, %v2329_v26 }
 0xd38   :  { %v2332_v17 = vpop.xlane.xlu1 %2331 }
 0xd39   :  { %v2345_v16 = vmul.f32 %v2333_v14, %v2333_v14  ;;  %v2334_v21 = vmul.f32 0.03125, %v2332_v17  ;;  %v2349_v31 = vsub.f32 %v2323_v63, %v2333_v14 }
 0xd3a   :  { %v2339_v20 = vpop.xlane.xlu0 %2338 }
 0xd3b   :  { %v2343_v22 = vmul.f32 0.03125, %v2339_v20  ;;  %v2346_v25 = vmul.f32 %v2334_v21, %v2334_v21  ;;  %v2350_v35 = vsub.f32 %v2324_v5, %v2334_v21 }
 0xd3d   :  { %v2347_v23 = vsub.f32 %v2343_v22, %v2345_v16 }
 0xd3e   :  { %v2342_v24 = vpop.xlane.xlu0 %2341 }
 0xd3f   :  { %v2351_v27 = vadd.f32 1e-05, %v2347_v23  ;;  %v2344_v28 = vmul.f32 0.03125, %v2342_v24 }
 0xd41   :  { %6183 = vrsqrt.f32 %v2351_v27  ;;  %v2348_v29 = vsub.f32 %v2344_v28, %v2346_v25  ;;  %v5246_v27 = vld [vmem:[%s7543_s16] ss:$0 sm:$0xff] }
 0xd43   :  { %v2352_v30 = vadd.f32 1e-05, %v2348_v29 }
 0xd45   :  { %6185 = vrsqrt.f32 %v2352_v30 }
 0xd4b   :  { %v6184_v32 = vpop.eup %6183 }
 0xd4c   :  { %v2355_v33 = vmul.f32 %v6184_v32, %v2349_v31 }
 0xd4e   :  { %v2363_v38 = vmul.f32 %v5234_v34, %v2355_v33  ;;  %v5247_v33 = vld [vmem:[%s7544_s17] ss:$0 sm:$0xff] }
 0xd4f   :  { %v6186_v36 = vpop.eup %6185 }
 0xd50   :  { %v2356_v37 = vmul.f32 %v6186_v36, %v2350_v35  ;;  %v2371_v42 = vadd.f32 %v5235_v39, %v2363_v38  ;;  %v5253_v38 = vld [vmem:[%s7612_s12 + $0x1] ss:$0 sm:$0xff]  ;;  %s7629_s12 = smov 56  }
 0xd52   :  { %v2364_v41 = vmul.f32 %v5234_v34, %v2356_v37 }
 0xd54   :  { %v2372_v43 = vadd.f32 %v5235_v39, %v2364_v41 }
 0xd56   :  { %v2373_v44 = vpack.c.bf16 %v2372_v43, %v2371_v42 }
 0xd58   :  { %5781 = vmatmul.mubr.msk.bf16.vlgmr.msra.gmra.mrb[76].mxu1 %vm106_vm1, %v2373_v44 }
 0xd59   :  { %5800 = vmatprep.mubr.msk.bf16.mxu1 %vm6268_vm0, %v6267_v0  ;;  %5797 = vmatpush3.bf16.msra.mxu1 %v6099_v8 }
 0xd5a   :  { %5798 = vmatprep.subr.bf16.mxu1 %v6267_v0 }
 0xd5d   :  { %5799 = vmatpush3.bf16.msra.mxu1 %v6100_v9 }
 0xd5e   :  { %5804 = vmatprep.subr.bf16.mxu1 %v6267_v0 }
 0xe2b   :  { %v2434_v47 = vpop.f32.mrb[76].mxu1 }
 0xe2c   :  { %v2435_v48 = vadd.f32 %v5236_v46, %v2434_v47  ;;  %v5782_v49 = vpop.f32.mrb[77].mxu1 }
 0xe2d   :  { %v2437_v3 = vpop.f32.mrb[78].mxu1 }
 0xe2e   :  { %v2438_v4 = vadd.f32 %v5236_v46, %v2437_v3  ;;  %v5783_v50 = vpop.f32.mrb[79].mxu1  ;;  %v2441_v51 = vmax.f32 %v2435_v48, 0.0 }
 0xe30   :  { %v2442_v11 = vmax.f32 %v2438_v4, 0.0 }
 0xe32   :  { %v2443_v53 = vpack.c.bf16 %v2442_v11, %v2441_v51 }
 0xe34   :  { %5793 = vmatmul.mubr.msk.bf16.vlgmr.msra.gmra.mrb[72].mxu0 %vm2483_vm7, %v2443_v53 }
 0xe35   :  { %5812 = vmatprep.mubr.msk.bf16.mxu0 %vm6268_vm0, %v6267_v0 }
 0xf07   :  { %v2521_v55 = vpop.f32.mrb[72].mxu0 }
 0xf08   :  { %v2522_v57 = vadd.f32 %v5240_v54, %v2521_v55  ;;  %v5794_v56 = vpop.f32.mrb[73].mxu0 }
 0xf09   :  { %v2524_v58 = vpop.f32.mrb[74].mxu0 }
 0xf0a   :  { %v2528_v59 = vadd.f32 %v2522_v57, %v2371_v42  ;;  %v2525_v60 = vadd.f32 %v5240_v54, %v2524_v58  ;;  %v5795_v61 = vpop.f32.mrb[75].mxu0 }
 0xf0c   :  { %v2529_v62 = vadd.f32 %v2525_v60, %v2372_v43  ;;  %v2532_v63 = vsel %vm106_vm1, %v2528_v59, 0.0  ;;  %v2540_v1 = vmul.f32 %v2528_v59, %v2528_v59 }
 0xf0d   :  { %2533 = vadd.xlane.f32.xlu1 %v2532_v63 }
 0xf0e   :  { %v2535_v2 = vsel %vm106_vm1, %v2529_v62, 0.0  ;;  %v2541_v5 = vmul.f32 %v2529_v62, %v2529_v62  ;;  %v2542_v6 = vsel %vm106_vm1, %v2540_v1, 0.0 }
 0xf0f   :  { %2536 = vadd.xlane.f32.xlu0 %v2535_v2 }
 0xf10   :  { %v2545_v7 = vsel %vm106_vm1, %v2541_v5, 0.0 }
 0xf11   :  { %2543 = vadd.xlane.f32.xlu1 %v2542_v6 }
 0xf13   :  { %2546 = vadd.xlane.f32.xlu0 %v2545_v7 }
 0xf9a   :  { %v2534_v10 = vpop.xlane.xlu1 %2533 }
 0xf9b   :  { %v2538_v12 = vmul.f32 0.03125, %v2534_v10 }
 0xf9c   :  { %v2537_v18 = vpop.xlane.xlu0 %2536 }
 0xf9d   :  { %v2539_v19 = vmul.f32 0.03125, %v2537_v18  ;;  %v2550_v15 = vmul.f32 %v2538_v12, %v2538_v12  ;;  %v2554_v24 = vsub.f32 %v2528_v59, %v2538_v12 }
 0xf9e   :  { %v2544_v13 = vpop.xlane.xlu1 %2543 }
 0xf9f   :  { %v2548_v26 = vmul.f32 0.03125, %v2544_v13  ;;  %v2551_v17 = vmul.f32 %v2539_v19, %v2539_v19  ;;  %v2555_v28 = vsub.f32 %v2529_v62, %v2539_v19 }
 0xfa0   :  { %v2547_v14 = vpop.xlane.xlu0 %2546 }
 0xfa1   :  { %v2552_v20 = vsub.f32 %v2548_v26, %v2550_v15  ;;  %v2549_v16 = vmul.f32 0.03125, %v2547_v14 }
 0xfa3   :  { %v2556_v21 = vadd.f32 1e-05, %v2552_v20  ;;  %v2553_v22 = vsub.f32 %v2549_v16, %v2551_v17 }
 0xfa5   :  { %6187 = vrsqrt.f32 %v2556_v21  ;;  %v2557_v23 = vadd.f32 1e-05, %v2553_v22 }
 0xfa7   :  { %6189 = vrsqrt.f32 %v2557_v23 }
 0xfaf   :  { %v6188_v25 = vpop.eup %6187 }
 0xfb0   :  { %v2560_v29 = vmul.f32 %v6188_v25, %v2554_v24 }
 0xfb1   :  { %v6190_v30 = vpop.eup %6189 }
 0xfb2   :  { %v2561_v31 = vmul.f32 %v6190_v30, %v2555_v28  ;;  %v2568_v32 = vmul.f32 %v5246_v27, %v2560_v29 }
 0xfb4   :  { %v2569_v34 = vmul.f32 %v5246_v27, %v2561_v31  ;;  %v6979_v35 = vadd.f32 %v5247_v33, %v2568_v32 }
 0xfb6   :  { %v6981_v36 = vadd.f32 %v5247_v33, %v2569_v34 }
 0xfb8   :  { %v2578_v37 = vpack.c.bf16 %v6981_v36, %v6979_v35 }
 0xfba   :  { %5801 = vmatmul.mubr.msk.bf16.vlgmr.msra.gmra.mrb[80].mxu1 %vm106_vm1, %v2578_v37 }
 0xfbb   :  { %5806 = vmatprep.mubr.msk.bf16.mxu1 %vm6268_vm0, %v6267_v0 }
0x108d   :  { %v2641_v39 = vpop.f32.mrb[80].mxu1 }
0x108e   :  { %v2642_v41 = vadd.f32 %v5253_v38, %v2641_v39  ;;  %v5802_v42 = vpop.f32.mrb[81].mxu1 }
0x108f   :  { %v2644_v43 = vpop.f32.mrb[82].mxu1 }
0x1090   :  { %v6991_v44 = vpack.c.bf16 %v2642_v41, %v2642_v41  ;;  %v5803_v40 = vpop.f32.mrb[83].mxu1  ;;  %v2645_v45 = vadd.f32 %v5253_v38, %v2644_v43 }
0x1092   :  { %2762 = vrot.lane.b32.xlu0 %v6991_v44, %s7621_s30  ;;  %2650 = vrot.lane.b32.xlu1 %v6991_v44, %s7622_s25  ;;  %v7005_v46 = vpack.c.bf16 %v2645_v45, %v2645_v45 }
0x1096   :  { %2876 = vrot.lane.b32.xlu0 %v6991_v44, %s7619_s4  ;;  %2760 = vrot.lane.b32.xlu1 %v6991_v44, %s7628_s23 }
0x109a   :  { %2992 = vrot.lane.b32.xlu0 %v6991_v44, %s7620_s8  ;;  %2878 = vrot.lane.b32.xlu1 %v6991_v44, %s7623_s0 }
0x109e   :  { %2994 = vrot.lane.b32.xlu1 %v6991_v44, %s7624_s26  ;;  %3222 = vrot.lane.b32.xlu0 %v7005_v46, %s7621_s30 }
0x10a2   :  { %3338 = vrot.lane.b32.xlu0 %v7005_v46, %s7623_s0  ;;  %3110 = vrot.lane.b32.xlu1 %v7005_v46, %s7622_s25 }
0x10a6   :  { %3454 = vrot.lane.b32.xlu0 %v7005_v46, %s7624_s26  ;;  %3220 = vrot.lane.b32.xlu1 %v7005_v46, %s7628_s23 }
0x10aa   :  { %3336 = vrot.lane.b32.xlu1 %v7005_v46, %s7619_s4 }
0x10ae   :  { %3452 = vrot.lane.b32.xlu1 %v7005_v46, %s7620_s8 }
0x1104   :  { %v2651_v47 = vpop.permute.xlu1 %2650  ;;  %v2763_v49 = vpop.permute.xlu0 %2762 }
0x1105   :  { %v2656_v48 = vsel %vm155_vm2, %v2651_v47, 0  ;;  %v2768_v4 = vsel %vm155_vm2, %v2763_v49, 0 }
0x1106   :  { %5805 = vmatpush3.bf16.xpose.msra.mxu1 %v2656_v48 }
0x1107   :  { %5816 = vmatprep.subr.bf16.mxu1 %v6267_v0 }
0x1108   :  { %v2761_v3 = vpop.permute.xlu1 %2760  ;;  %v2877_v53 = vpop.permute.xlu0 %2876 }
0x110c   :  { %v2879_v50 = vpop.permute.xlu1 %2878  ;;  %v2993_v57 = vpop.permute.xlu0 %2992 }
0x110d   :  { %5807 = vmatmul.mubr.msk.bf16.vlgmr.msra.gmra.mrb[84].mxu1 %vm155_vm2, %v6991_v44  ;;  %v2884_v51 = vsel %vm155_vm2, %v2879_v50, 0 }
0x110e   :  { %5817 = vmatpush3.bf16.xpose.msra.mxu1 %v2768_v4  ;;  %5818 = vmatprep.mubr.msk.bf16.mxu1 %vm6268_vm0, %v6267_v0 }
0x110f   :  { %5828 = vmatprep.subr.bf16.mxu1 %v6267_v0 }
0x1110   :  { %v2995_v11 = vpop.permute.xlu1 %2994  ;;  %v3223_v58 = vpop.permute.xlu0 %3222 }
0x1111   :  { %v3000_v54 = vsel %vm155_vm2, %v2995_v11, 0  ;;  %v3228_v59 = vsel %vm155_vm2, %v3223_v58, 0 }
0x1114   :  { %v3111_v55 = vpop.permute.xlu1 %3110  ;;  %v3339_v60 = vpop.permute.xlu0 %3338 }
0x1115   :  { %5819 = vmatmul.mubr.msk.bf16.vlgmr.msra.gmra.mrb[88].mxu1 %vm155_vm2, %v2761_v3  ;;  %v3116_v56 = vsel %vm155_vm2, %v3111_v55, 0  ;;  %v3344_v62 = vsel %vm155_vm2, %v3339_v60, 0 }
0x1116   :  { %5829 = vmatpush3.bf16.xpose.msra.mxu1 %v2884_v51  ;;  %5830 = vmatprep.mubr.msk.bf16.mxu1 %vm6268_vm0, %v6267_v0 }
0x1117   :  { %5840 = vmatprep.subr.bf16.mxu1 %v6267_v0 }
0x1118   :  { %v3221_v61 = vpop.permute.xlu1 %3220  ;;  %v3455_v63 = vpop.permute.xlu0 %3454 }
0x1119   :  { %v3460_v2 = vsel %vm155_vm2, %v3455_v63, 0 }
0x111c   :  { %v3337_v1 = vpop.permute.xlu1 %3336 }
0x111d   :  { %5831 = vmatmul.mubr.msk.bf16.vlgmr.msra.gmra.mrb[92].mxu1 %vm155_vm2, %v2877_v53 }
0x111e   :  { %5841 = vmatpush3.bf16.xpose.msra.mxu1 %v3000_v54  ;;  %5842 = vmatprep.mubr.msk.bf16.mxu1 %vm6268_vm0, %v6267_v0 }
0x111f   :  { %5852 = vmatprep.subr.bf16.mxu1 %v6267_v0 }
0x1120   :  { %v3453_v5 = vpop.permute.xlu1 %3452 }
0x1125   :  { %5843 = vmatmul.mubr.msk.bf16.vlgmr.msra.gmra.mrb[96].mxu1 %vm155_vm2, %v2993_v57 }
0x1126   :  { %5853 = vmatpush3.bf16.xpose.msra.mxu1 %v3116_v56  ;;  %5854 = vmatprep.mubr.msk.bf16.mxu1 %vm6268_vm0, %v6267_v0 }
0x1127   :  { %5864 = vmatprep.subr.bf16.mxu1 %v6267_v0 }
0x112d   :  { %5855 = vmatmul.mubr.msk.bf16.vlgmr.msra.gmra.mrb[100].mxu1 %vm155_vm2, %v7005_v46 }
0x112e   :  { %5865 = vmatpush3.bf16.xpose.msra.mxu1 %v3228_v59  ;;  %5866 = vmatprep.mubr.msk.bf16.mxu1 %vm6268_vm0, %v6267_v0 }
0x112f   :  { %5876 = vmatprep.subr.bf16.mxu1 %v6267_v0 }
0x1135   :  { %5867 = vmatmul.mubr.msk.bf16.vlgmr.msra.gmra.mrb[104].mxu1 %vm155_vm2, %v3221_v61 }
0x1136   :  { %5877 = vmatpush3.bf16.xpose.msra.mxu1 %v3344_v62  ;;  %5878 = vmatprep.mubr.msk.bf16.mxu1 %vm6268_vm0, %v6267_v0 }
0x1137   :  { %5888 = vmatprep.subr.bf16.mxu1 %v6267_v0 }
0x113d   :  { %5879 = vmatmul.mubr.msk.bf16.vlgmr.msra.gmra.mrb[108].mxu1 %vm155_vm2, %v3337_v1 }
0x113e   :  { %5889 = vmatpush3.bf16.xpose.msra.mxu1 %v3460_v2  ;;  %5890 = vmatprep.mubr.msk.bf16.mxu1 %vm6268_vm0, %v6267_v0 }
0x113f   :  { %5900 = vmatprep.subr.bf16.mxu1 %v6267_v0 }
0x1145   :  { %5891 = vmatmul.mubr.msk.bf16.vlgmr.msra.gmra.mrb[112].mxu1 %vm155_vm2, %v3453_v5 }
0x1146   :  { %5904 = vmatprep.mubr.msk.bf16.mxu1 %vm6268_vm0, %v6267_v0 }
0x11e0   :  { %v2692_v6 = vpop.f32.mrb[84].mxu1 }
0x11e1   :  { %v2698_v7 = vmul.f32 0.35355338, %v2692_v6  ;;  %v5808_v8 = vpop.f32.mrb[85].mxu1 }
0x11e2   :  { %v2695_v9 = vpop.f32.mrb[86].mxu1 }
0x11e3   :  { %v5809_v10 = vpop.f32.mrb[87].mxu1  ;;  %v2699_v12 = vsel %vm155_vm2, %v2698_v7, -inf }
0x11e4   :  { %2700 = vmax.xlane.f32.xlu0 %v2699_v12 }
0x11e8   :  { %v2804_v18 = vpop.f32.mrb[88].mxu1 }
0x11e9   :  { %v2810_v19 = vmul.f32 0.35355338, %v2804_v18  ;;  %v5820_v13 = vpop.f32.mrb[89].mxu1 }
0x11ea   :  { %v2807_v15 = vpop.f32.mrb[90].mxu1 }
0x11eb   :  { %v5821_v26 = vpop.f32.mrb[91].mxu1  ;;  %v2811_v14 = vsel %vm155_vm2, %v2810_v19, -inf }
0x11ec   :  { %2812 = vmax.xlane.f32.xlu1 %v2811_v14 }
0x11f0   :  { %v2920_v17 = vpop.f32.mrb[92].mxu1 }
0x11f1   :  { %v2926_v20 = vmul.f32 0.35355338, %v2920_v17  ;;  %v5832_v16 = vpop.f32.mrb[93].mxu1 }
0x11f2   :  { %v2923_v21 = vpop.f32.mrb[94].mxu1 }
0x11f3   :  { %v5833_v22 = vpop.f32.mrb[95].mxu1  ;;  %v2927_v23 = vsel %vm155_vm2, %v2926_v20, -inf }
0x11f4   :  { %2928 = vmax.xlane.f32.xlu0 %v2927_v23 }
0x11f8   :  { %v3036_v24 = vpop.f32.mrb[96].mxu1 }
0x11f9   :  { %v7068_v25 = vmul.f32 0.35355338, %v3036_v24  ;;  %v5844_v27 = vpop.f32.mrb[97].mxu1 }
0x11fa   :  { %v3039_v28 = vpop.f32.mrb[98].mxu1 }
0x11fb   :  { %v5845_v29 = vpop.f32.mrb[99].mxu1  ;;  %v3043_v30 = vsel %vm155_vm2, %v7068_v25, -inf }
0x11fc   :  { %3044 = vmax.xlane.f32.xlu0 %v3043_v30 }
0x1200   :  { %v3152_v31 = vpop.f32.mrb[100].mxu1 }
0x1201   :  { %v7072_v32 = vmul.f32 0.35355338, %v3152_v31  ;;  %v5856_v33 = vpop.f32.mrb[101].mxu1 }
0x1202   :  { %v3155_v34 = vpop.f32.mrb[102].mxu1 }
0x1203   :  { %v5857_v37 = vpop.f32.mrb[103].mxu1  ;;  %v3159_v38 = vsel %vm155_vm2, %v7072_v32, -inf }
0x1204   :  { %3160 = vmax.xlane.f32.xlu1 %v3159_v38 }
0x1208   :  { %v3264_v39 = vpop.f32.mrb[104].mxu1 }
0x1209   :  { %v3270_v41 = vmul.f32 0.35355338, %v3264_v39  ;;  %v5868_v42 = vpop.f32.mrb[105].mxu1 }
0x120a   :  { %v3267_v43 = vpop.f32.mrb[106].mxu1 }
0x120b   :  { %v5869_v40 = vpop.f32.mrb[107].mxu1  ;;  %v3271_v45 = vsel %vm155_vm2, %v3270_v41, -inf }
0x120c   :  { %3272 = vmax.xlane.f32.xlu0 %v3271_v45 }
0x1210   :  { %v3380_v47 = vpop.f32.mrb[108].mxu1 }
0x1211   :  { %v3386_v48 = vmul.f32 0.35355338, %v3380_v47  ;;  %v5880_v49 = vpop.f32.mrb[109].mxu1 }
0x1212   :  { %v3383_v3 = vpop.f32.mrb[110].mxu1 }
0x1213   :  { %v5881_v4 = vpop.f32.mrb[111].mxu1  ;;  %v3387_v50 = vsel %vm155_vm2, %v3386_v48, -inf }
0x1214   :  { %3388 = vmax.xlane.f32.xlu1 %v3387_v50 }
0x1218   :  { %v3496_v51 = vpop.f32.mrb[112].mxu1 }
0x1219   :  { %v5892_v11 = vpop.f32.mrb[113].mxu1  ;;  %v3502_v55 = vmul.f32 0.35355338, %v3496_v51 }
0x121a   :  { %v3499_v53 = vpop.f32.mrb[114].mxu1 }
0x121b   :  { %v5893_v54 = vpop.f32.mrb[115].mxu1  ;;  %v3503_v57 = vsel %vm155_vm2, %v3502_v55, -inf }
0x1222   :  { %2823 = vrot.lane.b32.xlu0 %v6991_v44, %s7629_s12 }
0x1225   :  { %2711 = vrot.lane.b32.xlu1 %v6991_v44, %s7630_s7 }
0x1241   :  { %3504 = vmax.xlane.f32.xlu0 %v3503_v57 }
0x1271   :  { %v2701_v56 = vpop.xlane.xlu0 %2700 }
0x1272   :  { %v2702_v58 = vsub.f32 %v2698_v7, %v2701_v56 }
0x1274   :  { %v2703_v59 = vmul.f32 1.442695, %v2702_v58 }
0x1276   :  { %6191 = vpow2.f32 %v2703_v59 }
0x1279   :  { %v2813_v60 = vpop.xlane.xlu1 %2812 }
0x127a   :  { %v2814_v61 = vsub.f32 %v2810_v19, %v2813_v60 }
0x127c   :  { %v2815_v62 = vmul.f32 1.442695, %v2814_v61 }
0x127e   :  { %6193 = vpow2.f32 %v2815_v62 }
0x1280   :  { %v7083_v63 = vpop.eup %6191 }
0x1281   :  { %v2929_v1 = vpop.xlane.xlu0 %2928  ;;  %v2705_v2 = vsel %vm155_vm2, %v7083_v63, 0.0 }
0x1282   :  { %v2930_v5 = vsub.f32 %v2926_v20, %v2929_v1  ;;  %2706 = vadd.xlane.f32.xlu1 %v2705_v2 }
0x1284   :  { %v2931_v6 = vmul.f32 1.442695, %v2930_v5 }
0x1286   :  { %6195 = vpow2.f32 %v2931_v6 }
0x1288   :  { %v7087_v8 = vpop.eup %6193 }
0x1289   :  { %v2817_v7 = vsel %vm155_vm2, %v7087_v8, 0.0  ;;  %v3045_v13 = vpop.xlane.xlu0 %3044 }
0x128a   :  { %2818 = vadd.xlane.f32.xlu0 %v2817_v7  ;;  %v3046_v26 = vsub.f32 %v7068_v25, %v3045_v13 }
0x128c   :  { %v3047_v14 = vmul.f32 1.442695, %v3046_v26 }
0x128e   :  { %6197 = vpow2.f32 %v3047_v14 }
0x1290   :  { %v7091_v9 = vpop.eup %6195 }
0x1291   :  { %v2933_v10 = vsel %vm155_vm2, %v7091_v9, 0.0  ;;  %v3161_v12 = vpop.xlane.xlu1 %3160 }
0x1292   :  { %2934 = vadd.xlane.f32.xlu1 %v2933_v10  ;;  %v3162_v17 = vsub.f32 %v7072_v32, %v3161_v12 }
0x1294   :  { %v3163_v21 = vmul.f32 1.442695, %v3162_v17 }
0x1296   :  { %6199 = vpow2.f32 %v3163_v21 }
0x1298   :  { %v6198_v24 = vpop.eup %6197 }
0x1299   :  { %v3273_v20 = vpop.xlane.xlu0 %3272  ;;  %v3049_v27 = vsel %vm155_vm2, %v6198_v24, 0.0 }
0x129a   :  { %v3274_v16 = vsub.f32 %v3270_v41, %v3273_v20 }
0x129c   :  { %v3275_v23 = vmul.f32 1.442695, %v3274_v16 }
0x129d   :  { %v2824_v33 = vpop.permute.xlu0 %2823 }
0x129e   :  { %6201 = vpow2.f32 %v3275_v23 }
0x12a0   :  { %2939 = vrot.lane.b32.xlu0 %v6991_v44, %s7631_s9  ;;  %v7104_v28 = vpop.eup %6199 }
0x12a1   :  { %v3389_v18 = vpop.xlane.xlu1 %3388  ;;  %v3165_v29 = vsel %vm155_vm2, %v7104_v28, 0.0 }
0x12a2   :  { %v3390_v22 = vsub.f32 %v3386_v48, %v3389_v18  ;;  %v2829_v48 = vsel %vm220_vm3, %v2824_v33, 0 }
0x12a3   :  { %3055 = vrot.lane.b32.xlu1 %v6991_v44, %s7632_s27 }
0x12a4   :  { %v3391_v44 = vmul.f32 1.442695, %v3390_v22 }
0x12a5   :  { %v2712_v19 = vpop.permute.xlu1 %2711 }
0x12a6   :  { %v2717_v15 = vsel %vm220_vm3, %v2712_v19, 0  ;;  %6203 = vpow2.f32 %v3391_v44 }
0x12a7   :  { %5811 = vmatpush3.bf16.msra.mxu0 %v2717_v15 }
0x12a8   :  { %5822 = vmatprep.subr.bf16.mxu0 %v6267_v0  ;;  %v7106_v25 = vpop.eup %6201 }
0x12a9   :  { %v3277_v31 = vsel %vm155_vm2, %v7106_v25, 0.0 }
0x12b0   :  { %v7110_v30 = vpop.eup %6203 }
0x12b1   :  { %v3393_v32 = vsel %vm155_vm2, %v7110_v30, 0.0 }
0x12bf   :  { %3050 = vadd.xlane.f32.xlu0 %v3049_v27 }
0x12c3   :  { %3166 = vadd.xlane.f32.xlu0 %v3165_v29 }
0x12c7   :  { %3278 = vadd.xlane.f32.xlu1 %v3277_v31  ;;  %3394 = vadd.xlane.f32.xlu0 %v3393_v32 }
0x12ce   :  { %v3505_v34 = vpop.xlane.xlu0 %3504 }
0x12cf   :  { %v3506_v37 = vsub.f32 %v3502_v55, %v3505_v34 }
0x12d1   :  { %v3507_v38 = vmul.f32 1.442695, %v3506_v37 }
0x12d3   :  { %6205 = vpow2.f32 %v3507_v38 }
0x12d8   :  { %3283 = vrot.lane.b32.xlu1 %v7005_v46, %s7629_s12 }
0x12dc   :  { %3399 = vrot.lane.b32.xlu1 %v7005_v46, %s7631_s9  ;;  %s7635_s9 = sld [smem:[#allocation13_spill]] }
0x12dd   :  { %v7120_v39 = vpop.eup %6205 }
0x12de   :  { %v3509_v41 = vsel %vm155_vm2, %v7120_v39, 0.0 }
0x12df   :  { %3510 = vadd.xlane.f32.xlu0 %v3509_v41 }
0x12e0   :  { %3515 = vrot.lane.b32.xlu1 %v7005_v46, %s7632_s27 }
0x12f5   :  { %3171 = vrot.lane.b32.xlu0 %v7005_v46, %s7630_s7 }
0x130f   :  { %v2707_v42 = vpop.xlane.xlu1 %2706 }
0x1310   :  { %6207 = vrcp.f32 %v2707_v42 }
0x1317   :  { %v2819_v43 = vpop.xlane.xlu0 %2818 }
0x1318   :  { %6209 = vrcp.f32 %v2819_v43 }
0x131a   :  { %v6208_v40 = vpop.eup %6207 }
0x131b   :  { %v2709_v45 = vmul.f32 %v6208_v40, %v7083_v63  ;;  %v2940_v4 = vpop.permute.xlu0 %2939 }
0x131c   :  { %v2945_v51 = vsel %vm220_vm3, %v2940_v4, 0  ;;  %v6101_v4 = vld [vmem:[%s7613_s29 + $0x10] sm:$0xff]  }
0x131d   :  { %v2710_v47 = vpack.c.bf16 %v2709_v45, %v2709_v45  ;;  %5901 = vmatpush3.bf16.msra.mxu1 %v6101_v4 }
0x131e   :  { %5902 = vmatprep.subr.bf16.mxu1 %v6267_v0 }
0x131f   :  { %5813 = vmatmul.mubr.msk.bf16.vlgmr.msra.gmra.mrb[76].mxu0 %vm155_vm2, %v2710_v47  ;;  %v2935_v49 = vpop.xlane.xlu1 %2934 }
0x1320   :  { %5823 = vmatpush3.bf16.msra.mxu0 %v2829_v48  ;;  %6211 = vrcp.f32 %v2935_v49  ;;  %5824 = vmatprep.mubr.msk.bf16.mxu0 %vm6268_vm0, %v6267_v0 }
0x1321   :  { %5834 = vmatprep.subr.bf16.mxu0 %v6267_v0 }
0x1322   :  { %v6210_v46 = vpop.eup %6209 }
0x1323   :  { %v2821_v3 = vmul.f32 %v6210_v46, %v7087_v8  ;;  %v3056_v54 = vpop.permute.xlu1 %3055 }
0x1324   :  { %v3061_v57 = vsel %vm220_vm3, %v3056_v54, 0 }
0x1325   :  { %v2822_v50 = vpack.c.bf16 %v2821_v3, %v2821_v3 }
0x1327   :  { %5825 = vmatmul.mubr.msk.bf16.vlgmr.msra.gmra.mrb[80].mxu0 %vm155_vm2, %v2822_v50  ;;  %v6102_v50 = vld [vmem:[%s7613_s29 + $0x18] sm:$0xff]   ;;  %s7640_s29 = sld [smem:[#allocation18_spill]] }
0x1328   :  { %5835 = vmatpush3.bf16.msra.mxu0 %v2945_v51  ;;  %5836 = vmatprep.mubr.msk.bf16.mxu0 %vm6268_vm0, %v6267_v0 }
0x1329   :  { %5846 = vmatprep.subr.bf16.mxu0 %v6267_v0  ;;  %5903 = vmatpush3.bf16.msra.mxu1 %v6102_v50 }
0x132a   :  { %v6212_v11 = vpop.eup %6211  ;;  %5916 = vmatprep.subr.bf16.mxu1 %v6267_v0 }
0x132b   :  { %v2937_v53 = vmul.f32 %v6212_v11, %v7091_v9 }
0x132d   :  { %v2938_v55 = vpack.c.bf16 %v2937_v53, %v2937_v53 }
0x132f   :  { %5837 = vmatmul.mubr.msk.bf16.vlgmr.msra.gmra.mrb[84].mxu0 %vm155_vm2, %v2938_v55 }
0x1330   :  { %5847 = vmatpush3.bf16.msra.mxu0 %v3061_v57  ;;  %5848 = vmatprep.mubr.msk.bf16.mxu0 %vm6268_vm0, %v6267_v0 }
0x1331   :  { %5858 = vmatprep.subr.bf16.mxu0 %v6267_v0 }
0x134c   :  { %v3051_v56 = vpop.xlane.xlu0 %3050 }
0x134d   :  { %6213 = vrcp.f32 %v3051_v56 }
0x1350   :  { %v3167_v61 = vpop.xlane.xlu0 %3166 }
0x1351   :  { %6215 = vrcp.f32 %v3167_v61 }
0x1354   :  { %v3279_v62 = vpop.xlane.xlu1 %3278  ;;  %v3395_v63 = vpop.xlane.xlu0 %3394 }
0x1355   :  { %6217 = vrcp.f32 %v3279_v62 }
0x1356   :  { %6219 = vrcp.f32 %v3395_v63 }
0x1357   :  { %v6214_v58 = vpop.eup %6213 }
0x1358   :  { %v3053_v59 = vmul.f32 %v6214_v58, %v6198_v24  ;;  %v3284_v7 = vpop.permute.xlu1 %3283 }
0x1359   :  { %v3289_v12 = vsel %vm220_vm3, %v3284_v7, 0 }
0x135a   :  { %v3054_v60 = vpack.c.bf16 %v3053_v59, %v3053_v59 }
0x135b   :  { %v6216_v1 = vpop.eup %6215 }
0x135c   :  { %5849 = vmatmul.mubr.msk.bf16.vlgmr.msra.gmra.mrb[88].mxu0 %vm155_vm2, %v3054_v60  ;;  %v3169_v5 = vmul.f32 %v6216_v1, %v7104_v28  ;;  %v3400_v19 = vpop.permute.xlu1 %3399 }
0x135d   :  { %5860 = vmatprep.mubr.msk.bf16.mxu0 %vm6268_vm0, %v6267_v0  ;;  %v3405_v26 = vsel %vm220_vm3, %v3400_v19, 0 }
0x135e   :  { %v3170_v9 = vpack.c.bf16 %v3169_v5, %v3169_v5 }
0x135f   :  { %v6218_v10 = vpop.eup %6217 }
0x1360   :  { %v3281_v18 = vmul.f32 %v6218_v10, %v7106_v25  ;;  %v6220_v15 = vpop.eup %6219  ;;  %v3516_v17 = vpop.permute.xlu1 %3515 }
0x1361   :  { %v3397_v14 = vmul.f32 %v6220_v15, %v7110_v30  ;;  %v3521_v21 = vsel %vm220_vm3, %v3516_v17, 0 }
0x1362   :  { %v3282_v13 = vpack.c.bf16 %v3281_v18, %v3281_v18 }
0x1363   :  { %v3398_v20 = vpack.c.bf16 %v3397_v14, %v3397_v14 }
0x136c   :  { %v3511_v2 = vpop.xlane.xlu0 %3510 }
0x136d   :  { %6221 = vrcp.f32 %v3511_v2 }
0x1370   :  { %v3172_v6 = vpop.permute.xlu0 %3171 }
0x1371   :  { %v3177_v8 = vsel %vm220_vm3, %v3172_v6, 0 }
0x1372   :  { %5859 = vmatpush3.bf16.msra.mxu0 %v3177_v8  ;;  %v5278_v8 = vld [vmem:[%s7614_s2 + $0x1] ss:$0 sm:$0xff]  ;;  %s7634_s2 = sld [smem:[#allocation12_spill]] }
0x1373   :  { %5870 = vmatprep.subr.bf16.mxu0 %v6267_v0 }
0x1375   :  { %5861 = vmatmul.mubr.msk.bf16.vlgmr.msra.gmra.mrb[92].mxu0 %vm155_vm2, %v3170_v9 }
0x1376   :  { %5871 = vmatpush3.bf16.msra.mxu0 %v3289_v12  ;;  %5872 = vmatprep.mubr.msk.bf16.mxu0 %vm6268_vm0, %v6267_v0 }
0x1377   :  { %5882 = vmatprep.subr.bf16.mxu0 %v6267_v0  ;;  %v6222_v16 = vpop.eup %6221 }
0x1378   :  { %v3513_v22 = vmul.f32 %v6222_v16, %v7120_v39 }
0x137a   :  { %v3514_v23 = vpack.c.bf16 %v3513_v22, %v3513_v22  ;;  %v6105_v22 = vld [vmem:[%s7617_s6 + $0x10] sm:$0xff]  }
0x137d   :  { %5873 = vmatmul.mubr.msk.bf16.vlgmr.msra.gmra.mrb[96].mxu0 %vm155_vm2, %v3282_v13 }
0x137e   :  { %5883 = vmatpush3.bf16.msra.mxu0 %v3405_v26  ;;  %5884 = vmatprep.mubr.msk.bf16.mxu0 %vm6268_vm0, %v6267_v0 }
0x137f   :  { %5894 = vmatprep.subr.bf16.mxu0 %v6267_v0 }
0x1385   :  { %5885 = vmatmul.mubr.msk.bf16.vlgmr.msra.gmra.mrb[100].mxu0 %vm155_vm2, %v3398_v20 }
0x1386   :  { %5895 = vmatpush3.bf16.msra.mxu0 %v3521_v21  ;;  %5896 = vmatprep.mubr.msk.bf16.mxu0 %vm6268_vm0, %v6267_v0 }
0x1387   :  { %5908 = vmatprep.subr.bf16.mxu0 %v6267_v0 }
0x138d   :  { %5897 = vmatmul.mubr.msk.bf16.vlgmr.msra.gmra.mrb[104].mxu0 %vm155_vm2, %v3514_v23  ;;  %v6106_v23 = vld [vmem:[%s7617_s6 + $0x18] sm:$0xff]  }
0x138e   :  { %5912 = vmatprep.mubr.msk.bf16.mxu0 %vm6268_vm0, %v6267_v0  ;;  %5909 = vmatpush3.bf16.msra.mxu0 %v6105_v22 }
0x138f   :  { %5910 = vmatprep.subr.bf16.mxu0 %v6267_v0 }
0x1392   :  { %5911 = vmatpush3.bf16.msra.mxu0 %v6106_v23 }
0x1393   :  { %5924 = vmatprep.subr.bf16.mxu0 %v6267_v0 }
0x13f2   :  { %v2753_v44 = vpop.f32.mrb[76].mxu0 }
0x13f3   :  { %2759 = vst.msk [vmem:[#allocation2] sm:$0xff] %vm155_vm2, %v2753_v44  ;;  %v5814_v24 = vpop.f32.mrb[77].mxu0 }
0x13f4   :  { %v2756_v27 = vpop.f32.mrb[78].mxu0 }
0x13f5   :  { %v5815_v28 = vpop.f32.mrb[79].mxu0 }
0x13fa   :  { %v2865_v25 = vpop.f32.mrb[80].mxu0 }
0x13fb   :  { %2872 = vrot.lane.b32.xlu1 %v2865_v25, %s7625_s1  ;;  %v5826_v29 = vpop.f32.mrb[81].mxu0 }
0x13fc   :  { %v2868_v30 = vpop.f32.mrb[82].mxu0 }
0x13fd   :  { %v5827_v31 = vpop.f32.mrb[83].mxu0 }
0x1402   :  { %v2981_v32 = vpop.f32.mrb[84].mxu0 }
0x1403   :  { %2988 = vrot.lane.b32.xlu0 %v2981_v32, %s7626_s5  ;;  %v5838_v33 = vpop.f32.mrb[85].mxu0 }
0x1404   :  { %v2984_v34 = vpop.f32.mrb[86].mxu0 }
0x1405   :  { %v5839_v37 = vpop.f32.mrb[87].mxu0 }
0x142f   :  { %v3097_v38 = vpop.f32.mrb[88].mxu0 }
0x1430   :  { %3104 = vrot.lane.b32.xlu0 %v3097_v38, %s7627_s24  ;;  %v5850_v39 = vpop.f32.mrb[89].mxu0 }
0x1431   :  { %v3100_v41 = vpop.f32.mrb[90].mxu0 }
0x1432   :  { %v5851_v42 = vpop.f32.mrb[91].mxu0 }
0x1448   :  { %v3213_v43 = vpop.f32.mrb[92].mxu0 }
0x1449   :  { %3219 = vst.msk [vmem:[#allocation2 + $0x8] sm:$0xff] %vm155_vm2, %v3213_v43  ;;  %v5862_v40 = vpop.f32.mrb[93].mxu0  ;;  %v5284_v43 = vld [vmem:[%s7633_s3 + $0x1] ss:$0 sm:$0xff] }
0x144a   :  { %v3216_v45 = vpop.f32.mrb[94].mxu0 }
0x144b   :  { %v5863_v47 = vpop.f32.mrb[95].mxu0 }
0x1450   :  { %v3325_v48 = vpop.f32.mrb[96].mxu0 }
0x1451   :  { %3332 = vrot.lane.b32.xlu1 %v3325_v48, %s7625_s1  ;;  %v5874_v49 = vpop.f32.mrb[97].mxu0 }
0x1452   :  { %v3328_v46 = vpop.f32.mrb[98].mxu0  ;;  %v5285_v49 = vld [vmem:[%s7634_s2 + $0x1] ss:$0 sm:$0xff] }
0x1453   :  { %v5875_v3 = vpop.f32.mrb[99].mxu0 }
0x1458   :  { %v3441_v51 = vpop.f32.mrb[100].mxu0 }
0x1459   :  { %3448 = vrot.lane.b32.xlu1 %v3441_v51, %s7626_s5  ;;  %v5886_v11 = vpop.f32.mrb[101].mxu0  ;;  %v5300_v51 = vld [vmem:[%s7635_s9 + $0x1] ss:$0 sm:$0xff] }
0x145a   :  { %v3444_v53 = vpop.f32.mrb[102].mxu0 }
0x145b   :  { %v5887_v54 = vpop.f32.mrb[103].mxu0 }
0x1460   :  { %v3557_v55 = vpop.f32.mrb[104].mxu0 }
0x1461   :  { %3564 = vrot.lane.b32.xlu1 %v3557_v55, %s7627_s24  ;;  %v5898_v57 = vpop.f32.mrb[105].mxu0 }
0x1462   :  { %v3560_v56 = vpop.f32.mrb[106].mxu0 }
0x1463   :  { %v5899_v58 = vpop.f32.mrb[107].mxu0 }
0x146d   :  { %v2873_v59 = vpop.permute.xlu1 %2872 }
0x146e   :  { %2875 = vst.msk [vmem:[#allocation2] sm:$0xff] %vm380_vm4, %v2873_v59 }
0x1475   :  { %v2989_v60 = vpop.permute.xlu0 %2988 }
0x1476   :  { %2991 = vst.msk [vmem:[#allocation2] sm:$0xff] %vm497_vm5, %v2989_v60  ;;  %v5291_v60 = vld [vmem:[%s7636_s11 + $0x1] ss:$0 sm:$0xff] }
0x14a2   :  { %v3105_v61 = vpop.permute.xlu0 %3104 }
0x14a3   :  { %3107 = vst.msk [vmem:[#allocation2] sm:$0xff] %vm614_vm6, %v3105_v61 }
0x14aa   :  { %v3568_v2 = vld [vmem:[#allocation2] sm:$0xff] }
0x14c3   :  { %v3333_v62 = vpop.permute.xlu1 %3332 }
0x14c4   :  { %3335 = vst.msk [vmem:[#allocation2 + $0x8] sm:$0xff] %vm380_vm4, %v3333_v62 }
0x14cb   :  { %v3449_v63 = vpop.permute.xlu1 %3448 }
0x14cc   :  { %3451 = vst.msk [vmem:[#allocation2 + $0x8] sm:$0xff] %vm497_vm5, %v3449_v63 }
0x14d3   :  { %v3565_v1 = vpop.permute.xlu1 %3564 }
0x14d4   :  { %3567 = vst.msk [vmem:[#allocation2 + $0x8] sm:$0xff] %vm614_vm6, %v3565_v1 }
0x14db   :  { %v3569_v5 = vld [vmem:[#allocation2 + $0x8] sm:$0xff] }
0x14dc   :  { %v3570_v6 = vpack.c.bf16 %v3569_v5, %v3568_v2 }
0x14de   :  { %5905 = vmatmul.mubr.msk.bf16.vlgmr.msra.gmra.mrb[116].mxu1 %vm106_vm1, %v3570_v6 }
0x14df   :  { %5920 = vmatprep.mubr.msk.bf16.mxu1 %vm6268_vm0, %v6267_v0 }
0x15b1   :  { %v3633_v7 = vpop.f32.mrb[116].mxu1 }
0x15b2   :  { %v3634_v9 = vadd.f32 %v5278_v8, %v3633_v7  ;;  %v5906_v10 = vpop.f32.mrb[117].mxu1 }
0x15b3   :  { %v3636_v12 = vpop.f32.mrb[118].mxu1 }
0x15b4   :  { %v3640_v18 = vadd.f32 %v3634_v9, %v6979_v35  ;;  %v3637_v19 = vadd.f32 %v5278_v8, %v3636_v12  ;;  %v5907_v13 = vpop.f32.mrb[119].mxu1  ;;  %v6103_v35 = vld [vmem:[%s7615_s28 + $0x10] sm:$0xff]  }
0x15b5   :  { %5917 = vmatpush3.bf16.msra.mxu1 %v6103_v35 }
0x15b6   :  { %v3641_v15 = vadd.f32 %v3637_v19, %v6981_v36  ;;  %v3646_v26 = vsel %vm106_vm1, %v3640_v18, 0.0  ;;  %v3654_v14 = vmul.f32 %v3640_v18, %v3640_v18  ;;  %5918 = vmatprep.subr.bf16.mxu1 %v6267_v0  ;;  %v6104_v36 = vld [vmem:[%s7615_s28 + $0x18] sm:$0xff]  }
0x15b7   :  { %3647 = vadd.xlane.f32.xlu0 %v3646_v26 }
0x15b8   :  { %v3649_v17 = vsel %vm106_vm1, %v3641_v15, 0.0  ;;  %v3656_v20 = vsel %vm106_vm1, %v3654_v14, 0.0  ;;  %v3655_v16 = vmul.f32 %v3641_v15, %v3641_v15 }
0x15b9   :  { %3650 = vadd.xlane.f32.xlu1 %v3649_v17  ;;  %5919 = vmatpush3.bf16.msra.mxu1 %v6104_v36 }
0x15ba   :  { %v3659_v21 = vsel %vm106_vm1, %v3655_v16, 0.0  ;;  %5930 = vmatprep.subr.bf16.mxu1 %v6267_v0 }
0x15bb   :  { %3657 = vadd.xlane.f32.xlu0 %v3656_v20 }
0x15bc   :  { %5921 = vmatmul.mubr.msk.bf16.vlgmr.msra.gmra.mrb[120].mxu1 %vm106_vm1, %v6677_v52 }
0x15bd   :  { %5932 = vmatprep.mubr.msk.bf16.mxu1 %vm6268_vm0, %v6267_v0 }
0x15bf   :  { %3660 = vadd.xlane.f32.xlu0 %v3659_v21 }
0x1644   :  { %v3648_v44 = vpop.xlane.xlu0 %3647 }
0x1645   :  { %v3652_v24 = vmul.f32 0.03125, %v3648_v44 }
0x1646   :  { %v3651_v52 = vpop.xlane.xlu1 %3650 }
0x1647   :  { %v3664_v28 = vmul.f32 %v3652_v24, %v3652_v24  ;;  %v3653_v25 = vmul.f32 0.03125, %v3651_v52  ;;  %v3668_v39 = vsub.f32 %v3640_v18, %v3652_v24 }
0x1648   :  { %v3658_v27 = vpop.xlane.xlu0 %3657 }
0x1649   :  { %v3662_v29 = vmul.f32 0.03125, %v3658_v27  ;;  %v3665_v32 = vmul.f32 %v3653_v25, %v3653_v25  ;;  %v3669_v40 = vsub.f32 %v3641_v15, %v3653_v25 }
0x164b   :  { %v3666_v30 = vsub.f32 %v3662_v29, %v3664_v28 }
0x164c   :  { %v3661_v31 = vpop.xlane.xlu0 %3660 }
0x164d   :  { %v3670_v33 = vadd.f32 1e-05, %v3666_v30  ;;  %v3663_v34 = vmul.f32 0.03125, %v3661_v31 }
0x164f   :  { %6223 = vrsqrt.f32 %v3670_v33  ;;  %v3667_v37 = vsub.f32 %v3663_v34, %v3665_v32 }
0x1651   :  { %v3671_v38 = vadd.f32 1e-05, %v3667_v37 }
0x1653   :  { %6225 = vrsqrt.f32 %v3671_v38 }
0x1659   :  { %v6224_v41 = vpop.eup %6223 }
0x165a   :  { %v3674_v42 = vmul.f32 %v6224_v41, %v3668_v39 }
0x165c   :  { %v3682_v48 = vmul.f32 %v5284_v43, %v3674_v42 }
0x165d   :  { %v6226_v45 = vpop.eup %6225 }
0x165e   :  { %v3675_v47 = vmul.f32 %v6226_v45, %v3669_v40  ;;  %v7233_v3 = vadd.f32 %v5285_v49, %v3682_v48 }
0x1660   :  { %v3683_v46 = vmul.f32 %v5284_v43, %v3675_v47 }
0x1662   :  { %v7235_v4 = vadd.f32 %v5285_v49, %v3683_v46 }
0x1664   :  { %v3692_v50 = vpack.c.bf16 %v7235_v4, %v7233_v3 }
0x1666   :  { %5913 = vmatmul.mubr.msk.bf16.vlgmr.msra.gmra.mrb[108].mxu0 %vm106_vm1, %v3692_v50 }
0x1667   :  { %5926 = vmatprep.mubr.msk.bf16.mxu0 %vm6268_vm0, %v6267_v0 }
0x168f   :  { %v3821_v11 = vpop.f32.mrb[120].mxu1 }
0x1690   :  { %v3822_v53 = vadd.f32 %v5300_v51, %v3821_v11  ;;  %v5922_v54 = vpop.f32.mrb[121].mxu1 }
0x1691   :  { %v3824_v55 = vpop.f32.mrb[122].mxu1 }
0x1692   :  { %v7245_v57 = vpack.c.bf16 %v3822_v53, %v3822_v53  ;;  %v3825_v56 = vadd.f32 %v5300_v51, %v3824_v55  ;;  %v5923_v58 = vpop.f32.mrb[123].mxu1 }
0x1694   :  { %3942 = vrot.lane.b32.xlu1 %v7245_v57, %s7628_s23  ;;  %v3834_v59 = vsel %vm155_vm2, %v7245_v57, 0  ;;  %v7267_v9 = vpack.c.bf16 %v3825_v56, %v3825_v56 }
0x1695   :  { %5925 = vmatpush3.bf16.xpose.msra.mxu0 %v3834_v59 }
0x1696   :  { %5936 = vmatprep.subr.bf16.mxu0 %v6267_v0  ;;  %v4294_v17 = vsel %vm155_vm2, %v7267_v9, 0 }
0x1698   :  { %4058 = vrot.lane.b32.xlu1 %v7245_v57, %s7619_s4 }
0x1706   :  { %v3943_v6 = vpop.permute.xlu1 %3942 }
0x1707   :  { %v3948_v8 = vsel %vm155_vm2, %v3943_v6, 0 }
0x170a   :  { %v4059_v12 = vpop.permute.xlu1 %4058 }
0x170b   :  { %v4064_v19 = vsel %vm155_vm2, %v4059_v12, 0 }
0x1739   :  { %v3755_v61 = vpop.f32.mrb[108].mxu0 }
0x173a   :  { %v3756_v62 = vadd.f32 %v5291_v60, %v3755_v61  ;;  %v5914_v63 = vpop.f32.mrb[109].mxu0 }
0x173b   :  { %v3758_v1 = vpop.f32.mrb[110].mxu0 }
0x173c   :  { %v3828_v2 = vpack.c.bf16 %v3756_v62, %v3756_v62  ;;  %v5915_v5 = vpop.f32.mrb[111].mxu0  ;;  %v3759_v7 = vadd.f32 %v5291_v60, %v3758_v1 }
0x173e   :  { %3940 = vrot.lane.b32.xlu0 %v3828_v2, %s7628_s23  ;;  %4056 = vrot.lane.b32.xlu1 %v3828_v2, %s7619_s4  ;;  %v4288_v10 = vpack.c.bf16 %v3759_v7, %v3759_v7 }
0x173f   :  { %5927 = vmatmul.mubr.msk.bf16.vlgmr.msra.gmra.mrb[112].mxu0 %vm155_vm2, %v3828_v2 }
0x1740   :  { %5937 = vmatpush3.bf16.xpose.msra.mxu0 %v3948_v8  ;;  %5938 = vmatprep.mubr.msk.bf16.mxu0 %vm6268_vm0, %v6267_v0 }
0x1741   :  { %5948 = vmatprep.subr.bf16.mxu0 %v6267_v0 }
0x1742   :  { %4174 = vrot.lane.b32.xlu0 %v7245_v57, %s7620_s8  ;;  %4172 = vrot.lane.b32.xlu1 %v3828_v2, %s7620_s8 }
0x1746   :  { %4400 = vrot.lane.b32.xlu1 %v4288_v10, %s7628_s23  ;;  %4402 = vrot.lane.b32.xlu0 %v7267_v9, %s7628_s23 }
0x174a   :  { %4516 = vrot.lane.b32.xlu1 %v4288_v10, %s7619_s4  ;;  %4518 = vrot.lane.b32.xlu0 %v7267_v9, %s7619_s4 }
0x174e   :  { %4632 = vrot.lane.b32.xlu1 %v4288_v10, %s7620_s8  ;;  %4634 = vrot.lane.b32.xlu0 %v7267_v9, %s7620_s8 }
0x17b0   :  { %v3941_v18 = vpop.permute.xlu0 %3940  ;;  %v4057_v15 = vpop.permute.xlu1 %4056 }
0x17b1   :  { %5939 = vmatmul.mubr.msk.bf16.vlgmr.msra.gmra.mrb[116].mxu0 %vm155_vm2, %v3941_v18 }
0x17b2   :  { %5949 = vmatpush3.bf16.xpose.msra.mxu0 %v4064_v19  ;;  %5950 = vmatprep.mubr.msk.bf16.mxu0 %vm6268_vm0, %v6267_v0 }
0x17b3   :  { %5960 = vmatprep.subr.bf16.mxu0 %v6267_v0 }
0x17b4   :  { %v4175_v13 = vpop.permute.xlu0 %4174  ;;  %v4173_v14 = vpop.permute.xlu1 %4172 }
0x17b5   :  { %v4180_v26 = vsel %vm155_vm2, %v4175_v13, 0 }
0x17b8   :  { %v4403_v20 = vpop.permute.xlu0 %4402  ;;  %v4401_v35 = vpop.permute.xlu1 %4400 }
0x17b9   :  { %5951 = vmatmul.mubr.msk.bf16.vlgmr.msra.gmra.mrb[120].mxu0 %vm155_vm2, %v4057_v15  ;;  %v4408_v16 = vsel %vm155_vm2, %v4403_v20, 0 }
0x17ba   :  { %5961 = vmatpush3.bf16.xpose.msra.mxu0 %v4180_v26  ;;  %5962 = vmatprep.mubr.msk.bf16.mxu0 %vm6268_vm0, %v6267_v0 }
0x17bb   :  { %5972 = vmatprep.subr.bf16.mxu0 %v6267_v0 }
0x17bc   :  { %v4519_v21 = vpop.permute.xlu0 %4518  ;;  %v4517_v23 = vpop.permute.xlu1 %4516 }
0x17bd   :  { %v4524_v36 = vsel %vm155_vm2, %v4519_v21, 0 }
0x17c0   :  { %v4635_v22 = vpop.permute.xlu0 %4634  ;;  %v4633_v24 = vpop.permute.xlu1 %4632 }
0x17c1   :  { %5963 = vmatmul.mubr.msk.bf16.vlgmr.msra.gmra.mrb[124].mxu0 %vm155_vm2, %v4173_v14  ;;  %v4640_v44 = vsel %vm155_vm2, %v4635_v22, 0 }
0x17c2   :  { %5973 = vmatpush3.bf16.xpose.msra.mxu0 %v4294_v17  ;;  %5974 = vmatprep.mubr.msk.bf16.mxu0 %vm6268_vm0, %v6267_v0 }
0x17c3   :  { %5984 = vmatprep.subr.bf16.mxu0 %v6267_v0 }
0x17c9   :  { %5975 = vmatmul.mubr.msk.bf16.vlgmr.msra.gmra.mrb[128].mxu0 %vm155_vm2, %v4288_v10 }
0x17ca   :  { %5985 = vmatpush3.bf16.xpose.msra.mxu0 %v4408_v16  ;;  %5986 = vmatprep.mubr.msk.bf16.mxu0 %vm6268_vm0, %v6267_v0 }
0x17cb   :  { %5996 = vmatprep.subr.bf16.mxu0 %v6267_v0 }
0x17d1   :  { %5987 = vmatmul.mubr.msk.bf16.vlgmr.msra.gmra.mrb[132].mxu0 %vm155_vm2, %v4401_v35 }
0x17d2   :  { %5997 = vmatpush3.bf16.xpose.msra.mxu0 %v4524_v36  ;;  %5998 = vmatprep.mubr.msk.bf16.mxu0 %vm6268_vm0, %v6267_v0 }
0x17d3   :  { %6008 = vmatprep.subr.bf16.mxu0 %v6267_v0 }
0x17d9   :  { %5999 = vmatmul.mubr.msk.bf16.vlgmr.msra.gmra.mrb[136].mxu0 %vm155_vm2, %v4517_v23 }
0x17da   :  { %6009 = vmatpush3.bf16.xpose.msra.mxu0 %v4640_v44  ;;  %6010 = vmatprep.mubr.msk.bf16.mxu0 %vm6268_vm0, %v6267_v0 }
0x17db   :  { %6020 = vmatprep.subr.bf16.mxu0 %v6267_v0 }
0x17e1   :  { %6011 = vmatmul.mubr.msk.bf16.vlgmr.msra.gmra.mrb[140].mxu0 %vm155_vm2, %v4633_v24 }
0x17e2   :  { %6024 = vmatprep.mubr.msk.bf16.mxu0 %vm6268_vm0, %v6267_v0 }
0x1812   :  { %v3870_v52 = vpop.f32.mrb[112].mxu0 }
0x1813   :  { %v3876_v27 = vmul.f32 0.35355338, %v3870_v52  ;;  %v5928_v28 = vpop.f32.mrb[113].mxu0 }
0x1814   :  { %v3873_v25 = vpop.f32.mrb[114].mxu0 }
0x1815   :  { %v5929_v29 = vpop.f32.mrb[115].mxu0  ;;  %v3877_v30 = vsel %vm155_vm2, %v3876_v27, -inf }
0x1816   :  { %3878 = vmax.xlane.f32.xlu0 %v3877_v30 }
0x1884   :  { %v3984_v31 = vpop.f32.mrb[116].mxu0 }
0x1885   :  { %v3990_v32 = vmul.f32 0.35355338, %v3984_v31  ;;  %v5940_v33 = vpop.f32.mrb[117].mxu0 }
0x1886   :  { %v3987_v34 = vpop.f32.mrb[118].mxu0 }
0x1887   :  { %v5941_v37 = vpop.f32.mrb[119].mxu0  ;;  %v3991_v38 = vsel %vm155_vm2, %v3990_v32, -inf }
0x1888   :  { %3992 = vmax.xlane.f32.xlu1 %v3991_v38 }
0x188c   :  { %v4100_v39 = vpop.f32.mrb[120].mxu0 }
0x188d   :  { %v4106_v41 = vmul.f32 0.35355338, %v4100_v39  ;;  %v5952_v42 = vpop.f32.mrb[121].mxu0 }
0x188e   :  { %v4103_v43 = vpop.f32.mrb[122].mxu0 }
0x188f   :  { %v5953_v40 = vpop.f32.mrb[123].mxu0  ;;  %v4107_v45 = vsel %vm155_vm2, %v4106_v41, -inf }
0x1890   :  { %4108 = vmax.xlane.f32.xlu0 %v4107_v45 }
0x1894   :  { %v4216_v47 = vpop.f32.mrb[124].mxu0 }
0x1895   :  { %v7315_v48 = vmul.f32 0.35355338, %v4216_v47  ;;  %v5964_v49 = vpop.f32.mrb[125].mxu0 }
0x1896   :  { %v4219_v46 = vpop.f32.mrb[126].mxu0 }
0x1897   :  { %v5965_v50 = vpop.f32.mrb[127].mxu0  ;;  %v4223_v51 = vsel %vm155_vm2, %v7315_v48, -inf }
0x1898   :  { %4224 = vmax.xlane.f32.xlu0 %v4223_v51 }
0x189c   :  { %v4330_v11 = vpop.f32.mrb[128].mxu0 }
0x189d   :  { %v7319_v53 = vmul.f32 0.35355338, %v4330_v11  ;;  %v5976_v54 = vpop.f32.mrb[129].mxu0 }
0x189e   :  { %v4333_v55 = vpop.f32.mrb[130].mxu0 }
0x189f   :  { %v5977_v56 = vpop.f32.mrb[131].mxu0  ;;  %v4337_v58 = vsel %vm155_vm2, %v7319_v53, -inf }
0x18a0   :  { %4338 = vmax.xlane.f32.xlu1 %v4337_v58 }
0x18a3   :  { %v3879_v15 = vpop.xlane.xlu0 %3878 }
0x18a4   :  { %v4444_v59 = vpop.f32.mrb[132].mxu0  ;;  %v3880_v26 = vsub.f32 %v3876_v27, %v3879_v15 }
0x18a5   :  { %v4450_v60 = vmul.f32 0.35355338, %v4444_v59  ;;  %v5988_v61 = vpop.f32.mrb[133].mxu0 }
0x18a6   :  { %v4447_v62 = vpop.f32.mrb[134].mxu0  ;;  %v3881_v14 = vmul.f32 1.442695, %v3880_v26 }
0x18a7   :  { %v5989_v63 = vpop.f32.mrb[135].mxu0  ;;  %v4451_v1 = vsel %vm155_vm2, %v4450_v60, -inf }
0x18a8   :  { %4452 = vmax.xlane.f32.xlu0 %v4451_v1  ;;  %6227 = vpow2.f32 %v3881_v14 }
0x18ac   :  { %v4560_v2 = vpop.f32.mrb[136].mxu0 }
0x18ad   :  { %v4566_v5 = vmul.f32 0.35355338, %v4560_v2  ;;  %v6000_v6 = vpop.f32.mrb[137].mxu0 }
0x18ae   :  { %v4563_v8 = vpop.f32.mrb[138].mxu0 }
0x18af   :  { %v6001_v7 = vpop.f32.mrb[139].mxu0  ;;  %v4567_v10 = vsel %vm155_vm2, %v4566_v5, -inf }
0x18b0   :  { %4568 = vmax.xlane.f32.xlu1 %v4567_v10 }
0x18b2   :  { %v7330_v16 = vpop.eup %6227 }
0x18b3   :  { %v3883_v21 = vsel %vm155_vm2, %v7330_v16, 0.0 }
0x18b4   :  { %v4676_v12 = vpop.f32.mrb[140].mxu0 }
0x18b5   :  { %v6012_v18 = vpop.f32.mrb[141].mxu0  ;;  %v4682_v17 = vmul.f32 0.35355338, %v4676_v12 }
0x18b6   :  { %v4679_v19 = vpop.f32.mrb[142].mxu0 }
0x18b7   :  { %v6013_v13 = vpop.f32.mrb[143].mxu0  ;;  %v4683_v20 = vsel %vm155_vm2, %v4682_v17, -inf }
0x18be   :  { %4003 = vrot.lane.b32.xlu0 %v7245_v57, %s7621_s30 }
0x18c1   :  { %3890 = vrot.lane.b32.xlu1 %v7245_v57, %s7622_s25 }
0x18dd   :  { %4684 = vmax.xlane.f32.xlu0 %v4683_v20 }
0x18e5   :  { %3884 = vadd.xlane.f32.xlu1 %v3883_v21 }
0x1915   :  { %v3993_v35 = vpop.xlane.xlu1 %3992 }
0x1916   :  { %v3994_v36 = vsub.f32 %v3990_v32, %v3993_v35 }
0x1918   :  { %v3995_v22 = vmul.f32 1.442695, %v3994_v36 }
0x191a   :  { %6229 = vpow2.f32 %v3995_v22 }
0x191d   :  { %v4109_v23 = vpop.xlane.xlu0 %4108 }
0x191e   :  { %v4110_v44 = vsub.f32 %v4106_v41, %v4109_v23 }
0x1920   :  { %v4111_v24 = vmul.f32 1.442695, %v4110_v44 }
0x1922   :  { %6231 = vpow2.f32 %v4111_v24 }
0x1924   :  { %v7334_v52 = vpop.eup %6229 }
0x1925   :  { %v3997_v27 = vsel %vm155_vm2, %v7334_v52, 0.0  ;;  %v4225_v32 = vpop.xlane.xlu0 %4224 }
0x1926   :  { %3998 = vadd.xlane.f32.xlu0 %v3997_v27  ;;  %v4226_v34 = vsub.f32 %v7315_v48, %v4225_v32 }
0x1928   :  { %v4227_v37 = vmul.f32 1.442695, %v4226_v34 }
0x192a   :  { %6233 = vpow2.f32 %v4227_v37 }
0x192c   :  { %v7338_v28 = vpop.eup %6231 }
0x192d   :  { %v4113_v25 = vsel %vm155_vm2, %v7338_v28, 0.0  ;;  %v4339_v29 = vpop.xlane.xlu1 %4338 }
0x192e   :  { %4114 = vadd.xlane.f32.xlu1 %v4113_v25  ;;  %v4340_v38 = vsub.f32 %v7319_v53, %v4339_v29 }
0x1930   :  { %v4341_v42 = vmul.f32 1.442695, %v4340_v38 }
0x1932   :  { %6235 = vpow2.f32 %v4341_v42 }
0x1934   :  { %v6234_v45 = vpop.eup %6233 }
0x1935   :  { %v4453_v39 = vpop.xlane.xlu0 %4452  ;;  %v4229_v47 = vsel %vm155_vm2, %v6234_v45, 0.0 }
0x1936   :  { %v4454_v41 = vsub.f32 %v4450_v60, %v4453_v39 }
0x1938   :  { %v4455_v40 = vmul.f32 1.442695, %v4454_v41 }
0x1939   :  { %v4004_v53 = vpop.permute.xlu0 %4003 }
0x193a   :  { %6237 = vpow2.f32 %v4455_v40  ;;  %v4009_v1 = vsel %vm220_vm3, %v4004_v53, 0 }
0x193c   :  { %4119 = vrot.lane.b32.xlu0 %v7245_v57, %s7623_s0  ;;  %v7351_v49 = vpop.eup %6235 }
0x193d   :  { %v4569_v30 = vpop.xlane.xlu1 %4568  ;;  %v4343_v46 = vsel %vm155_vm2, %v7351_v49, 0.0 }
0x193e   :  { %v4570_v43 = vsub.f32 %v4566_v5, %v4569_v30 }
0x193f   :  { %4235 = vrot.lane.b32.xlu1 %v7245_v57, %s7624_s26 }
0x1940   :  { %v4571_v57 = vmul.f32 1.442695, %v4570_v43 }
0x1941   :  { %v3891_v31 = vpop.permute.xlu1 %3890 }
0x1942   :  { %v3896_v33 = vsel %vm220_vm3, %v3891_v31, 0  ;;  %6239 = vpow2.f32 %v4571_v57 }
0x1943   :  { %5931 = vmatpush3.bf16.msra.mxu1 %v3896_v33 }
0x1944   :  { %5942 = vmatprep.subr.bf16.mxu1 %v6267_v0  ;;  %v7353_v48 = vpop.eup %6237 }
0x1945   :  { %v4457_v51 = vsel %vm155_vm2, %v7353_v48, 0.0 }
0x194c   :  { %v7357_v50 = vpop.eup %6239 }
0x194d   :  { %v4573_v11 = vsel %vm155_vm2, %v7357_v50, 0.0 }
0x195b   :  { %4230 = vadd.xlane.f32.xlu0 %v4229_v47 }
0x195f   :  { %4344 = vadd.xlane.f32.xlu0 %v4343_v46 }
0x1963   :  { %4458 = vadd.xlane.f32.xlu1 %v4457_v51  ;;  %4574 = vadd.xlane.f32.xlu0 %v4573_v11 }
0x196a   :  { %v4685_v54 = vpop.xlane.xlu0 %4684 }
0x196b   :  { %v4686_v55 = vsub.f32 %v4682_v17, %v4685_v54 }
0x196d   :  { %v4687_v56 = vmul.f32 1.442695, %v4686_v55 }
0x196f   :  { %6241 = vpow2.f32 %v4687_v56 }
0x1972   :  { %v3885_v58 = vpop.xlane.xlu1 %3884 }
0x1973   :  { %6243 = vrcp.f32 %v3885_v58 }
0x1974   :  { %4463 = vrot.lane.b32.xlu1 %v7267_v9, %s7621_s30  ;;  %s7637_s30 = sld [smem:[#allocation15_spill]] }
0x1978   :  { %4579 = vrot.lane.b32.xlu1 %v7267_v9, %s7623_s0 }
0x1979   :  { %v7367_v59 = vpop.eup %6241 }
0x197a   :  { %v4689_v60 = vsel %vm155_vm2, %v7367_v59, 0.0 }
0x197b   :  { %4690 = vadd.xlane.f32.xlu0 %v4689_v60 }
0x197c   :  { %4695 = vrot.lane.b32.xlu1 %v7267_v9, %s7624_s26  ;;  %s7638_s26 = sld [smem:[#allocation16_spill]] }
0x197d   :  { %v6244_v61 = vpop.eup %6243 }
0x197e   :  { %v3887_v62 = vmul.f32 %v6244_v61, %v7330_v16 }
0x1980   :  { %v3888_v63 = vpack.c.bf16 %v3887_v62, %v3887_v62 }
0x1982   :  { %5933 = vmatmul.mubr.msk.bf16.vlgmr.msra.gmra.mrb[124].mxu1 %vm155_vm2, %v3888_v63 }
0x1983   :  { %5943 = vmatpush3.bf16.msra.mxu1 %v4009_v1  ;;  %5944 = vmatprep.mubr.msk.bf16.mxu1 %vm6268_vm0, %v6267_v0 }
0x1984   :  { %5954 = vmatprep.subr.bf16.mxu1 %v6267_v0 }
0x1991   :  { %4350 = vrot.lane.b32.xlu0 %v7267_v9, %s7622_s25 }
0x19b3   :  { %v3999_v2 = vpop.xlane.xlu0 %3998 }
0x19b4   :  { %6245 = vrcp.f32 %v3999_v2 }
0x19b7   :  { %v4120_v7 = vpop.permute.xlu0 %4119 }
0x19b8   :  { %v4125_v12 = vsel %vm220_vm3, %v4120_v7, 0  ;;  %v6108_v7 = vld [vmem:[%s7637_s30 + $0x18] sm:$0xff]  }
0x19bb   :  { %v4115_v5 = vpop.xlane.xlu1 %4114 }
0x19bc   :  { %6247 = vrcp.f32 %v4115_v5 }
0x19be   :  { %v6246_v6 = vpop.eup %6245 }
0x19bf   :  { %v4001_v8 = vmul.f32 %v6246_v6, %v7334_v52  ;;  %v4236_v19 = vpop.permute.xlu1 %4235 }
0x19c0   :  { %v4241_v15 = vsel %vm220_vm3, %v4236_v19, 0 }
0x19c1   :  { %v4002_v10 = vpack.c.bf16 %v4001_v8, %v4001_v8  ;;  %v6107_v8 = vld [vmem:[%s7637_s30 + $0x10] sm:$0xff]  }
0x19c2   :  { %6021 = vmatpush3.bf16.msra.mxu0 %v6107_v8 }
0x19c3   :  { %5945 = vmatmul.mubr.msk.bf16.vlgmr.msra.gmra.mrb[128].mxu1 %vm155_vm2, %v4002_v10  ;;  %6022 = vmatprep.subr.bf16.mxu0 %v6267_v0 }
0x19c4   :  { %5955 = vmatpush3.bf16.msra.mxu1 %v4125_v12  ;;  %5956 = vmatprep.mubr.msk.bf16.mxu1 %vm6268_vm0, %v6267_v0 }
0x19c5   :  { %5966 = vmatprep.subr.bf16.mxu1 %v6267_v0 }
0x19c6   :  { %v6248_v9 = vpop.eup %6247  ;;  %6023 = vmatpush3.bf16.msra.mxu0 %v6108_v7 }
0x19c7   :  { %v4117_v18 = vmul.f32 %v6248_v9, %v7338_v28  ;;  %6036 = vmatprep.subr.bf16.mxu0 %v6267_v0 }
0x19c9   :  { %v4118_v13 = vpack.c.bf16 %v4117_v18, %v4117_v18 }
0x19cb   :  { %5957 = vmatmul.mubr.msk.bf16.vlgmr.msra.gmra.mrb[132].mxu1 %vm155_vm2, %v4118_v13 }
0x19cc   :  { %5967 = vmatpush3.bf16.msra.mxu1 %v4241_v15  ;;  %5968 = vmatprep.mubr.msk.bf16.mxu1 %vm6268_vm0, %v6267_v0 }
0x19cd   :  { %5978 = vmatprep.subr.bf16.mxu1 %v6267_v0 }
0x19e8   :  { %v4231_v26 = vpop.xlane.xlu0 %4230 }
0x19e9   :  { %6249 = vrcp.f32 %v4231_v26 }
0x19ec   :  { %v4345_v16 = vpop.xlane.xlu0 %4344 }
0x19ed   :  { %6251 = vrcp.f32 %v4345_v16 }
0x19f0   :  { %v4459_v21 = vpop.xlane.xlu1 %4458  ;;  %v4575_v35 = vpop.xlane.xlu0 %4574 }
0x19f1   :  { %6253 = vrcp.f32 %v4459_v21 }
0x19f2   :  { %6255 = vrcp.f32 %v4575_v35 }
0x19f3   :  { %v6250_v14 = vpop.eup %6249 }
0x19f4   :  { %v4233_v17 = vmul.f32 %v6250_v14, %v6234_v45  ;;  %v4464_v52 = vpop.permute.xlu1 %4463 }
0x19f5   :  { %v4469_v25 = vsel %vm220_vm3, %v4464_v52, 0 }
0x19f6   :  { %v4234_v20 = vpack.c.bf16 %v4233_v17, %v4233_v17 }
0x19f7   :  { %v6252_v36 = vpop.eup %6251 }
0x19f8   :  { %5969 = vmatmul.mubr.msk.bf16.vlgmr.msra.gmra.mrb[136].mxu1 %vm155_vm2, %v4234_v20  ;;  %v4347_v23 = vmul.f32 %v6252_v36, %v7351_v49  ;;  %v4580_v30 = vpop.permute.xlu1 %4579 }
0x19f9   :  { %5980 = vmatprep.mubr.msk.bf16.mxu1 %vm6268_vm0, %v6267_v0  ;;  %v4585_v33 = vsel %vm220_vm3, %v4580_v30, 0 }
0x19fa   :  { %v4348_v27 = vpack.c.bf16 %v4347_v23, %v4347_v23 }
0x19fb   :  { %v6254_v28 = vpop.eup %6253 }
0x19fc   :  { %v4461_v29 = vmul.f32 %v6254_v28, %v7353_v48  ;;  %v6256_v32 = vpop.eup %6255  ;;  %v4696_v37 = vpop.permute.xlu1 %4695 }
0x19fd   :  { %v4577_v34 = vmul.f32 %v6256_v32, %v7357_v50  ;;  %v4701_v41 = vsel %vm220_vm3, %v4696_v37, 0 }
0x19fe   :  { %v4462_v31 = vpack.c.bf16 %v4461_v29, %v4461_v29 }
0x19ff   :  { %v4578_v38 = vpack.c.bf16 %v4577_v34, %v4577_v34 }
0x1a08   :  { %v4691_v22 = vpop.xlane.xlu0 %4690 }
0x1a09   :  { %6257 = vrcp.f32 %v4691_v22 }
0x1a0c   :  { %v4351_v44 = vpop.permute.xlu0 %4350 }
0x1a0d   :  { %v4356_v24 = vsel %vm220_vm3, %v4351_v44, 0  ;;  %v5325_v44 = vld [vmem:[%s7638_s26 + $0x1] ss:$0 sm:$0xff] }
0x1a0e   :  { %5979 = vmatpush3.bf16.msra.mxu1 %v4356_v24 }
0x1a0f   :  { %5990 = vmatprep.subr.bf16.mxu1 %v6267_v0 }
0x1a11   :  { %5981 = vmatmul.mubr.msk.bf16.vlgmr.msra.gmra.mrb[140].mxu1 %vm155_vm2, %v4348_v27 }
0x1a12   :  { %5991 = vmatpush3.bf16.msra.mxu1 %v4469_v25  ;;  %5992 = vmatprep.mubr.msk.bf16.mxu1 %vm6268_vm0, %v6267_v0 }
0x1a13   :  { %6002 = vmatprep.subr.bf16.mxu1 %v6267_v0  ;;  %v6258_v39 = vpop.eup %6257 }
0x1a14   :  { %v4693_v42 = vmul.f32 %v6258_v39, %v7367_v59 }
0x1a16   :  { %v4694_v43 = vpack.c.bf16 %v4693_v42, %v4693_v42  ;;  %v6112_v42 = vld [vmem:[%s7538_s20 + $0x28] sm:$0xff]  }
0x1a19   :  { %5993 = vmatmul.mubr.msk.bf16.vlgmr.msra.gmra.mrb[144].mxu1 %vm155_vm2, %v4462_v31 }
0x1a1a   :  { %6003 = vmatpush3.bf16.msra.mxu1 %v4585_v33  ;;  %6004 = vmatprep.mubr.msk.bf16.mxu1 %vm6268_vm0, %v6267_v0 }
0x1a1b   :  { %6014 = vmatprep.subr.bf16.mxu1 %v6267_v0 }
0x1a21   :  { %6005 = vmatmul.mubr.msk.bf16.vlgmr.msra.gmra.mrb[148].mxu1 %vm155_vm2, %v4578_v38 }
0x1a22   :  { %6015 = vmatpush3.bf16.msra.mxu1 %v4701_v41  ;;  %6016 = vmatprep.mubr.msk.bf16.mxu1 %vm6268_vm0, %v6267_v0  ;;  %v6111_v41 = vld [vmem:[%s7538_s20 + $0x20] sm:$0xff]  }
0x1a23   :  { %6028 = vmatprep.subr.bf16.mxu1 %v6267_v0 }
0x1a29   :  { %6017 = vmatmul.mubr.msk.bf16.vlgmr.msra.gmra.mrb[152].mxu1 %vm155_vm2, %v4694_v43 }
0x1a2a   :  { %6032 = vmatprep.mubr.msk.bf16.mxu1 %vm6268_vm0, %v6267_v0 }
0x1a55   :  { %v3932_v40 = vpop.f32.mrb[124].mxu1 }
0x1a56   :  { %3938 = vst.msk [vmem:[#allocation2] sm:$0xff] %vm155_vm2, %v3932_v40  ;;  %v5934_v57 = vpop.f32.mrb[125].mxu1 }
0x1a57   :  { %v3935_v45 = vpop.f32.mrb[126].mxu1 }
0x1a58   :  { %v5935_v47 = vpop.f32.mrb[127].mxu1 }
0x1a96   :  { %v4045_v49 = vpop.f32.mrb[128].mxu1 }
0x1a97   :  { %4052 = vrot.lane.b32.xlu1 %v4045_v49, %s7625_s1  ;;  %v5946_v48 = vpop.f32.mrb[129].mxu1 }
0x1a98   :  { %v4048_v46 = vpop.f32.mrb[130].mxu1 }
0x1a99   :  { %v5947_v50 = vpop.f32.mrb[131].mxu1 }
0x1a9e   :  { %v4161_v51 = vpop.f32.mrb[132].mxu1 }
0x1a9f   :  { %4168 = vrot.lane.b32.xlu0 %v4161_v51, %s7626_s5  ;;  %v5958_v11 = vpop.f32.mrb[133].mxu1 }
0x1aa0   :  { %v4164_v53 = vpop.f32.mrb[134].mxu1 }
0x1aa1   :  { %v5959_v54 = vpop.f32.mrb[135].mxu1 }
0x1acb   :  { %v4277_v55 = vpop.f32.mrb[136].mxu1 }
0x1acc   :  { %4284 = vrot.lane.b32.xlu0 %v4277_v55, %s7627_s24  ;;  %v5970_v56 = vpop.f32.mrb[137].mxu1 }
0x1acd   :  { %v4280_v58 = vpop.f32.mrb[138].mxu1 }
0x1ace   :  { %v5971_v59 = vpop.f32.mrb[139].mxu1 }
0x1ae4   :  { %v4392_v60 = vpop.f32.mrb[140].mxu1 }
0x1ae5   :  { %4398 = vst.msk [vmem:[#allocation2 + $0x8] sm:$0xff] %vm155_vm2, %v4392_v60  ;;  %v5982_v61 = vpop.f32.mrb[141].mxu1  ;;  %v5331_v60 = vld [vmem:[%s7539_s14 + $0x1] ss:$0 sm:$0xff] }
0x1ae6   :  { %v4395_v62 = vpop.f32.mrb[142].mxu1 }
0x1ae7   :  { %v5983_v63 = vpop.f32.mrb[143].mxu1 }
0x1aec   :  { %v4505_v1 = vpop.f32.mrb[144].mxu1 }
0x1aed   :  { %4512 = vrot.lane.b32.xlu1 %v4505_v1, %s7625_s1  ;;  %v5994_v2 = vpop.f32.mrb[145].mxu1 }
0x1aee   :  { %v4508_v5 = vpop.f32.mrb[146].mxu1  ;;  %v5332_v2 = vld [vmem:[%s7540_s15 + $0x1] ss:$0 sm:$0xff] }
0x1aef   :  { %v5995_v6 = vpop.f32.mrb[147].mxu1 }
0x1af4   :  { %v4621_v10 = vpop.f32.mrb[148].mxu1 }
0x1af5   :  { %4628 = vrot.lane.b32.xlu1 %v4621_v10, %s7626_s5  ;;  %v6006_v12 = vpop.f32.mrb[149].mxu1  ;;  %v6113_v10 = vld [vmem:[%s7538_s20 + $0x30] sm:$0xff]  }
0x1af6   :  { %v4624_v9 = vpop.f32.mrb[150].mxu1  ;;  %v6114_v12 = vld [vmem:[%s7538_s20 + $0x38] sm:$0xff]  }
0x1af7   :  { %v6007_v18 = vpop.f32.mrb[151].mxu1  ;;  %v5338_v9 = vld [vmem:[%s7541_s19 + $0x1] ss:$0 sm:$0xff] }
0x1afc   :  { %v4737_v19 = vpop.f32.mrb[152].mxu1 }
0x1afd   :  { %4744 = vrot.lane.b32.xlu1 %v4737_v19, %s7627_s24  ;;  %v6018_v13 = vpop.f32.mrb[153].mxu1 }
0x1afe   :  { %v4740_v15 = vpop.f32.mrb[154].mxu1 }
0x1aff   :  { %v6019_v26 = vpop.f32.mrb[155].mxu1 }
0x1b09   :  { %v4053_v14 = vpop.permute.xlu1 %4052 }
0x1b0a   :  { %4055 = vst.msk [vmem:[#allocation2] sm:$0xff] %vm380_vm4, %v4053_v14 }
0x1b11   :  { %v4169_v17 = vpop.permute.xlu0 %4168 }
0x1b12   :  { %4171 = vst.msk [vmem:[#allocation2] sm:$0xff] %vm497_vm5, %v4169_v17 }
0x1b3e   :  { %v4285_v20 = vpop.permute.xlu0 %4284 }
0x1b3f   :  { %4287 = vst.msk [vmem:[#allocation2] sm:$0xff] %vm614_vm6, %v4285_v20 }
0x1b46   :  { %v4748_v36 = vld [vmem:[#allocation2] sm:$0xff] }
0x1b5f   :  { %v4513_v16 = vpop.permute.xlu1 %4512 }
0x1b60   :  { %4515 = vst.msk [vmem:[#allocation2 + $0x8] sm:$0xff] %vm380_vm4, %v4513_v16 }
0x1b67   :  { %v4629_v21 = vpop.permute.xlu1 %4628 }
0x1b68   :  { %4631 = vst.msk [vmem:[#allocation2 + $0x8] sm:$0xff] %vm497_vm5, %v4629_v21 }
0x1b6f   :  { %v4745_v35 = vpop.permute.xlu1 %4744 }
0x1b70   :  { %4747 = vst.msk [vmem:[#allocation2 + $0x8] sm:$0xff] %vm614_vm6, %v4745_v35 }
0x1b77   :  { %v4749_v22 = vld [vmem:[#allocation2 + $0x8] sm:$0xff] }
0x1b78   :  { %v4750_v23 = vpack.c.bf16 %v4749_v22, %v4748_v36 }
0x1b7a   :  { %6025 = vmatmul.mubr.msk.bf16.vlgmr.msra.gmra.mrb[144].mxu0 %vm106_vm1, %v4750_v23 }
0x1b7b   :  { %6044 = vmatprep.mubr.msk.bf16.mxu0 %vm6268_vm0, %v6267_v0  ;;  %6037 = vmatpush3.bf16.msra.mxu0 %v6111_v41 }
0x1b7c   :  { %6038 = vmatprep.subr.bf16.mxu0 %v6267_v0 }
0x1b7f   :  { %6039 = vmatpush3.bf16.msra.mxu0 %v6112_v42 }
0x1b80   :  { %6040 = vmatprep.subr.bf16.mxu0 %v6267_v0 }
0x1b83   :  { %6041 = vmatpush3.bf16.msra.mxu0 %v6113_v10 }
0x1b84   :  { %6042 = vmatprep.subr.bf16.mxu0 %v6267_v0 }
0x1b87   :  { %6043 = vmatpush3.bf16.msra.mxu0 %v6114_v12 }
0x1c4d   :  { %v4813_v24 = vpop.f32.mrb[144].mxu0 }
0x1c4e   :  { %v4814_v52 = vadd.f32 %v5325_v44, %v4813_v24  ;;  %v6026_v27 = vpop.f32.mrb[145].mxu0 }
0x1c4f   :  { %v4816_v28 = vpop.f32.mrb[146].mxu0 }
0x1c50   :  { %v4820_v25 = vadd.f32 %v4814_v52, %v7233_v3  ;;  %v4817_v29 = vadd.f32 %v5325_v44, %v4816_v28  ;;  %v6027_v30 = vpop.f32.mrb[147].mxu0  ;;  %v6109_v3 = vld [vmem:[%s7537_s18 + $0x10] sm:$0xff]  }
0x1c51   :  { %6029 = vmatpush3.bf16.msra.mxu1 %v6109_v3 }
0x1c52   :  { %v4821_v31 = vadd.f32 %v4817_v29, %v7235_v4  ;;  %v4826_v32 = vsel %vm106_vm1, %v4820_v25, 0.0  ;;  %v4834_v33 = vmul.f32 %v4820_v25, %v4820_v25  ;;  %v6110_v4 = vld [vmem:[%s7537_s18 + $0x18] sm:$0xff]   ;;  %6030 = vmatprep.subr.bf16.mxu1 %v6267_v0  ;;  %v5351_v0 = vld [vmem:[%s7542_s21 + $0x1] ss:$0 sm:$0xff]  ;;  %s7639_s21 = sld [smem:[#allocation17_spill]] }
0x1c53   :  { %4827 = vadd.xlane.f32.xlu0 %v4826_v32 }
0x1c54   :  { %v4829_v34 = vsel %vm106_vm1, %v4821_v31, 0.0  ;;  %v4836_v37 = vsel %vm106_vm1, %v4834_v33, 0.0  ;;  %v4835_v38 = vmul.f32 %v4821_v31, %v4821_v31 }
0x1c55   :  { %4830 = vadd.xlane.f32.xlu1 %v4829_v34  ;;  %6031 = vmatpush3.bf16.msra.mxu1 %v6110_v4 }
0x1c56   :  { %v4839_v39 = vsel %vm106_vm1, %v4835_v38, 0.0 }
0x1c57   :  { %4837 = vadd.xlane.f32.xlu0 %v4836_v37 }
0x1c58   :  { %v5082_v32 = vld [vmem:[%s7639_s21] sm:$0xff]  ;;  %v5083_v33 = vld [vmem:[%s7639_s21 + $0x8] sm:$0xff]  ;;  %v5084_v34 = vld [vmem:[%s7639_s21 + $0x10] sm:$0xff] }
0x1c59   :  { %v6059_v37 = vpack.c.bf16 %v5083_v33, %v5082_v32  ;;  %v5085_v38 = vld [vmem:[%s7639_s21 + $0x18] sm:$0xff] }
0x1c5b   :  { %4840 = vadd.xlane.f32.xlu0 %v4839_v39  ;;  %v6063_v39 = vpack.c.bf16 %v5085_v38, %v5084_v34  ;;  %6060 = vmatprep.subr.bf16.mxu0 %v6059_v37 }
0x1ce0   :  { %v4828_v43 = vpop.xlane.xlu0 %4827 }
0x1ce1   :  { %v4832_v40 = vmul.f32 0.03125, %v4828_v43 }
0x1ce2   :  { %v4831_v57 = vpop.xlane.xlu1 %4830 }
0x1ce3   :  { %v4844_v47 = vmul.f32 %v4832_v40, %v4832_v40  ;;  %v4833_v49 = vmul.f32 0.03125, %v4831_v57  ;;  %v4848_v56 = vsub.f32 %v4820_v25, %v4832_v40 }
0x1ce4   :  { %v4838_v45 = vpop.xlane.xlu0 %4837 }
0x1ce5   :  { %v4842_v48 = vmul.f32 0.03125, %v4838_v45  ;;  %v4845_v51 = vmul.f32 %v4833_v49, %v4833_v49  ;;  %v4849_v61 = vsub.f32 %v4821_v31, %v4833_v49 }
0x1ce7   :  { %v4846_v46 = vsub.f32 %v4842_v48, %v4844_v47 }
0x1ce8   :  { %v4841_v50 = vpop.xlane.xlu0 %4840 }
0x1ce9   :  { %v4850_v11 = vadd.f32 1e-05, %v4846_v46  ;;  %v4843_v53 = vmul.f32 0.03125, %v4841_v50 }
0x1ceb   :  { %6259 = vrsqrt.f32 %v4850_v11  ;;  %v4847_v54 = vsub.f32 %v4843_v53, %v4845_v51 }
0x1ced   :  { %v4851_v55 = vadd.f32 1e-05, %v4847_v54  ;;  %v5359_v54 = vld [vmem:[%s7543_s16 + $0x1] ss:$0 sm:$0xff] }
0x1cef   :  { %6261 = vrsqrt.f32 %v4851_v55 }
0x1cf5   :  { %v6260_v58 = vpop.eup %6259 }
0x1cf6   :  { %v4854_v59 = vmul.f32 %v6260_v58, %v4848_v56 }
0x1cf8   :  { %v4862_v1 = vmul.f32 %v5331_v60, %v4854_v59  ;;  %v5360_v59 = vld [vmem:[%s7544_s17 + $0x1] ss:$0 sm:$0xff]  ;;  %s7641_s17 = sld [smem:[#allocation19_spill]] }
0x1cf9   :  { %v6262_v62 = vpop.eup %6261 }
0x1cfa   :  { %v4855_v63 = vmul.f32 %v6262_v62, %v4849_v61  ;;  %v4870_v6 = vadd.f32 %v5332_v2, %v4862_v1 }
0x1cfc   :  { %v4863_v5 = vmul.f32 %v5331_v60, %v4855_v63 }
0x1cfe   :  { %v4871_v8 = vadd.f32 %v5332_v2, %v4863_v5  ;;  %v5361_v2 = vld [vmem:[%s7640_s29] ss:$0 sm:$0xff] }
0x1d00   :  { %v4872_v7 = vpack.c.bf16 %v4871_v8, %v4870_v6 }
0x1d02   :  { %6033 = vmatmul.mubr.msk.bf16.vlgmr.msra.gmra.mrb[156].mxu1 %vm106_vm1, %v4872_v7 }
0x1dd5   :  { %v4935_v18 = vpop.f32.mrb[156].mxu1 }
0x1dd6   :  { %v4936_v19 = vadd.f32 %v5338_v9, %v4935_v18  ;;  %v6034_v13 = vpop.f32.mrb[157].mxu1 }
0x1dd7   :  { %v4938_v15 = vpop.f32.mrb[158].mxu1 }
0x1dd8   :  { %v4939_v26 = vadd.f32 %v5338_v9, %v4938_v15  ;;  %v6035_v14 = vpop.f32.mrb[159].mxu1  ;;  %v4942_v17 = vmax.f32 %v4936_v19, 0.0 }
0x1dda   :  { %v4943_v20 = vmax.f32 %v4939_v26, 0.0 }
0x1ddc   :  { %v4944_v16 = vpack.c.bf16 %v4943_v20, %v4942_v17 }
0x1dde   :  { %6045 = vmatmul.mubr.msk.bf16.vlgmr.msra.gmra.mrb[148].mxu0 %vm2483_vm7, %v4944_v16 }
0x1ddf   :  { %6062 = vmatpush3.bf16.msra.mxu0 %v6059_v37 }
0x1de0   :  { %6064 = vmatprep.subr.bf16.mxu0 %v6063_v39 }
0x1de3   :  { %6066 = vmatpush3.bf16.msra.mxu0 %v6063_v39 }
0x1eb1   :  { %v5023_v21 = vpop.f32.mrb[148].mxu0 }
0x1eb2   :  { %v5024_v35 = vadd.f32 %v5351_v0, %v5023_v21  ;;  %v6046_v36 = vpop.f32.mrb[149].mxu0 }
0x1eb3   :  { %v5026_v22 = vpop.f32.mrb[150].mxu0 }
0x1eb4   :  { %v5030_v23 = vadd.f32 %v5024_v35, %v4870_v6  ;;  %v5027_v44 = vadd.f32 %v5351_v0, %v5026_v22  ;;  %v6047_v24 = vpop.f32.mrb[151].mxu0 }
0x1eb6   :  { %v5031_v52 = vadd.f32 %v5027_v44, %v4871_v8  ;;  %v5036_v27 = vsel %vm106_vm1, %v5030_v23, 0.0  ;;  %v5044_v28 = vmul.f32 %v5030_v23, %v5030_v23 }
0x1eb7   :  { %5037 = vadd.xlane.f32.xlu1 %v5036_v27 }
0x1eb8   :  { %v5039_v25 = vsel %vm106_vm1, %v5031_v52, 0.0  ;;  %v5045_v29 = vmul.f32 %v5031_v52, %v5031_v52  ;;  %v5046_v30 = vsel %vm106_vm1, %v5044_v28, 0.0 }
0x1eb9   :  { %5040 = vadd.xlane.f32.xlu0 %v5039_v25 }
0x1eba   :  { %v5049_v31 = vsel %vm106_vm1, %v5045_v29, 0.0 }
0x1ebb   :  { %5047 = vadd.xlane.f32.xlu1 %v5046_v30 }
0x1ebd   :  { %5050 = vadd.xlane.f32.xlu0 %v5049_v31 }
0x1f44   :  { %v5038_v3 = vpop.xlane.xlu1 %5037 }
0x1f45   :  { %v5042_v4 = vmul.f32 0.03125, %v5038_v3 }
0x1f46   :  { %v5041_v41 = vpop.xlane.xlu0 %5040 }
0x1f47   :  { %v5043_v42 = vmul.f32 0.03125, %v5041_v41  ;;  %v5054_v40 = vmul.f32 %v5042_v4, %v5042_v4  ;;  %v5058_v11 = vsub.f32 %v5030_v23, %v5042_v4 }
0x1f48   :  { %v5048_v43 = vpop.xlane.xlu1 %5047 }
0x1f49   :  { %v5052_v57 = vmul.f32 0.03125, %v5048_v43  ;;  %v5055_v47 = vmul.f32 %v5043_v42, %v5043_v42  ;;  %v5059_v55 = vsub.f32 %v5031_v52, %v5043_v42 }
0x1f4a   :  { %v5051_v45 = vpop.xlane.xlu0 %5050 }
0x1f4b   :  { %v5056_v49 = vsub.f32 %v5052_v57, %v5054_v40  ;;  %v5053_v48 = vmul.f32 0.03125, %v5051_v45 }
0x1f4d   :  { %v5060_v46 = vadd.f32 1e-05, %v5056_v49  ;;  %v5057_v50 = vsub.f32 %v5053_v48, %v5055_v47 }
0x1f4f   :  { %6263 = vrsqrt.f32 %v5060_v46  ;;  %v5061_v51 = vadd.f32 1e-05, %v5057_v50 }
0x1f51   :  { %6265 = vrsqrt.f32 %v5061_v51 }
0x1f59   :  { %v6264_v53 = vpop.eup %6263 }
0x1f5a   :  { %v5064_v56 = vmul.f32 %v6264_v53, %v5058_v11 }
0x1f5b   :  { %v6266_v58 = vpop.eup %6265 }
0x1f5c   :  { %v5065_v60 = vmul.f32 %v6266_v58, %v5059_v55  ;;  %v5072_v61 = vmul.f32 %v5359_v54, %v5064_v56 }
0x1f5e   :  { %v5073_v62 = vmul.f32 %v5359_v54, %v5065_v60  ;;  %v5080_v63 = vadd.f32 %v5360_v59, %v5072_v61 }
0x1f60   :  { %v5081_v1 = vadd.f32 %v5360_v59, %v5073_v62  ;;  %6056 = vmatprep.mubr.msk.f32.mxu0 %vm106_vm1, %v5080_v63 }
0x1f62   :  { %6057 = vmatmul.mubr.msk.f32.vlgmr.msra.gmra.mrb[152].mxu0 %vm106_vm1, %v5081_v1 }
0x2035   :  { %v6058_v5 = vpop.f32.mrb[152].mxu0 }
0x2036   :  { %v5171_v6 = vadd.f32 %v6058_v5, %v5361_v2  ;;  %v5165_v8 = vpop.f32.mrb[153].mxu0 }
0x2037   :  { %v5166_v7 = vadd.f32 %v5361_v2, %v5165_v8 }
0x2038   :  { %5175 = vst [vmem:[%s7641_s17 + $0x8] sm:$0xff] %v5171_v6 }
0x2039   :  { %5174 = vst [vmem:[%s7641_s17] sm:$0xff] %v5166_v7 }

</bundles_post_ra>
